<compile_context>
chip_gen: v7x
topology: tpu7x:2x2x1
jax: 0.10.0
libtpu: 0.0.40
codegen_flags: <defaults>
</compile_context>

<pallas_src>
import jax
import jax.numpy as jnp
from jax.experimental import pallas as pl
from jax.experimental.pallas import tpu as pltpu


# ---------------------------------------------------------------------------
# Fused kernel: (upsampled x, skip) -> concat+pad in VMEM -> conv3x3+BN+ReLU
#               -> conv3x3+BN+ReLU -> single HBM store.  One batch element
#               per grid step.
# ---------------------------------------------------------------------------
def _decoder_block_kernel(xup_ref, skip_ref,
                          w1_ref, s1_ref, b1_ref,
                          w2_ref, s2_ref, b2_ref,
                          o_ref,
                          pad1_ref, row1_ref, patch1_ref,
                          pad2_ref, row2_ref, patch2_ref):
    # xup_ref:    (1, H, W, Cx)        upsampled x, NHWC, bf16
    # skip_ref:   (1, H, W, Cs)        skip connection, NHWC, bf16
    # w1_ref:     (9*(Cx+Cs), Cout)    conv1 taps, row = (ky*3 + kx)*Cin + ci
    # w2_ref:     (9*Cout, Cout)       conv2 taps
    # s*/b*:      (1, Cout)            folded BatchNorm scale / bias
    # o_ref:      (1, H, W, Cout)
    # pad1_ref:   (H+2, W+2, Cin1)     zero-halo concat input   (f32 scratch)
    # row1_ref:   (H+2, W, 3*Cin1)     kx-packed rows           (f32 scratch)
    # patch1_ref: (H, W, 9*Cin1)       im2col patches           (f32 scratch)
    # pad2/row2/patch2: same structure for conv2 (Cin = Cout).
    H, W, Cout = o_ref.shape[1], o_ref.shape[2], o_ref.shape[3]
    Cx = xup_ref.shape[3]
    Cs = skip_ref.shape[3]
    Cin1 = Cx + Cs

    def zero_border(pad_ref, c):
        # Only the 1-px halo needs zeroing: the interior is fully overwritten
        # every grid step.  O(H*C + W*C) instead of two full-buffer sweeps,
        # and correct under any multi-core sharding of the batch axis.
        pad_ref[0:1, :, :] = jnp.zeros((1, W + 2, c), jnp.float32)
        pad_ref[H + 1:H + 2, :, :] = jnp.zeros((1, W + 2, c), jnp.float32)
        pad_ref[:, 0:1, :] = jnp.zeros((H + 2, 1, c), jnp.float32)
        pad_ref[:, W + 1:W + 2, :] = jnp.zeros((H + 2, 1, c), jnp.float32)

    def conv3x3(pad_ref, row_ref, patch_ref, w_ref, c_in):
        # Hoisted kx shifts: the only sublane-misaligned reads happen 3x per
        # conv (not 9x) and are reused by all three ky taps.
        for kx in range(3):
            row_ref[:, :, kx * c_in:(kx + 1) * c_in] = pad_ref[:, kx:kx + W, :]
        # ky taps slice the (free) major dim of row_ref.
        for ky in range(3):
            patch_ref[:, :, ky * 3 * c_in:(ky + 1) * 3 * c_in] = (
                row_ref[ky:ky + H, :, :])
        # ONE im2col matmul per conv: K = 9*c_in, M = H*W.
        return jax.lax.dot_general(
            patch_ref[...], w_ref[...],
            dimension_numbers=(((2,), (0,)), ((), ())),
            preferred_element_type=jnp.float32)              # (H, W, Cout)

    # Fused concat + zero padding straight into the halo'd VMEM tile
    # (no HBM concat, no host-side jnp.pad); bf16 loads upcast to f32.
    zero_border(pad1_ref, Cin1)
    pad1_ref[1:H + 1, 1:W + 1, 0:Cx] = xup_ref[0].astype(jnp.float32)
    pad1_ref[1:H + 1, 1:W + 1, Cx:Cin1] = skip_ref[0].astype(jnp.float32)

    # --- conv1: 3x3, pad=1, no bias, + folded BN + ReLU --------------------
    acc1 = conv3x3(pad1_ref, row1_ref, patch1_ref, w1_ref, Cin1)
    h1 = jnp.maximum(acc1 * s1_ref[0] + b1_ref[0], 0.0)

    # Intermediate activation never leaves VMEM.
    zero_border(pad2_ref, Cout)
    pad2_ref[1:H + 1, 1:W + 1, :] = h1

    # --- conv2: 3x3, pad=1, no bias, + folded BN + ReLU --------------------
    acc2 = conv3x3(pad2_ref, row2_ref, patch2_ref, w2_ref, Cout)
    o_ref[0] = jnp.maximum(acc2 * s2_ref[0] + b2_ref[0], 0.0).astype(o_ref.dtype)


# ---------------------------------------------------------------------------
# Bilinear resize matrices (F.interpolate, mode='bilinear',
# align_corners=False, exact PyTorch index math) and BatchNorm folding.
# ---------------------------------------------------------------------------
def _resize_matrix(out_size, in_size):
    if out_size == in_size:
        return jnp.eye(out_size, dtype=jnp.float32)
    scale = in_size / out_size
    dst = jnp.arange(out_size, dtype=jnp.float32)
    src = jnp.clip((dst + 0.5) * scale - 0.5, 0.0, float(in_size - 1))
    i0 = jnp.floor(src).astype(jnp.int32)
    i1 = jnp.minimum(i0 + 1, in_size - 1)
    w1 = src - i0.astype(jnp.float32)
    w0 = 1.0 - w1
    return (w0[:, None] * jax.nn.one_hot(i0, in_size, dtype=jnp.float32)
            + w1[:, None] * jax.nn.one_hot(i1, in_size, dtype=jnp.float32))


def _fold_bn(gamma, beta, mean, var, eps=1e-5):
    s = gamma / jnp.sqrt(var + eps)
    return s, beta - mean * s


# ---------------------------------------------------------------------------
# DecoderBlock forward (NCHW in / NCHW out, matching the PyTorch module).
# ---------------------------------------------------------------------------
def decoder_block_forward(x_nchw, skip_nchw, params):
    N, Cx, Hin, Win = x_nchw.shape
    _, Cs, Hs, Ws = skip_nchw.shape
    Cout = params['w1'].shape[-1]
    Cin1 = Cx + Cs

    # Bilinear upsample emitted directly as a bf16 NHWC slab: one half-width
    # HBM pass; concat / pad / both convs are fused inside the kernel.
    A = _resize_matrix(Hs, Hin)                               # (Hs, Hin)
    B = _resize_matrix(Ws, Win)                               # (Ws, Win)
    x_up = jnp.einsum('ph,qw,nchw->npqc', A, B,
                      x_nchw.astype(jnp.float32)).astype(jnp.bfloat16)
    skip_nhwc = jnp.transpose(skip_nchw, (0, 2, 3, 1)).astype(jnp.bfloat16)
    # TODO(synk): if neighboring UNet blocks are also Pallas kernels, keep
    # NHWC end-to-end and drop this transpose plus the final NHWC->NCHW one.

    s1, b1 = _fold_bn(params['bn1_gamma'], params['bn1_beta'],
                      params['bn1_mean'], params['bn1_var'])
    s2, b2 = _fold_bn(params['bn2_gamma'], params['bn2_beta'],
                      params['bn2_mean'], params['bn2_var'])

    # HWIO -> (9*Cin, Cout); row-major reshape gives (ky, kx, ci) tap order,
    # matching the in-kernel patch layout.
    w1 = params['w1'].reshape(9 * Cin1, Cout).astype(jnp.float32)
    w2 = params['w2'].reshape(9 * Cout, Cout).astype(jnp.float32)
    s1 = s1.reshape(1, Cout).astype(jnp.float32)
    b1 = b1.reshape(1, Cout).astype(jnp.float32)
    s2 = s2.reshape(1, Cout).astype(jnp.float32)
    b2 = b2.reshape(1, Cout).astype(jnp.float32)

    out_nhwc = pl.pallas_call(
        _decoder_block_kernel,
        out_shape=jax.ShapeDtypeStruct((N, Hs, Ws, Cout), x_nchw.dtype),
        grid_spec=pltpu.PrefetchScalarGridSpec(
            num_scalar_prefetch=0,
            grid=(N,),
            in_specs=[
                pl.BlockSpec((1, Hs, Ws, Cx), lambda n: (n, 0, 0, 0)),
                pl.BlockSpec((1, Hs, Ws, Cs), lambda n: (n, 0, 0, 0)),
                pl.BlockSpec((9 * Cin1, Cout), lambda n: (0, 0)),
                pl.BlockSpec((1, Cout), lambda n: (0, 0)),
                pl.BlockSpec((1, Cout), lambda n: (0, 0)),
                pl.BlockSpec((9 * Cout, Cout), lambda n: (0, 0)),
                pl.BlockSpec((1, Cout), lambda n: (0, 0)),
                pl.BlockSpec((1, Cout), lambda n: (0, 0)),
            ],
            out_specs=pl.BlockSpec((1, Hs, Ws, Cout), lambda n: (n, 0, 0, 0)),
            scratch_shapes=[
                pltpu.VMEM((Hs + 2, Ws + 2, Cin1), jnp.float32),     # pad1
                pltpu.VMEM((Hs + 2, Ws, 3 * Cin1), jnp.float32),     # row1
                pltpu.VMEM((Hs, Ws, 9 * Cin1), jnp.float32),         # patch1
                pltpu.VMEM((Hs + 2, Ws + 2, Cout), jnp.float32),     # pad2
                pltpu.VMEM((Hs + 2, Ws, 3 * Cout), jnp.float32),     # row2
                pltpu.VMEM((Hs, Ws, 9 * Cout), jnp.float32),         # patch2
            ],
        ),
        compiler_params=pltpu.CompilerParams(
            dimension_semantics=("parallel",),
            # 64 MiB fits every generation at these sizes; per-generation
            # tuning (raise toward 100+ MiB on v5e/v6e, <= ~48 MiB on v7x)
            # belongs with the H-tiling TODO above.
            vmem_limit_bytes=64 * 1024 * 1024,
        ),
    )(x_up, skip_nhwc, w1, s1, b1, w2, s2, b2)

    return jnp.transpose(out_nhwc, (0, 3, 1, 2))              # -> NCHW


# ---------------------------------------------------------------------------
# Pure-JAX reference (XLA convs) for correctness self-checks.
# quantize_inputs=True mimics the kernel's bf16 HBM boundary so the residual
# error is only matmul rounding / accumulation order (tight check).
# ---------------------------------------------------------------------------
def _reference_forward(x_nchw, skip_nchw, params, quantize_inputs=False):
    _, _, Hin, Win = x_nchw.shape
    _, _, Hs, Ws = skip_nchw.shape
    A = _resize_matrix(Hs, Hin)
    B = _resize_matrix(Ws, Win)
    x_up = jnp.einsum('ph,qw,nchw->npqc', A, B, x_nchw.astype(jnp.float32))
    skip = jnp.transpose(skip_nchw, (0, 2, 3, 1)).astype(jnp.float32)
    if quantize_inputs:
        x_up = x_up.astype(jnp.bfloat16).astype(jnp.float32)
        skip = skip.astype(jnp.bfloat16).astype(jnp.float32)
    h = jnp.concatenate([x_up, skip], axis=-1)

    def conv_bn_relu(x, w, g, bt, m, v):
        y = jax.lax.conv_general_dilated(
            x, w, (1, 1), ((1, 1), (1, 1)),
            dimension_numbers=('NHWC', 'HWIO', 'NHWC'),
            precision=jax.lax.Precision.HIGHEST)
        s, b = _fold_bn(g, bt, m, v)
        return jnp.maximum(y * s + b, 0.0)

    h = conv_bn_relu(h, params['w1'], params['bn1_gamma'], params['bn1_beta'],
                     params['bn1_mean'], params['bn1_var'])
    h = conv_bn_relu(h, params['w2'], params['bn2_gamma'], params['bn2_beta'],
                     params['bn2_mean'], params['bn2_var'])
    return jnp.transpose(h, (0, 3, 1, 2))


def init_params(key, in_channels, skip_channels, out_channels):
    c_in_total = in_channels + skip_channels
    k = jax.random.split(key, 6)
    # Conv weights stored directly in HWIO = (3, 3, Cin, Cout).
    w1 = 0.1 * jax.random.normal(k[0], (3, 3, c_in_total, out_channels),
                                 jnp.float32)
    w2 = 0.1 * jax.random.normal(k[1], (3, 3, out_channels, out_channels),
                                 jnp.float32)
    return dict(
        w1=w1, w2=w2,
        bn1_gamma=1.0 + 0.05 * jax.random.normal(k[2], (out_channels,)),
        bn1_beta=0.05 * jax.random.normal(k[3], (out_channels,)),
        bn1_mean=jnp.zeros((out_channels,), jnp.float32),
        bn1_var=jnp.ones((out_channels,), jnp.float32),
        bn2_gamma=1.0 + 0.05 * jax.random.normal(k[4], (out_channels,)),
        bn2_beta=0.05 * jax.random.normal(k[5], (out_channels,)),
        bn2_mean=jnp.zeros((out_channels,), jnp.float32),
        bn2_var=jnp.ones((out_channels,), jnp.float32),
    )


if __name__ == "__main__":
    # DecoderBlock(in_channels=8, skip_channels=4, out_channels=8)
    N = 2
    in_channels, skip_channels, out_channels = 8, 4, 8
    Hx = Wx = 8       # previous decoder layer spatial size
    Hs = Ws = 16      # skip connection spatial size (upsample target)

    key = jax.random.PRNGKey(0)
    kxk, ksk, kpk = jax.random.split(key, 3)
    x = jax.random.normal(kxk, (N, in_channels, Hx, Wx), jnp.float32)    # NCHW
    skip = jax.random.normal(ksk, (N, skip_channels, Hs, Ws), jnp.float32)
    params = init_params(kpk, in_channels, skip_channels, out_channels)

    out = jax.block_until_ready(decoder_block_forward(x, skip, params))
    assert out.shape == (N, out_channels, Hs, Ws), out.shape
    assert bool(jnp.all(jnp.isfinite(out)))

    # Tight check: reference with the same bf16 input quantization as the
    # kernel's HBM boundary -> residual is matmul rounding / sum order only.
    ref_q = jax.block_until_ready(
        _reference_forward(x, skip, params, quantize_inputs=True))
    err_q = float(jnp.max(jnp.abs(out - ref_q)))
    assert err_q < 2e-2, f"max abs error vs bf16-matched reference: {err_q}"

    # Loose check: pure-f32 reference; gap is bf16 input quantization.
    ref_f = jax.block_until_ready(
        _reference_forward(x, skip, params, quantize_inputs=False))
    err_f = float(jnp.max(jnp.abs(out - ref_f)))
    assert err_f < 5e-2, f"max abs error vs f32 reference: {err_f}"

    print("KERNEL_OK")
</pallas_src>

<mosaic_0001>
module attributes {stable_mosaic.version = 11 : i64} {
  func.func @_decoder_block_kernel(%arg0: i32, %arg1: memref<1x16x16x8xbf16, #tpu.memory_space<vmem>>, %arg2: memref<1x16x16x4xbf16, #tpu.memory_space<vmem>>, %arg3: memref<108x8xf32, #tpu.memory_space<vmem>>, %arg4: memref<1x8xf32, #tpu.memory_space<vmem>>, %arg5: memref<1x8xf32, #tpu.memory_space<vmem>>, %arg6: memref<72x8xf32, #tpu.memory_space<vmem>>, %arg7: memref<1x8xf32, #tpu.memory_space<vmem>>, %arg8: memref<1x8xf32, #tpu.memory_space<vmem>>, %arg9: memref<1x16x16x8xf32, #tpu.memory_space<vmem>>, %arg10: memref<18x18x12xf32, #tpu.memory_space<vmem>>, %arg11: memref<18x16x36xf32, #tpu.memory_space<vmem>>, %arg12: memref<16x16x108xf32, #tpu.memory_space<vmem>>, %arg13: memref<18x18x8xf32, #tpu.memory_space<vmem>>, %arg14: memref<18x16x24xf32, #tpu.memory_space<vmem>>, %arg15: memref<16x16x72xf32, #tpu.memory_space<vmem>>) attributes {dimension_semantics = [#tpu.dimension_semantics<parallel>], iteration_bounds = array<i64: 2>, scalar_prefetch = 0 : i64, scratch_operands = 6 : i64, tpu.core_type = #tpu.core_type<tc>, window_params = [{transform_indices = @transform_0, window_bounds = array<i64: 1, 16, 16, 8>}, {transform_indices = @transform_1, window_bounds = array<i64: 1, 16, 16, 4>}, {pipeline_mode = #tpu.pipeline_mode<synchronous>, transform_indices = @transform_2, window_bounds = array<i64: 108, 8>}, {pipeline_mode = #tpu.pipeline_mode<synchronous>, transform_indices = @transform_3, window_bounds = array<i64: 1, 8>}, {pipeline_mode = #tpu.pipeline_mode<synchronous>, transform_indices = @transform_4, window_bounds = array<i64: 1, 8>}, {pipeline_mode = #tpu.pipeline_mode<synchronous>, transform_indices = @transform_5, window_bounds = array<i64: 72, 8>}, {pipeline_mode = #tpu.pipeline_mode<synchronous>, transform_indices = @transform_6, window_bounds = array<i64: 1, 8>}, {pipeline_mode = #tpu.pipeline_mode<synchronous>, transform_indices = @transform_7, window_bounds = array<i64: 1, 8>}, {transform_indices = @transform_8, window_bounds = array<i64: 1, 16, 16, 8>}]} {
    %cst = arith.constant 0.000000e+00 : f32
    %0 = vector.broadcast %cst : f32 to vector<1x18x12xf32>
    %c0 = arith.constant 0 : index
    %c0_0 = arith.constant 0 : index
    %c0_1 = arith.constant 0 : index
    %1 = vector.load %arg10[%c0, %c0_0, %c0_1] : memref<18x18x12xf32, #tpu.memory_space<vmem>>, vector<1x18x12xf32>
    tpu.vector_store %arg10[%c0, %c0_0, %c0_1], %0 {strides = array<i32>} : memref<18x18x12xf32, #tpu.memory_space<vmem>>, vector<1x18x12xf32>,
    %cst_2 = arith.constant 0.000000e+00 : f32
    %2 = vector.broadcast %cst_2 : f32 to vector<1x18x12xf32>
    %c17 = arith.constant 17 : index
    %c0_3 = arith.constant 0 : index
    %c0_4 = arith.constant 0 : index
    %3 = vector.load %arg10[%c17, %c0_3, %c0_4] : memref<18x18x12xf32, #tpu.memory_space<vmem>>, vector<1x18x12xf32>
    tpu.vector_store %arg10[%c17, %c0_3, %c0_4], %2 {strides = array<i32>} : memref<18x18x12xf32, #tpu.memory_space<vmem>>, vector<1x18x12xf32>,
    %cst_5 = arith.constant 0.000000e+00 : f32
    %4 = vector.broadcast %cst_5 : f32 to vector<18x1x12xf32>
    %c0_6 = arith.constant 0 : index
    %c0_7 = arith.constant 0 : index
    %c0_8 = arith.constant 0 : index
    %5 = vector.load %arg10[%c0_6, %c0_7, %c0_8] : memref<18x18x12xf32, #tpu.memory_space<vmem>>, vector<18x1x12xf32>
    tpu.vector_store %arg10[%c0_6, %c0_7, %c0_8], %4 {strides = array<i32>} : memref<18x18x12xf32, #tpu.memory_space<vmem>>, vector<18x1x12xf32>,
    %cst_9 = arith.constant 0.000000e+00 : f32
    %6 = vector.broadcast %cst_9 : f32 to vector<18x1x12xf32>
    %c0_10 = arith.constant 0 : index
    %c17_11 = arith.constant 17 : index
    %c0_12 = arith.constant 0 : index
    %7 = vector.load %arg10[%c0_10, %c17_11, %c0_12] : memref<18x18x12xf32, #tpu.memory_space<vmem>>, vector<18x1x12xf32>
    tpu.vector_store %arg10[%c0_10, %c17_11, %c0_12], %6 {strides = array<i32>} : memref<18x18x12xf32, #tpu.memory_space<vmem>>, vector<18x1x12xf32>,
    %c0_13 = arith.constant 0 : index
    %c0_14 = arith.constant 0 : index
    %c0_15 = arith.constant 0 : index
    %c0_16 = arith.constant 0 : index
    %8 = vector.load %arg1[%c0_13, %c0_14, %c0_15, %c0_16] : memref<1x16x16x8xbf16, #tpu.memory_space<vmem>>, vector<1x16x16x8xbf16>
    %9 = vector.shape_cast %8 : vector<1x16x16x8xbf16> to vector<16x16x8xbf16>
    %10 = arith.extf %9 : vector<16x16x8xbf16> to vector<16x16x8xf32>
    %c1 = arith.constant 1 : index
    %c1_17 = arith.constant 1 : index
    %c0_18 = arith.constant 0 : index
    %11 = vector.load %arg10[%c1, %c1_17, %c0_18] : memref<18x18x12xf32, #tpu.memory_space<vmem>>, vector<16x16x8xf32>
    tpu.vector_store %arg10[%c1, %c1_17, %c0_18], %10 {strides = array<i32>} : memref<18x18x12xf32, #tpu.memory_space<vmem>>, vector<16x16x8xf32>,
    %c0_19 = arith.constant 0 : index
    %c0_20 = arith.constant 0 : index
    %c0_21 = arith.constant 0 : index
    %c0_22 = arith.constant 0 : index
    %12 = vector.load %arg2[%c0_19, %c0_20, %c0_21, %c0_22] : memref<1x16x16x4xbf16, #tpu.memory_space<vmem>>, vector<1x16x16x4xbf16>
    %13 = vector.shape_cast %12 : vector<1x16x16x4xbf16> to vector<16x16x4xbf16>
    %14 = arith.extf %13 : vector<16x16x4xbf16> to vector<16x16x4xf32>
    %c1_23 = arith.constant 1 : index
    %c1_24 = arith.constant 1 : index
    %c8 = arith.constant 8 : index
    %15 = vector.load %arg10[%c1_23, %c1_24, %c8] : memref<18x18x12xf32, #tpu.memory_space<vmem>>, vector<16x16x4xf32>
    tpu.vector_store %arg10[%c1_23, %c1_24, %c8], %14 {strides = array<i32>} : memref<18x18x12xf32, #tpu.memory_space<vmem>>, vector<16x16x4xf32>,
    %c0_25 = arith.constant 0 : index
    %c0_26 = arith.constant 0 : index
    %c0_27 = arith.constant 0 : index
    %16 = vector.load %arg10[%c0_25, %c0_26, %c0_27] : memref<18x18x12xf32, #tpu.memory_space<vmem>>, vector<18x16x12xf32>
    %c0_28 = arith.constant 0 : index
    %c0_29 = arith.constant 0 : index
    %c0_30 = arith.constant 0 : index
    %17 = vector.load %arg11[%c0_28, %c0_29, %c0_30] : memref<18x16x36xf32, #tpu.memory_space<vmem>>, vector<18x16x12xf32>
    tpu.vector_store %arg11[%c0_28, %c0_29, %c0_30], %16 {strides = array<i32>} : memref<18x16x36xf32, #tpu.memory_space<vmem>>, vector<18x16x12xf32>,
    %c0_31 = arith.constant 0 : index
    %c1_32 = arith.constant 1 : index
    %c0_33 = arith.constant 0 : index
    %18 = vector.load %arg10[%c0_31, %c1_32, %c0_33] : memref<18x18x12xf32, #tpu.memory_space<vmem>>, vector<18x16x12xf32>
    %c0_34 = arith.constant 0 : index
    %c0_35 = arith.constant 0 : index
    %c12 = arith.constant 12 : index
    %19 = vector.load %arg11[%c0_34, %c0_35, %c12] : memref<18x16x36xf32, #tpu.memory_space<vmem>>, vector<18x16x12xf32>
    tpu.vector_store %arg11[%c0_34, %c0_35, %c12], %18 {strides = array<i32>} : memref<18x16x36xf32, #tpu.memory_space<vmem>>, vector<18x16x12xf32>,
    %c0_36 = arith.constant 0 : index
    %c2 = arith.constant 2 : index
    %c0_37 = arith.constant 0 : index
    %20 = vector.load %arg10[%c0_36, %c2, %c0_37] : memref<18x18x12xf32, #tpu.memory_space<vmem>>, vector<18x16x12xf32>
    %c0_38 = arith.constant 0 : index
    %c0_39 = arith.constant 0 : index
    %c24 = arith.constant 24 : index
    %21 = vector.load %arg11[%c0_38, %c0_39, %c24] : memref<18x16x36xf32, #tpu.memory_space<vmem>>, vector<18x16x12xf32>
    tpu.vector_store %arg11[%c0_38, %c0_39, %c24], %20 {strides = array<i32>} : memref<18x16x36xf32, #tpu.memory_space<vmem>>, vector<18x16x12xf32>,
    %c0_40 = arith.constant 0 : index
    %c0_41 = arith.constant 0 : index
    %c0_42 = arith.constant 0 : index
    %22 = vector.load %arg11[%c0_40, %c0_41, %c0_42] : memref<18x16x36xf32, #tpu.memory_space<vmem>>, vector<16x16x36xf32>
    %c0_43 = arith.constant 0 : index
    %c0_44 = arith.constant 0 : index
    %c0_45 = arith.constant 0 : index
    %23 = vector.load %arg12[%c0_43, %c0_44, %c0_45] : memref<16x16x108xf32, #tpu.memory_space<vmem>>, vector<16x16x36xf32>
    tpu.vector_store %arg12[%c0_43, %c0_44, %c0_45], %22 {strides = array<i32>} : memref<16x16x108xf32, #tpu.memory_space<vmem>>, vector<16x16x36xf32>,
    %c1_46 = arith.constant 1 : index
    %c0_47 = arith.constant 0 : index
    %c0_48 = arith.constant 0 : index
    %24 = vector.load %arg11[%c1_46, %c0_47, %c0_48] : memref<18x16x36xf32, #tpu.memory_space<vmem>>, vector<16x16x36xf32>
    %c0_49 = arith.constant 0 : index
    %c0_50 = arith.constant 0 : index
    %c36 = arith.constant 36 : index
    %25 = vector.load %arg12[%c0_49, %c0_50, %c36] : memref<16x16x108xf32, #tpu.memory_space<vmem>>, vector<16x16x36xf32>
    tpu.vector_store %arg12[%c0_49, %c0_50, %c36], %24 {strides = array<i32>} : memref<16x16x108xf32, #tpu.memory_space<vmem>>, vector<16x16x36xf32>,
    %c2_51 = arith.constant 2 : index
    %c0_52 = arith.constant 0 : index
    %c0_53 = arith.constant 0 : index
    %26 = vector.load %arg11[%c2_51, %c0_52, %c0_53] : memref<18x16x36xf32, #tpu.memory_space<vmem>>, vector<16x16x36xf32>
    %c0_54 = arith.constant 0 : index
    %c0_55 = arith.constant 0 : index
    %c72 = arith.constant 72 : index
    %27 = vector.load %arg12[%c0_54, %c0_55, %c72] : memref<16x16x108xf32, #tpu.memory_space<vmem>>, vector<16x16x36xf32>
    tpu.vector_store %arg12[%c0_54, %c0_55, %c72], %26 {strides = array<i32>} : memref<16x16x108xf32, #tpu.memory_space<vmem>>, vector<16x16x36xf32>,
    %c0_56 = arith.constant 0 : index
    %c0_57 = arith.constant 0 : index
    %c0_58 = arith.constant 0 : index
    %28 = vector.load %arg12[%c0_56, %c0_57, %c0_58] : memref<16x16x108xf32, #tpu.memory_space<vmem>>, vector<16x16x108xf32>
    %c0_59 = arith.constant 0 : index
    %c0_60 = arith.constant 0 : index
    %29 = vector.load %arg3[%c0_59, %c0_60] : memref<108x8xf32, #tpu.memory_space<vmem>>, vector<108x8xf32>
    %cst_61 = arith.constant dense<0.000000e+00> : vector<16x16x8xf32>
    %30 = tpu.matmul %28, %29, %cst_61 {dimension_numbers = #tpu.dot_dimension_numbers<[2], [0], [0, 1], [1], [0, 0, 0, 1, 1, 1], [], []>} : vector<16x16x108xf32>, vector<108x8xf32>, vector<16x16x8xf32> -> vector<16x16x8xf32>
    %c0_62 = arith.constant 0 : index
    %c0_63 = arith.constant 0 : index
    %31 = vector.load %arg4[%c0_62, %c0_63] : memref<1x8xf32, #tpu.memory_space<vmem>>, vector<1x8xf32>
    %32 = vector.shape_cast %31 : vector<1x8xf32> to vector<8xf32>
    %33 = vector.shape_cast %32 : vector<8xf32> to vector<1x1x8xf32>
    %34 = vector.broadcast %33 : vector<1x1x8xf32> to vector<16x16x8xf32>
    %35 = arith.mulf %30, %34 : vector<16x16x8xf32>
    %c0_64 = arith.constant 0 : index
    %c0_65 = arith.constant 0 : index
    %36 = vector.load %arg5[%c0_64, %c0_65] : memref<1x8xf32, #tpu.memory_space<vmem>>, vector<1x8xf32>
    %37 = vector.shape_cast %36 : vector<1x8xf32> to vector<8xf32>
    %38 = vector.shape_cast %37 : vector<8xf32> to vector<1x1x8xf32>
    %39 = vector.broadcast %38 : vector<1x1x8xf32> to vector<16x16x8xf32>
    %40 = arith.addf %35, %39 : vector<16x16x8xf32>
    %cst_66 = arith.constant 0.000000e+00 : f32
    %41 = vector.broadcast %cst_66 : f32 to vector<16x16x8xf32>
    %42 = arith.maximumf %40, %41 : vector<16x16x8xf32>
    %cst_67 = arith.constant 0.000000e+00 : f32
    %43 = vector.broadcast %cst_67 : f32 to vector<1x18x8xf32>
    %c0_68 = arith.constant 0 : index
    %c0_69 = arith.constant 0 : index
    %c0_70 = arith.constant 0 : index
    %44 = vector.load %arg13[%c0_68, %c0_69, %c0_70] : memref<18x18x8xf32, #tpu.memory_space<vmem>>, vector<1x18x8xf32>
    tpu.vector_store %arg13[%c0_68, %c0_69, %c0_70], %43 {strides = array<i32>} : memref<18x18x8xf32, #tpu.memory_space<vmem>>, vector<1x18x8xf32>,
    %cst_71 = arith.constant 0.000000e+00 : f32
    %45 = vector.broadcast %cst_71 : f32 to vector<1x18x8xf32>
    %c17_72 = arith.constant 17 : index
    %c0_73 = arith.constant 0 : index
    %c0_74 = arith.constant 0 : index
    %46 = vector.load %arg13[%c17_72, %c0_73, %c0_74] : memref<18x18x8xf32, #tpu.memory_space<vmem>>, vector<1x18x8xf32>
    tpu.vector_store %arg13[%c17_72, %c0_73, %c0_74], %45 {strides = array<i32>} : memref<18x18x8xf32, #tpu.memory_space<vmem>>, vector<1x18x8xf32>,
    %cst_75 = arith.constant 0.000000e+00 : f32
    %47 = vector.broadcast %cst_75 : f32 to vector<18x1x8xf32>
    %c0_76 = arith.constant 0 : index
    %c0_77 = arith.constant 0 : index
    %c0_78 = arith.constant 0 : index
    %48 = vector.load %arg13[%c0_76, %c0_77, %c0_78] : memref<18x18x8xf32, #tpu.memory_space<vmem>>, vector<18x1x8xf32>
    tpu.vector_store %arg13[%c0_76, %c0_77, %c0_78], %47 {strides = array<i32>} : memref<18x18x8xf32, #tpu.memory_space<vmem>>, vector<18x1x8xf32>,
    %cst_79 = arith.constant 0.000000e+00 : f32
    %49 = vector.broadcast %cst_79 : f32 to vector<18x1x8xf32>
    %c0_80 = arith.constant 0 : index
    %c17_81 = arith.constant 17 : index
    %c0_82 = arith.constant 0 : index
    %50 = vector.load %arg13[%c0_80, %c17_81, %c0_82] : memref<18x18x8xf32, #tpu.memory_space<vmem>>, vector<18x1x8xf32>
    tpu.vector_store %arg13[%c0_80, %c17_81, %c0_82], %49 {strides = array<i32>} : memref<18x18x8xf32, #tpu.memory_space<vmem>>, vector<18x1x8xf32>,
    %c1_83 = arith.constant 1 : index
    %c1_84 = arith.constant 1 : index
    %c0_85 = arith.constant 0 : index
    %51 = vector.load %arg13[%c1_83, %c1_84, %c0_85] : memref<18x18x8xf32, #tpu.memory_space<vmem>>, vector<16x16x8xf32>
    tpu.vector_store %arg13[%c1_83, %c1_84, %c0_85], %42 {strides = array<i32>} : memref<18x18x8xf32, #tpu.memory_space<vmem>>, vector<16x16x8xf32>,
    %c0_86 = arith.constant 0 : index
    %c0_87 = arith.constant 0 : index
    %c0_88 = arith.constant 0 : index
    %52 = vector.load %arg13[%c0_86, %c0_87, %c0_88] : memref<18x18x8xf32, #tpu.memory_space<vmem>>, vector<18x16x8xf32>
    %c0_89 = arith.constant 0 : index
    %c0_90 = arith.constant 0 : index
    %c0_91 = arith.constant 0 : index
    %53 = vector.load %arg14[%c0_89, %c0_90, %c0_91] : memref<18x16x24xf32, #tpu.memory_space<vmem>>, vector<18x16x8xf32>
    tpu.vector_store %arg14[%c0_89, %c0_90, %c0_91], %52 {strides = array<i32>} : memref<18x16x24xf32, #tpu.memory_space<vmem>>, vector<18x16x8xf32>,
    %c0_92 = arith.constant 0 : index
    %c1_93 = arith.constant 1 : index
    %c0_94 = arith.constant 0 : index
    %54 = vector.load %arg13[%c0_92, %c1_93, %c0_94] : memref<18x18x8xf32, #tpu.memory_space<vmem>>, vector<18x16x8xf32>
    %c0_95 = arith.constant 0 : index
    %c0_96 = arith.constant 0 : index
    %c8_97 = arith.constant 8 : index
    %55 = vector.load %arg14[%c0_95, %c0_96, %c8_97] : memref<18x16x24xf32, #tpu.memory_space<vmem>>, vector<18x16x8xf32>
    tpu.vector_store %arg14[%c0_95, %c0_96, %c8_97], %54 {strides = array<i32>} : memref<18x16x24xf32, #tpu.memory_space<vmem>>, vector<18x16x8xf32>,
    %c0_98 = arith.constant 0 : index
    %c2_99 = arith.constant 2 : index
    %c0_100 = arith.constant 0 : index
    %56 = vector.load %arg13[%c0_98, %c2_99, %c0_100] : memref<18x18x8xf32, #tpu.memory_space<vmem>>, vector<18x16x8xf32>
    %c0_101 = arith.constant 0 : index
    %c0_102 = arith.constant 0 : index
    %c16 = arith.constant 16 : index
    %57 = vector.load %arg14[%c0_101, %c0_102, %c16] : memref<18x16x24xf32, #tpu.memory_space<vmem>>, vector<18x16x8xf32>
    tpu.vector_store %arg14[%c0_101, %c0_102, %c16], %56 {strides = array<i32>} : memref<18x16x24xf32, #tpu.memory_space<vmem>>, vector<18x16x8xf32>,
    %c0_103 = arith.constant 0 : index
    %c0_104 = arith.constant 0 : index
    %c0_105 = arith.constant 0 : index
    %58 = vector.load %arg14[%c0_103, %c0_104, %c0_105] : memref<18x16x24xf32, #tpu.memory_space<vmem>>, vector<16x16x24xf32>
    %c0_106 = arith.constant 0 : index
    %c0_107 = arith.constant 0 : index
    %c0_108 = arith.constant 0 : index
    %59 = vector.load %arg15[%c0_106, %c0_107, %c0_108] : memref<16x16x72xf32, #tpu.memory_space<vmem>>, vector<16x16x24xf32>
    tpu.vector_store %arg15[%c0_106, %c0_107, %c0_108], %58 {strides = array<i32>} : memref<16x16x72xf32, #tpu.memory_space<vmem>>, vector<16x16x24xf32>,
    %c1_109 = arith.constant 1 : index
    %c0_110 = arith.constant 0 : index
    %c0_111 = arith.constant 0 : index
    %60 = vector.load %arg14[%c1_109, %c0_110, %c0_111] : memref<18x16x24xf32, #tpu.memory_space<vmem>>, vector<16x16x24xf32>
    %c0_112 = arith.constant 0 : index
    %c0_113 = arith.constant 0 : index
    %c24_114 = arith.constant 24 : index
    %61 = vector.load %arg15[%c0_112, %c0_113, %c24_114] : memref<16x16x72xf32, #tpu.memory_space<vmem>>, vector<16x16x24xf32>
    tpu.vector_store %arg15[%c0_112, %c0_113, %c24_114], %60 {strides = array<i32>} : memref<16x16x72xf32, #tpu.memory_space<vmem>>, vector<16x16x24xf32>,
    %c2_115 = arith.constant 2 : index
    %c0_116 = arith.constant 0 : index
    %c0_117 = arith.constant 0 : index
    %62 = vector.load %arg14[%c2_115, %c0_116, %c0_117] : memref<18x16x24xf32, #tpu.memory_space<vmem>>, vector<16x16x24xf32>
    %c0_118 = arith.constant 0 : index
    %c0_119 = arith.constant 0 : index
    %c48 = arith.constant 48 : index
    %63 = vector.load %arg15[%c0_118, %c0_119, %c48] : memref<16x16x72xf32, #tpu.memory_space<vmem>>, vector<16x16x24xf32>
    tpu.vector_store %arg15[%c0_118, %c0_119, %c48], %62 {strides = array<i32>} : memref<16x16x72xf32, #tpu.memory_space<vmem>>, vector<16x16x24xf32>,
    %c0_120 = arith.constant 0 : index
    %c0_121 = arith.constant 0 : index
    %c0_122 = arith.constant 0 : index
    %64 = vector.load %arg15[%c0_120, %c0_121, %c0_122] : memref<16x16x72xf32, #tpu.memory_space<vmem>>, vector<16x16x72xf32>
    %c0_123 = arith.constant 0 : index
    %c0_124 = arith.constant 0 : index
    %65 = vector.load %arg6[%c0_123, %c0_124] : memref<72x8xf32, #tpu.memory_space<vmem>>, vector<72x8xf32>
    %cst_125 = arith.constant dense<0.000000e+00> : vector<16x16x8xf32>
    %66 = tpu.matmul %64, %65, %cst_125 {dimension_numbers = #tpu.dot_dimension_numbers<[2], [0], [0, 1], [1], [0, 0, 0, 1, 1, 1], [], []>} : vector<16x16x72xf32>, vector<72x8xf32>, vector<16x16x8xf32> -> vector<16x16x8xf32>
    %c0_126 = arith.constant 0 : index
    %c0_127 = arith.constant 0 : index
    %67 = vector.load %arg7[%c0_126, %c0_127] : memref<1x8xf32, #tpu.memory_space<vmem>>, vector<1x8xf32>
    %68 = vector.shape_cast %67 : vector<1x8xf32> to vector<8xf32>
    %69 = vector.shape_cast %68 : vector<8xf32> to vector<1x1x8xf32>
    %70 = vector.broadcast %69 : vector<1x1x8xf32> to vector<16x16x8xf32>
    %71 = arith.mulf %66, %70 : vector<16x16x8xf32>
    %c0_128 = arith.constant 0 : index
    %c0_129 = arith.constant 0 : index
    %72 = vector.load %arg8[%c0_128, %c0_129] : memref<1x8xf32, #tpu.memory_space<vmem>>, vector<1x8xf32>
    %73 = vector.shape_cast %72 : vector<1x8xf32> to vector<8xf32>
    %74 = vector.shape_cast %73 : vector<8xf32> to vector<1x1x8xf32>
    %75 = vector.broadcast %74 : vector<1x1x8xf32> to vector<16x16x8xf32>
    %76 = arith.addf %71, %75 : vector<16x16x8xf32>
    %cst_130 = arith.constant 0.000000e+00 : f32
    %77 = vector.broadcast %cst_130 : f32 to vector<16x16x8xf32>
    %78 = arith.maximumf %76, %77 : vector<16x16x8xf32>
    %c0_131 = arith.constant 0 : index
    %c0_132 = arith.constant 0 : index
    %c0_133 = arith.constant 0 : index
    %c0_134 = arith.constant 0 : index
    %79 = vector.load %arg9[%c0_131, %c0_132, %c0_133, %c0_134] : memref<1x16x16x8xf32, #tpu.memory_space<vmem>>, vector<1x16x16x8xf32>
    %80 = vector.shape_cast %79 : vector<1x16x16x8xf32> to vector<16x16x8xf32>
    %81 = vector.shape_cast %78 : vector<16x16x8xf32> to vector<1x16x16x8xf32>
    tpu.vector_store %arg9[%c0_131, %c0_132, %c0_133, %c0_134], %81 {strides = array<i32>} : memref<1x16x16x8xf32, #tpu.memory_space<vmem>>, vector<1x16x16x8xf32>,
    return
  }
  func.func @transform_0(%arg0: i32) -> (i32, i32, i32, i32) {
    %c0_i32 = arith.constant 0 : i32
    %c0_i32_0 = arith.constant 0 : i32
    %c0_i32_1 = arith.constant 0 : i32
    %c0_i32_2 = arith.constant 0 : i32
    return %arg0, %c0_i32, %c0_i32_0, %c0_i32_1 : i32, i32, i32, i32
  }
  func.func @transform_1(%arg0: i32) -> (i32, i32, i32, i32) {
    %c0_i32 = arith.constant 0 : i32
    %c0_i32_0 = arith.constant 0 : i32
    %c0_i32_1 = arith.constant 0 : i32
    %c0_i32_2 = arith.constant 0 : i32
    return %arg0, %c0_i32, %c0_i32_0, %c0_i32_1 : i32, i32, i32, i32
  }
  func.func @transform_2(%arg0: i32) -> (i32, i32) {
    %c0_i32 = arith.constant 0 : i32
    %c0_i32_0 = arith.constant 0 : i32
    %c0_i32_1 = arith.constant 0 : i32
    return %c0_i32, %c0_i32_0 : i32, i32
  }
  func.func @transform_3(%arg0: i32) -> (i32, i32) {
    %c0_i32 = arith.constant 0 : i32
    %c0_i32_0 = arith.constant 0 : i32
    %c0_i32_1 = arith.constant 0 : i32
    return %c0_i32, %c0_i32_0 : i32, i32
  }
  func.func @transform_4(%arg0: i32) -> (i32, i32) {
    %c0_i32 = arith.constant 0 : i32
    %c0_i32_0 = arith.constant 0 : i32
    %c0_i32_1 = arith.constant 0 : i32
    return %c0_i32, %c0_i32_0 : i32, i32
  }
  func.func @transform_5(%arg0: i32) -> (i32, i32) {
    %c0_i32 = arith.constant 0 : i32
    %c0_i32_0 = arith.constant 0 : i32
    %c0_i32_1 = arith.constant 0 : i32
    return %c0_i32, %c0_i32_0 : i32, i32
  }
  func.func @transform_6(%arg0: i32) -> (i32, i32) {
    %c0_i32 = arith.constant 0 : i32
    %c0_i32_0 = arith.constant 0 : i32
    %c0_i32_1 = arith.constant 0 : i32
    return %c0_i32, %c0_i32_0 : i32, i32
  }
  func.func @transform_7(%arg0: i32) -> (i32, i32) {
    %c0_i32 = arith.constant 0 : i32
    %c0_i32_0 = arith.constant 0 : i32
    %c0_i32_1 = arith.constant 0 : i32
    return %c0_i32, %c0_i32_0 : i32, i32
  }
  func.func @transform_8(%arg0: i32) -> (i32, i32, i32, i32) {
    %c0_i32 = arith.constant 0 : i32
    %c0_i32_0 = arith.constant 0 : i32
    %c0_i32_1 = arith.constant 0 : i32
    %c0_i32_2 = arith.constant 0 : i32
    return %arg0, %c0_i32, %c0_i32_0, %c0_i32_1 : i32, i32, i32, i32
  }
}

</mosaic_0001>

<bundles_post_ra>
// kernel: tpu_custom_call.1
= control target key start
LH: loop header
LB: loop body
LE: loop exit
PB: predicated region body
PF: predicated region fallthrough
CT: control target
= control target key end

     0   :  { %s6743_s0 = inlined_call_operand.hbm [shape: bf16[2,16,16,8], index: 0, kind: input, shape index: {}]   ;;  %s6744_s1 = inlined_call_operand.hbm [shape: bf16[2,16,16,4], index: 1, kind: input, shape index: {}]   ;;  %s6745_s2 = inlined_call_operand.hbm [shape: f32[108,8], index: 2, kind: input, shape index: {}]   ;;  %s6746_s3 = inlined_call_operand.hbm [shape: f32[1,8], index: 3, kind: input, shape index: {}]   ;;  %s6747_s4 = inlined_call_operand.hbm [shape: f32[1,8], index: 4, kind: input, shape index: {}]   ;;  %s6748_s5 = inlined_call_operand.hbm [shape: f32[72,8], index: 5, kind: input, shape index: {}]   ;;  %s6749_s6 = inlined_call_operand.hbm [shape: f32[1,8], index: 6, kind: input, shape index: {}]   ;;  %s6750_s7 = inlined_call_operand.hbm [shape: f32[1,8], index: 7, kind: input, shape index: {}]   ;;  %s6751_s8 = inlined_call_operand.hbm [shape: f32[2,16,16,8], index: 8, kind: output, shape index: {}]  }
   0x1   :  { %6756 = sst [smem:[#allocation30_spill]] %s6743_s0 }
   0x2   :  { %6757 = sst [smem:[#allocation31_spill]] %s6745_s2 }
   0x3   :  { %6758 = sst [smem:[#allocation32_spill]] %s6746_s3 }
   0x4   :  { %6759 = sst [smem:[#allocation33_spill]] %s6747_s4 }
   0x5   :  { %6760 = sst [smem:[#allocation34_spill]] %s6748_s5 }
   0x6   :  { %13 = vsyncpa [#allocation9], 0 }
   0x7   :  { %15 = vsyncpa [#allocation9 + $0x1], 0 }
   0x8   :  { %16 = vsyncpa [#allocation12], 0 }
   0x9   :  { %18 = vsyncpa [#allocation12 + $0x1], 0 }
   0xa   :  { %19 = vsyncpa [#allocation15], 0 }
   0xb   :  { %20 = vsyncpa [#allocation18], 0 }
   0xc   :  { %21 = vsyncpa [#allocation21], 0 }
   0xd   :  { %22 = vsyncpa [#allocation10], 0 }
   0xe   :  { %24 = vsyncpa [#allocation10 + $0x1], 0  ;;  %s5087_s27 = smov 0   ;;  %s5089_s28 = smov 0  }
   0xf   :  { %s5091_s29 = smov 0   ;;  %s5093_s30 = smov 0  }
  0x10 LB: > { %s5019_s9 = smov [#allocation13]   ;;  %s5108_s11 = sadd.s32 4294967295, %s5017_s30   ;;  %s5017_s30 = sphi %s5093_s30, %s6791_s30   ;;  %s5013_s29 = sphi %s5091_s29, %s6790_s29   ;;  %s5009_s28 = sphi %s5089_s28, %s6789_s28   ;;  %s5005_s27 = sphi %s5087_s27, %s6788_s27  }
  0x11   : > { %s251_s10 = sshll.u32 %s5019_s9, 4  ;;  %p3963_p0 = scmp.ge.s32.totalorder %s5017_s30, 1  ;;  %s5113_s10 = int_to_ptr.vmem [resolvable:$true] %s251_s10 }
  0x12   : > { %p6752_p1 = scmp.eq.s32.totalorder %s5108_s11, 0  ;;  %p239_p2 = scmp.lt.s32.totalorder %s5017_s30, 3 }
  0x13   : > { %s5020_s13 = smov [#allocation14]   ;;  %s5021_s16 = smov [#allocation17]  }
  0x14   : > { %p5115_p3 = pnand %p3963_p0, %p239_p2  ;;  %s265_s14 = sshll.u32 %s5020_s13, 4  ;;  %s5128_s14 = int_to_ptr.vmem [resolvable:$true] %s265_s14 }
  0x15   : > { %s286_s17 = sshll.u32 %s5021_s16, 4  ;;  %s6763_s2 = sld [smem:[#allocation31_spill]]  ;;  %s5130_s17 = int_to_ptr.vmem [resolvable:$true] %s286_s17 }
  0x16   : > { %s6761_s12 = scalar_select %p5115_p3, 1, 0 }
  0x17   : > { %p4527_p5 = pneg %p5115_p3 }
  0x19   : > { %p5124_p6 = pnand %p4527_p5, %p6752_p1 }
  0x1b   : > { %s4703_s20 = scalar_lea.hbm %s6763_s2, 1792  ;;  %p5140_p8 = pneg %p5124_p6 }
  0x1c   : > { %p4704_p7 = scmp.ne.s32.totalorder %s6763_s2, %s4703_s20  ;;  %p4710_p11 = scmp.lt.u32.totalorder %s4703_s20, %s6763_s2 }
  0x1e   : > { %p4706_p9 = pnand %p5140_p8, %p4704_p7 }
  0x20   : > { %p4707_p10 = pneg %p4706_p9 }
  0x22   : > { %p4712_p12 = pnand %p4710_p11, %p4707_p10 }
  0x24   : > { %4715 = shalt.err (!%p4712_p12)
}
  0x25   : > { %s4716_s26 = scalar_lea.vmem %s5113_s10, 1792  ;;  %p4724_p5 = scmp.lt.s32.totalorder %s5113_s10, %s5113_s10 }
  0x26   : > { %p4717_p13 = scmp.ne.s32.totalorder %s5113_s10, %s4716_s26  ;;  %p4725_p4 = scmp.lt.s32.totalorder %s4716_s26, %s4716_s26 }
  0x28   : > { %p4719_p0 = pnand %p4717_p13, %p5140_p8  ;;  %p4726_p7 = por %p4725_p4, %p4724_p5 }
  0x2a   : > { %p4720_p2 = pneg %p4719_p0 }
  0x2c   : > { %p4727_p9 = pnand %p4726_p7, %p4720_p2 }
  0x2e   : > { %4730 = shalt.err (!%p4727_p9)
}
  0x2f   : > { %s5022_s9 = smov 128   ;;  %s5023_s13 = smov 8  }
  0x30   : > { %4530 = dma.hbm_to_vmem [thread:$0]  (!%p5124_p6), %s6763_s2, 1792, %s5113_s10, [#allocation12], %s5022_s9, %s5022_s9, %s5023_s13  }
  0x31   : > { %s6765_s3 = sld [smem:[#allocation32_spill]] }
  0x37   : > { %s4731_s21 = scalar_lea.hbm %s6765_s3, 16 }
  0x38   : > { %p4732_p4 = scmp.ne.s32.totalorder %s6765_s3, %s4731_s21  ;;  %p4738_p12 = scmp.lt.u32.totalorder %s4731_s21, %s6765_s3 }
  0x3a   : > { %p4734_p10 = pnand %p4732_p4, %p5140_p8 }
  0x3c   : > { %p4735_p11 = pneg %p4734_p10 }
  0x3e   : > { %p4740_p13 = pnand %p4738_p12, %p4735_p11 }
  0x40   : > { %4743 = shalt.err (!%p4740_p13)
}
  0x41   : > { %s4744_s10 = scalar_lea.vmem %s5128_s14, 16  ;;  %s4751_s16 = scalar_lea.vmem %s5128_s14, 32 }
  0x42   : > { %p4745_p0 = scmp.ne.s32.totalorder %s5128_s14, %s4744_s10  ;;  %p4752_p7 = scmp.lt.s32.totalorder %s5128_s14, %s5128_s14 }
  0x43   : > { %p4753_p9 = scmp.lt.s32.totalorder %s4751_s16, %s4744_s10 }
  0x44   : > { %p4747_p2 = pnand %p4745_p0, %p5140_p8 }
  0x45   : > { %p4754_p4 = por %p4753_p9, %p4752_p7 }
  0x46   : > { %p4748_p5 = pneg %p4747_p2 }
  0x48   : > { %p4755_p10 = pnand %p4754_p4, %p4748_p5 }
  0x4a   : > { %4758 = shalt.err (!%p4755_p10)
}
  0x4b   : > { %4533 = dma.hbm_to_vmem [thread:$0]  (!%p5124_p6), %s6765_s3, 16, %s5128_s14, [#allocation15]  }
  0x4c   : > { %s6766_s5 = sld [smem:[#allocation34_spill]] }
  0x52   : > { %s4759_s22 = scalar_lea.hbm %s6766_s5, 1152 }
  0x53   : > { %p4760_p11 = scmp.ne.s32.totalorder %s6766_s5, %s4759_s22  ;;  %p4766_p0 = scmp.lt.u32.totalorder %s4759_s22, %s6766_s5 }
  0x55   : > { %p4762_p12 = pnand %p4760_p11, %p5140_p8 }
  0x57   : > { %p4763_p13 = pneg %p4762_p12 }
  0x59   : > { %p4768_p2 = pnand %p4766_p0, %p4763_p13 }
  0x5b   : > { %4771 = shalt.err (!%p4768_p2)
}
  0x5c   : > { %s4772_s14 = scalar_lea.vmem %s5130_s17, 1152  ;;  %p4780_p4 = scmp.lt.s32.totalorder %s5130_s17, %s5130_s17 }
  0x5d   : > { %p4773_p5 = scmp.ne.s32.totalorder %s5130_s17, %s4772_s14  ;;  %p4781_p10 = scmp.lt.s32.totalorder %s4772_s14, %s4772_s14 }
  0x5f   : > { %p4775_p7 = pnand %p4773_p5, %p5140_p8  ;;  %p4782_p11 = por %p4781_p10, %p4780_p4 }
  0x61   : > { %p4776_p9 = pneg %p4775_p7 }
  0x63   : > { %p4783_p12 = pnand %p4782_p11, %p4776_p9 }
  0x65   : > { %4786 = shalt.err (!%p4783_p12)
}
  0x66   : > { %4539 = dma.hbm_to_vmem [thread:$0]  (!%p5124_p6), %s6766_s5, 1152, %s5130_s17, [#allocation18], %s5022_s9, %s5022_s9, %s5023_s13  }
  0x67   : > { %s5024_s19 = smov [#allocation16]   ;;  %s5025_s21 = smov [#allocation19]  }
  0x68   : > { %s276_s20 = sshll.u32 %s5024_s19, 4  ;;  %s300_s22 = sshll.u32 %s5025_s21, 4  ;;  %s277_s20 = int_to_ptr.vmem [resolvable:$true] %s276_s20  ;;  %s301_s22 = int_to_ptr.vmem [resolvable:$true] %s300_s22 }
  0x69   : > { %s6767_s4 = sld [smem:[#allocation33_spill]] }
  0x6f   : > { %s4787_s26 = scalar_lea.hbm %s6767_s4, 16 }
  0x70   : > { %p4788_p13 = scmp.ne.s32.totalorder %s6767_s4, %s4787_s26  ;;  %p4794_p5 = scmp.lt.u32.totalorder %s4787_s26, %s6767_s4 }
  0x72   : > { %p4790_p0 = pnand %p4788_p13, %p5140_p8 }
  0x74   : > { %p4791_p2 = pneg %p4790_p0 }
  0x76   : > { %p4796_p7 = pnand %p4794_p5, %p4791_p2 }
  0x78   : > { %4799 = shalt.err (!%p4796_p7)
}
  0x79   : > { %s4800_s17 = scalar_lea.vmem %s277_s20, 16  ;;  %s4807_s9 = scalar_lea.vmem %s277_s20, 32 }
  0x7a   : > { %p4801_p9 = scmp.ne.s32.totalorder %s277_s20, %s4800_s17  ;;  %p4808_p11 = scmp.lt.s32.totalorder %s277_s20, %s277_s20 }
  0x7b   : > { %p4809_p12 = scmp.lt.s32.totalorder %s4807_s9, %s4800_s17 }
  0x7c   : > { %p4803_p4 = pnand %p4801_p9, %p5140_p8 }
  0x7d   : > { %p4810_p1 = por %p4809_p12, %p4808_p11 }
  0x7e   : > { %p4804_p10 = pneg %p4803_p4 }
  0x80   : > { %p4811_p3 = pnand %p4810_p1, %p4804_p10 }
  0x82   : > { %4814 = shalt.err (!%p4811_p3)
}
  0x83   : > { %4536 = dma.hbm_to_vmem [thread:$0]  (!%p5124_p6), %s6767_s4, 16, %s277_s20, [#allocation15]  }
  0x84   : > { %s4815_s21 = scalar_lea.hbm %s6749_s6, 16 }
  0x85   : > { %p4816_p13 = scmp.ne.s32.totalorder %s6749_s6, %s4815_s21  ;;  %p4822_p3 = scmp.lt.u32.totalorder %s4815_s21, %s6749_s6 }
  0x87   : > { %p4818_p0 = pnand %p4816_p13, %p5140_p8 }
  0x89   : > { %p4819_p1 = pneg %p4818_p0 }
  0x8b   : > { %p4824_p2 = pnand %p4822_p3, %p4819_p1 }
  0x8d   : > { %4827 = shalt.err (!%p4824_p2)
}
  0x8e   : > { %s4828_s14 = scalar_lea.vmem %s301_s22, 16  ;;  %s4835_s20 = scalar_lea.vmem %s301_s22, 32 }
  0x8f   : > { %p4829_p5 = scmp.ne.s32.totalorder %s301_s22, %s4828_s14  ;;  %p4836_p4 = scmp.lt.s32.totalorder %s301_s22, %s301_s22 }
  0x90   : > { %p4837_p10 = scmp.lt.s32.totalorder %s4835_s20, %s4828_s14 }
  0x91   : > { %p4831_p7 = pnand %p4829_p5, %p5140_p8 }
  0x92   : > { %p4838_p11 = por %p4837_p10, %p4836_p4 }
  0x93   : > { %p4832_p9 = pneg %p4831_p7 }
  0x95   : > { %p4839_p12 = pnand %p4838_p11, %p4832_p9 }
  0x97   : > { %4842 = shalt.err (!%p4839_p12)
}
  0x98   : > { %4542 = dma.hbm_to_vmem [thread:$0]  (!%p5124_p6), %s6749_s6, 16, %s301_s22, [#allocation18]  }
  0x99   : > { %s5026_s9 = smov [#allocation20]   ;;  %s4843_s19 = scalar_lea.hbm %s6750_s7, 16 }
  0x9a   : > { %s311_s13 = sshll.u32 %s5026_s9, 4  ;;  %p4844_p13 = scmp.ne.s32.totalorder %s6750_s7, %s4843_s19  ;;  %s312_s13 = int_to_ptr.vmem [resolvable:$true] %s311_s13 }
  0x9b   : > { %p4850_p3 = scmp.lt.u32.totalorder %s4843_s19, %s6750_s7 }
  0x9c   : > { %p4846_p0 = pnand %p4844_p13, %p5140_p8 }
  0x9e   : > { %p4847_p1 = pneg %p4846_p0 }
  0xa0   : > { %p4852_p2 = pnand %p4850_p3, %p4847_p1 }
  0xa2   : > { %4855 = shalt.err (!%p4852_p2)
}
  0xa3   : > { %s4856_s22 = scalar_lea.vmem %s312_s13, 16  ;;  %s4863_s10 = scalar_lea.vmem %s312_s13, 32 }
  0xa4   : > { %p4857_p5 = scmp.ne.s32.totalorder %s312_s13, %s4856_s22  ;;  %p4864_p4 = scmp.lt.s32.totalorder %s312_s13, %s312_s13 }
  0xa5   : > { %p4865_p10 = scmp.lt.s32.totalorder %s4863_s10, %s4856_s22 }
  0xa6   : > { %p4859_p7 = pnand %p4857_p5, %p5140_p8 }
  0xa7   : > { %p4866_p11 = por %p4865_p10, %p4864_p4 }
  0xa8   : > { %p4860_p9 = pneg %p4859_p7 }
  0xaa   : > { %p4867_p12 = pnand %p4866_p11, %p4860_p9 }
  0xac   : > { %4870 = shalt.err (!%p4867_p12)
}
  0xad   : > { %4545 = dma.hbm_to_vmem [thread:$0]  (!%p5124_p6), %s6750_s7, 16, %s312_s13, [#allocation21]  }
  0xae   : > { %s3962_s23 = sadd.s32 4294967294, %s5017_s30   ;;  %s5270_s15 = sadd.s32 1, %s5017_s30  }
  0xaf   : > { %s34_s16 = ssub.s32 %s5017_s30, %s5270_s15  ;;  %s37_s17 = sadd.s32 1, %s5013_s29 }
  0xb0   : > { %p35_p8 = scmp.eq.s32.totalorder %s34_s16, 0  ;;  %p44_p13 = scmp.ne.s32.totalorder %s5013_s29, %s5009_s28 }
  0xb1   : > { %p45_p0 = scmp.eq.s32.totalorder %s5017_s30, 0  ;;  %p50_p1 = scmp.ne.s32.totalorder %s5009_s28, %s5005_s27 }
  0xb2   : > { %s5281_s9 = scalar_select %p35_p8, %s5013_s29, %s37_s17  }
  0xb3   : > { %p5283_p3 = por %p45_p0, %p44_p13  ;;  %p6769_p2 = scmp.eq.s32.totalorder %s5108_s11, 0 }
  0xb4   : > { %p226_p5 = scmp.eq.s32.totalorder %s5108_s11, 1  ;;  %p232_p7 = scmp.eq.s32.totalorder %s3962_s23, 1 }
  0xb5   : > { %p5289_p6 = por %p6769_p2, %p50_p1  ;;  %p4563_p9 = scmp.lt.s32.totalorder %s5017_s30, 2 }
  0xb6   : > { %s322_s2 = sand.u32 1, %s5013_s29   ;;  %p5296_p4 = por %p226_p5, %p44_p13 }
  0xb7   : > { %p5300_p10 = por %p232_p7, %p50_p1  ;;  %s5304_s24 = sshll.u32 %s322_s2, 7 }
  0xb8   : > { %s6771_s19 = scalar_select %p5296_p4, 1, 0 }
  0xb9   : > { %s6772_s21 = scalar_select %p5300_p10, 1, 0 }
  0xba   : > { %s6754_s25 = sshll.u32 %s5017_s30, 11  ;;  %s6773_s0 = sld [smem:[#allocation30_spill]] }
  0xbb   : > { %s326_s14 = scalar_lea.vmem [#allocation8], %s5304_s24  ;;  %p5319_p11 = pnand %p4563_p9, %p5283_p3 }
  0xbc   : > { %s333_s20 = sshll.u32 %s326_s14, 4  ;;  %s5323_s16 = scalar_lea.sflag [#allocation9], %s322_s2  ;;  %s5315_s20 = int_to_ptr.vmem [resolvable:$true] %s333_s20 }
  0xbd   : > { %p4873_p8 = pneg %p5319_p11 }
  0xc0   : > { %s5312_s10 = scalar_lea.hbm %s6773_s0, %s6754_s25  ;;  %s4876_s18 = scalar_lea.hbm %s6773_s0, 4096 }
  0xc1   : > { %s4871_s17 = scalar_lea.hbm %s5312_s10, 2048  ;;  %p4877_p1 = scmp.lt.u32.totalorder %s5312_s10, %s6773_s0 }
  0xc2   : > { %p4872_p12 = scmp.ne.s32.totalorder %s5312_s10, %s4871_s17  ;;  %p4878_p3 = scmp.lt.u32.totalorder %s4876_s18, %s4871_s17 }
  0xc3   : > { %p4880_p5 = scmp.lt.u32.totalorder %s4871_s17, %s5312_s10 }
  0xc4   : > { %p4874_p13 = pnand %p4873_p8, %p4872_p12  ;;  %p4879_p2 = por %p4878_p3, %p4877_p1 }
  0xc6   : > { %p4875_p0 = pneg %p4874_p13  ;;  %p4881_p7 = por %p4880_p5, %p4879_p2 }
  0xc8   : > { %p4882_p9 = pnand %p4881_p7, %p4875_p0 }
  0xca   : > { %4885 = shalt.err (!%p4882_p9)
}
  0xcb   : > { %s4886_s2 = scalar_lea.vmem %s5315_s20, 2048  ;;  %s5027_s26 = smov [#allocation8]  }
  0xcc   : > { %p4887_p12 = scmp.ne.s32.totalorder %s5315_s20, %s4886_s2  ;;  %s4891_s22 = sshll.u32 %s5027_s26, 4  ;;  %s4892_s22 = int_to_ptr.vmem [resolvable:$false] %s4891_s22 }
  0xcd   : > { %s4893_s25 = scalar_lea.vmem %s4892_s22, 4096  ;;  %p4894_p4 = scmp.lt.s32.totalorder %s5315_s20, %s4892_s22 }
  0xce   : > { %p4889_p13 = pnand %p4887_p12, %p4873_p8  ;;  %p4895_p1 = scmp.lt.s32.totalorder %s4893_s25, %s4886_s2 }
  0xd0   : > { %p4890_p10 = pneg %p4889_p13  ;;  %p4896_p3 = por %p4895_p1, %p4894_p4 }
  0xd2   : > { %p4897_p2 = pnand %p4896_p3, %p4890_p10 }
  0xd4   : > { %4900 = shalt.err (!%p4897_p2)
}
  0xd5   : > { %s5028_s17 = smov 64   ;;  %s5029_s18 = smov 4  }
  0xd6   : > { %4549 = dma.hbm_to_vmem [thread:$0]  (!%p5319_p11), %s5312_s10, 2048, %s5315_s20, %s5323_s16, %s5028_s17, %s5028_s17, %s5029_s18  }
  0xd7   : > { %s6775_s14 = sshll.u32 %s5017_s30, 11  ;;  %s347_s25 = scalar_lea.vmem [#allocation11], %s5304_s24 }
  0xd8   : > { %s5359_s22 = scalar_lea.hbm %s6744_s1, %s6775_s14  ;;  %s354_s0 = sshll.u32 %s347_s25, 4  ;;  %s5362_s0 = int_to_ptr.vmem [resolvable:$true] %s354_s0 }
  0xd9   : > { %s343_s3 = sand.u32 1, %s5017_s30   ;;  %s4901_s5 = scalar_lea.hbm %s5359_s22, 2048 }
  0xda   : > { %s5365_s4 = scalar_lea.sflag [#allocation12], %s343_s3  ;;  %p4902_p4 = scmp.ne.s32.totalorder %s5359_s22, %s4901_s5 }
  0xdb   : > { %s4906_s16 = scalar_lea.hbm %s6744_s1, 4096  ;;  %p4907_p5 = scmp.lt.u32.totalorder %s5359_s22, %s6744_s1 }
  0xdc   : > { %p4904_p10 = pnand %p4902_p4, %p4873_p8  ;;  %p4908_p7 = scmp.lt.u32.totalorder %s4906_s16, %s4901_s5 }
  0xdd   : > { %p4910_p12 = scmp.lt.u32.totalorder %s4901_s5, %s5359_s22 }
  0xde   : > { %p4905_p0 = pneg %p4904_p10  ;;  %p4909_p9 = por %p4908_p7, %p4907_p5 }
  0xe0   : > { %p4911_p13 = por %p4910_p12, %p4909_p9 }
  0xe2   : > { %p4912_p1 = pnand %p4911_p13, %p4905_p0 }
  0xe4   : > { %4915 = shalt.err (!%p4912_p1)
}
  0xe5   : > { %s4916_s3 = scalar_lea.vmem %s5362_s0, 2048  ;;  %s5030_s24 = smov [#allocation11]  }
  0xe6   : > { %p4917_p3 = scmp.ne.s32.totalorder %s5362_s0, %s4916_s3  ;;  %s4921_s26 = sshll.u32 %s5030_s24, 4  ;;  %s4922_s26 = int_to_ptr.vmem [resolvable:$false] %s4921_s26 }
  0xe7   : > { %s4923_s25 = scalar_lea.vmem %s4922_s26, 4096  ;;  %p4924_p10 = scmp.lt.s32.totalorder %s5362_s0, %s4922_s26 }
  0xe8   : > { %p4919_p2 = pnand %p4917_p3, %p4873_p8  ;;  %p4925_p5 = scmp.lt.s32.totalorder %s4923_s25, %s4916_s3 }
  0xea   : > { %p4920_p4 = pneg %p4919_p2  ;;  %p4926_p7 = por %p4925_p5, %p4924_p10 }
  0xec   : > { %p4927_p9 = pnand %p4926_p7, %p4920_p4 }
  0xee   : > { %4930 = shalt.err (!%p4927_p9)
}
  0xef   : > { %4552 = dma.hbm_to_vmem [thread:$0]  (!%p5319_p11), %s5359_s22, 2048, %s5362_s0, %s5365_s4, %s5028_s17, %s5028_s17, %s5029_s18  }
  0xf0   : > { %p6776_p8 = scmp.ne.s32.totalorder %s6761_s12, 0 }
  0xf1   : > { %s5397_s5 = sand.u32 (!%p6776_p8), 1, %s5009_s28  }
  0xf2   : > { %366 = sbr.rel (%p6776_p8) target bundleno = 1515 (0x5eb), region = 52  ;;  %s3978_s10 = sshll.u32 (!%p6776_p8), %s5397_s5, 7 }
  0xf3   : > { %s369_s20 = scalar_lea.sflag (!%p6776_p8), [#allocation9], %s5397_s5  ;;  %s5401_s16 = scalar_lea.vmem (!%p6776_p8), [#allocation8], %s3978_s10 }
  0xf9   : > { %4976 = dma.done.wait (%p5289_p6), %s369_s20, 2048  }
  0xfa   : > { %4978 = vsyncadd (%p5289_p6), %s369_s20, 4294965248  ;;  %s377_s0 = sand.u32 1, %s5108_s11   ;;  %s5408_s12 = scalar_lea.vmem [#allocation11], %s3978_s10 }
  0xfb   : > { %s378_s4 = scalar_lea.sflag [#allocation12], %s377_s0 }
  0xfc   : > { %4980 = dma.done.wait (%p5289_p6), %s378_s4, 2048  }
  0xfd   : > { %4982 = vsyncadd (%p5289_p6), %s378_s4, 4294965248  ;;  %p6777_p11 = scmp.eq.s32.totalorder %s5108_s11, 0 }
  0xff   : > { %4984 = dma.done.wait (%p6777_p11), [#allocation12], 1792   ;;  %p6778_p0 = pmov %p6777_p11 }
 0x101   : > { %4986 = vsyncadd (%p6778_p0), [#allocation12], 4294965504  ;;  %p6779_p12 = pmov %p6778_p0 }
 0x102   : > { %p6780_p13 = pmov %p6778_p0 }
 0x103   : > { %4988 = dma.done.wait (%p6779_p12), [#allocation15], 32  }
 0x104   : > { %4990 = vsyncadd (%p6780_p13), [#allocation15], 4294967264  ;;  %p6781_p1 = pmov %p6778_p0 }
 0x105   : > { %p6782_p3 = pmov %p6778_p0 }
 0x106   : > { %4992 = dma.done.wait (%p6781_p1), [#allocation18], 1168  }
 0x107   : > { %4994 = vsyncadd (%p6782_p3), [#allocation18], 4294966128  ;;  %p6783_p6 = pmov %p6778_p0 }
 0x108   : > { %p6784_p2 = pmov %p6778_p0 }
 0x109   : > { %4996 = dma.done.wait (%p6783_p6), [#allocation21], 16  }
 0x10a   : > { %4998 = vsyncadd (%p6784_p2), [#allocation21], 4294967280  ;;  %vm554_vm0 = vcmask 64512   ;;  %vm452_vm1 = vcmask 90112   ;;  %v5031_v0 = vmov 0.0   ;;  %v4129_v1 = vld [vmem:[%s5408_s12] sm:$0xff]  }
 0x10b   : > { %2253 = vst.msk [vmem:[#allocation5] sm:$0xff] %vm554_vm0, %v5031_v0  ;;  %2254 = vst.msk [vmem:[#allocation5 + $0x8] sm:$0xff] %vm554_vm0, %v5031_v0  ;;  %v4207_v2 = vld [vmem:[%s5408_s12 + $0x8] sm:$0xff]   ;;  %v4208_v3 = vld [vmem:[%s5408_s12 + $0x10] sm:$0xff]   ;;  %v4130_v4 = vunpack.c.l.bf16 %v4129_v1  ;;  %v4131_v5 = vunpack.c.h.bf16 %v4129_v1  ;;  %s5032_s13 = smov 8   ;;  %vm443_vm2 = vcmask 97280  }
 0x10c   : > { %2258 = vst.msk [vmem:[#allocation5 + $0x198] sm:$0xff] %vm554_vm0, %v5031_v0  ;;  %2259 = vst.msk [vmem:[#allocation5 + $0x1a0] sm:$0xff] %vm554_vm0, %v5031_v0  ;;  %v4134_v6 = vunpack.c.l.bf16 %v4207_v2  ;;  %v4135_v7 = vunpack.c.h.bf16 %v4207_v2  ;;  %v4209_v8 = vld [vmem:[%s5408_s12 + $0x18] sm:$0xff]   ;;  %v4138_v9 = vunpack.c.l.bf16 %v4208_v3  ;;  %v4139_v10 = vunpack.c.h.bf16 %v4208_v3  ;;  %v4210_v13 = vld [vmem:[%s5408_s12 + $0x20] sm:$0xff]   ;;  %s5033_s23 = smov 12   ;;  %s5034_s17 = smov 24  }
 0x10d   : > { %472 = vst.msk [vmem:[#allocation2 + $0x29] sm:$0x1] %vm452_vm1, %v5031_v0  ;;  %454 = vst.msk [vmem:[#allocation2 + $0x18] sm:$0x1] %vm452_vm1, %v5031_v0  ;;  %v4142_v11 = vunpack.c.l.bf16 %v4209_v8  ;;  %v4143_v12 = vunpack.c.h.bf16 %v4209_v8  ;;  %v4623_v14 = vpack.i.bf16 %v4131_v5, %v4130_v4  ;;  %v4211_v15 = vld [vmem:[%s5408_s12 + $0x28] sm:$0xff]   ;;  %v4146_v18 = vunpack.c.l.bf16 %v4210_v13  ;;  %v4212_v23 = vld [vmem:[%s5408_s12 + $0x30] sm:$0xff]  }
 0x10e   : > { %455 = vst.msk [vmem:[#allocation2 + $0x30] sm:$0x1] %vm452_vm1, %v5031_v0  ;;  %456 = vst.msk [vmem:[#allocation2 + $0x48] sm:$0x1] %vm452_vm1, %v5031_v0  ;;  %v4633_v16 = vpack.i.bf16 %v4139_v10, %v4138_v9  ;;  %v4628_v17 = vpack.i.bf16 %v4135_v7, %v4134_v6  ;;  %v4147_v19 = vunpack.c.h.bf16 %v4210_v13  ;;  %v4150_v21 = vunpack.c.l.bf16 %v4211_v15  ;;  %v4213_v24 = vld [vmem:[%s5408_s12 + $0x38] sm:$0xff]   ;;  %v4065_v25 = vld [vmem:[%s5401_s16] sm:$0xff]  }
 0x10f   : > { %457 = vst.msk [vmem:[#allocation2 + $0x60] sm:$0x1] %vm452_vm1, %v5031_v0  ;;  %458 = vst.msk [vmem:[#allocation2 + $0x78] sm:$0x1] %vm452_vm1, %v5031_v0  ;;  %4624 = vrot.lane.b32.xlu0 %v4623_v14, %s5032_s13  ;;  %v4638_v20 = vpack.i.bf16 %v4143_v12, %v4142_v11  ;;  %v4151_v22 = vunpack.c.h.bf16 %v4211_v15  ;;  %v4154_v27 = vunpack.c.l.bf16 %v4212_v23  ;;  %v4155_v28 = vunpack.c.h.bf16 %v4212_v23  ;;  %v4214_v29 = vld [vmem:[%s5408_s12 + $0x40] sm:$0xff]   ;;  %v4192_v30 = vld [vmem:[%s5401_s16 + $0x8] sm:$0xff]  }
 0x110   : > { %459 = vst.msk [vmem:[#allocation2 + $0x90] sm:$0x1] %vm452_vm1, %v5031_v0  ;;  %460 = vst.msk [vmem:[#allocation2 + $0xa8] sm:$0x1] %vm452_vm1, %v5031_v0  ;;  %4634 = vrot.lane.b32.xlu1 %v4633_v16, %s5032_s13  ;;  %v4643_v26 = vpack.i.bf16 %v4147_v19, %v4146_v18  ;;  %v4158_v32 = vunpack.c.l.bf16 %v4213_v24  ;;  %v4159_v33 = vunpack.c.h.bf16 %v4213_v24  ;;  %v4215_v34 = vld [vmem:[%s5408_s12 + $0x48] sm:$0xff]   ;;  %v4193_v35 = vld [vmem:[%s5401_s16 + $0x10] sm:$0xff]   ;;  %v4066_v36 = vunpack.c.l.bf16 %v4065_v25 }
 0x111   : > { %461 = vst.msk [vmem:[#allocation2 + $0xc0] sm:$0x1] %vm452_vm1, %v5031_v0  ;;  %462 = vst.msk [vmem:[#allocation2 + $0xd8] sm:$0x1] %vm452_vm1, %v5031_v0  ;;  %v4648_v31 = vpack.i.bf16 %v4151_v22, %v4150_v21  ;;  %v4162_v37 = vunpack.c.l.bf16 %v4214_v29  ;;  %v4067_v38 = vunpack.c.h.bf16 %v4065_v25  ;;  %v4070_v39 = vunpack.c.l.bf16 %v4192_v30  ;;  %v4216_v47 = vld [vmem:[%s5408_s12 + $0x50] sm:$0xff]   ;;  %v4194_v49 = vld [vmem:[%s5401_s16 + $0x18] sm:$0xff]  }
 0x112   : > { %463 = vst.msk [vmem:[#allocation2 + $0xf0] sm:$0x1] %vm452_vm1, %v5031_v0  ;;  %464 = vst.msk [vmem:[#allocation2 + $0x108] sm:$0x1] %vm452_vm1, %v5031_v0  ;;  %v4071_v40 = vunpack.c.h.bf16 %v4192_v30  ;;  %v4653_v41 = vpack.i.bf16 %v4155_v28, %v4154_v27  ;;  %v4163_v42 = vunpack.c.h.bf16 %v4214_v29  ;;  %v4166_v43 = vunpack.c.l.bf16 %v4215_v34  ;;  %v4217_v50 = vld [vmem:[%s5408_s12 + $0x58] sm:$0xff]   ;;  %v4218_v59 = vld [vmem:[%s5408_s12 + $0x60] sm:$0xff]  }
 0x113   : > { %465 = vst.msk [vmem:[#allocation2 + $0x120] sm:$0x1] %vm452_vm1, %v5031_v0  ;;  %466 = vst.msk [vmem:[#allocation2 + $0x138] sm:$0x1] %vm452_vm1, %v5031_v0  ;;  %4629 = vrot.lane.b32.xlu0 %v4628_v17, %s5032_s13  ;;  %v4074_v44 = vunpack.c.l.bf16 %v4193_v35  ;;  %v4658_v45 = vpack.i.bf16 %v4159_v33, %v4158_v32  ;;  %v4167_v46 = vunpack.c.h.bf16 %v4215_v34  ;;  %v4075_v48 = vunpack.c.h.bf16 %v4193_v35  ;;  %v4219_v60 = vld [vmem:[%s5408_s12 + $0x68] sm:$0xff]   ;;  %v4220_v4 = vld [vmem:[%s5408_s12 + $0x70] sm:$0xff]  }
 0x114   : > { %467 = vst.msk [vmem:[#allocation2 + $0x150] sm:$0x1] %vm452_vm1, %v5031_v0  ;;  %468 = vst.msk [vmem:[#allocation2 + $0x168] sm:$0x1] %vm452_vm1, %v5031_v0  ;;  %4639 = vrot.lane.b32.xlu1 %v4638_v20, %s5032_s13  ;;  %v4078_v51 = vunpack.c.l.bf16 %v4194_v49  ;;  %v4079_v52 = vunpack.c.h.bf16 %v4194_v49  ;;  %v4663_v53 = vpack.i.bf16 %v4163_v42, %v4162_v37  ;;  %v4170_v54 = vunpack.c.l.bf16 %v4216_v47  ;;  %v4195_v5 = vld [vmem:[%s5401_s16 + $0x20] sm:$0xff]   ;;  %v4221_v6 = vld [vmem:[%s5408_s12 + $0x78] sm:$0xff]  }
 0x115   : > { %469 = vst.msk [vmem:[#allocation2 + $0x180] sm:$0x1] %vm452_vm1, %v5031_v0  ;;  %473 = vst.msk [vmem:[#allocation2 + $0x41] sm:$0x1] %vm452_vm1, %v5031_v0  ;;  %v4171_v55 = vunpack.c.h.bf16 %v4216_v47  ;;  %v4668_v56 = vpack.i.bf16 %v4167_v46, %v4166_v43  ;;  %v4174_v57 = vunpack.c.l.bf16 %v4217_v50  ;;  %v4175_v58 = vunpack.c.h.bf16 %v4217_v50  ;;  %v4196_v17 = vld [vmem:[%s5401_s16 + $0x28] sm:$0xff]   ;;  %v4197_v20 = vld [vmem:[%s5401_s16 + $0x30] sm:$0xff]  }
 0x116   : > { %474 = vst.msk [vmem:[#allocation2 + $0x59] sm:$0x1] %vm452_vm1, %v5031_v0  ;;  %475 = vst.msk [vmem:[#allocation2 + $0x71] sm:$0x1] %vm452_vm1, %v5031_v0  ;;  %v4178_v62 = vunpack.c.l.bf16 %v4218_v59  ;;  %v4179_v63 = vunpack.c.h.bf16 %v4218_v59  ;;  %v4182_v2 = vunpack.c.l.bf16 %v4219_v60  ;;  %v4183_v3 = vunpack.c.h.bf16 %v4219_v60  ;;  %v4198_v23 = vld [vmem:[%s5401_s16 + $0x38] sm:$0xff]   ;;  %v4200_v29 = vld [vmem:[%s5401_s16 + $0x48] sm:$0xff]  }
 0x117   : > { %476 = vst.msk [vmem:[#allocation2 + $0x89] sm:$0x1] %vm452_vm1, %v5031_v0  ;;  %477 = vst.msk [vmem:[#allocation2 + $0xa1] sm:$0x1] %vm452_vm1, %v5031_v0  ;;  %4644 = vrot.lane.b32.xlu0 %v4643_v26, %s5032_s13  ;;  %v4673_v61 = vpack.i.bf16 %v4171_v55, %v4170_v54  ;;  %v4678_v1 = vpack.i.bf16 %v4175_v58, %v4174_v57  ;;  %v4082_v7 = vunpack.c.l.bf16 %v4195_v5  ;;  %v4083_v8 = vunpack.c.h.bf16 %v4195_v5  ;;  %v4199_v26 = vld [vmem:[%s5401_s16 + $0x40] sm:$0xff]   ;;  %v4201_v32 = vld [vmem:[%s5401_s16 + $0x50] sm:$0xff]  }
 0x118   : > { %478 = vst.msk [vmem:[#allocation2 + $0xb9] sm:$0x1] %vm452_vm1, %v5031_v0  ;;  %479 = vst.msk [vmem:[#allocation2 + $0xd1] sm:$0x1] %vm452_vm1, %v5031_v0  ;;  %4649 = vrot.lane.b32.xlu1 %v4648_v31, %s5032_s13  ;;  %v4683_v9 = vpack.i.bf16 %v4179_v63, %v4178_v62  ;;  %v4186_v10 = vunpack.c.l.bf16 %v4220_v4  ;;  %v4187_v11 = vunpack.c.h.bf16 %v4220_v4  ;;  %v4688_v12 = vpack.i.bf16 %v4183_v3, %v4182_v2  ;;  %v4202_v35 = vld [vmem:[%s5401_s16 + $0x58] sm:$0xff]   ;;  %s5036_s18 = smov 36  }
 0x119   : > { %480 = vst.msk [vmem:[#allocation2 + $0xe9] sm:$0x1] %vm452_vm1, %v5031_v0  ;;  %481 = vst.msk [vmem:[#allocation2 + $0x101] sm:$0x1] %vm452_vm1, %v5031_v0  ;;  %v4190_v13 = vunpack.c.l.bf16 %v4221_v6  ;;  %v4191_v14 = vunpack.c.h.bf16 %v4221_v6  ;;  %v4086_v18 = vunpack.c.l.bf16 %v4196_v17  ;;  %v4087_v19 = vunpack.c.h.bf16 %v4196_v17  ;;  %v4206_v47 = vld [vmem:[%s5401_s16 + $0x78] sm:$0xff]   ;;  %s5037_s22 = smov 72  }
 0x11a   : > { %482 = vst.msk [vmem:[#allocation2 + $0x119] sm:$0x1] %vm452_vm1, %v5031_v0  ;;  %483 = vst.msk [vmem:[#allocation2 + $0x131] sm:$0x1] %vm452_vm1, %v5031_v0  ;;  %v4693_v15 = vpack.i.bf16 %v4187_v11, %v4186_v10  ;;  %v4090_v21 = vunpack.c.l.bf16 %v4197_v20  ;;  %v4091_v22 = vunpack.c.h.bf16 %v4197_v20  ;;  %v4094_v24 = vunpack.c.l.bf16 %v4198_v23  ;;  %s5038_s14 = smov 16   ;;  %s5039_s2 = smov 48  }
 0x11b   : > { %484 = vst.msk [vmem:[#allocation2 + $0x149] sm:$0x1] %vm452_vm1, %v5031_v0  ;;  %485 = vst.msk [vmem:[#allocation2 + $0x161] sm:$0x1] %vm452_vm1, %v5031_v0  ;;  %4654 = vrot.lane.b32.xlu0 %v4653_v41, %s5032_s13  ;;  %v4698_v16 = vpack.i.bf16 %v4191_v14, %v4190_v13  ;;  %v4095_v25 = vunpack.c.h.bf16 %v4198_v23  ;;  %v4098_v27 = vunpack.c.l.bf16 %v4199_v26  ;;  %v4099_v28 = vunpack.c.h.bf16 %v4199_v26  ;;  %v4204_v41 = vld [vmem:[%s5401_s16 + $0x68] sm:$0xff]   ;;  %s3986_s3 = sshll.u32 %s5397_s5, 8 }
 0x11c   : > { %486 = vst.msk [vmem:[#allocation2 + $0x179] sm:$0x1] %vm452_vm1, %v5031_v0  ;;  %487 = vst.msk [vmem:[#allocation2 + $0x191] sm:$0x1] %vm452_vm1, %v5031_v0  ;;  %4659 = vrot.lane.b32.xlu1 %v4658_v45, %s5032_s13  ;;  %v4102_v30 = vunpack.c.l.bf16 %v4200_v29  ;;  %v4103_v31 = vunpack.c.h.bf16 %v4200_v29  ;;  %v4106_v33 = vunpack.c.l.bf16 %v4201_v32  ;;  %v4107_v34 = vunpack.c.h.bf16 %v4201_v32  ;;  %s6565_s24 = scalar_lea.vmem [#allocation22], %s3986_s3  ;;  %s4063_s26 = sshll.u32 %s5108_s11, 12 }
 0x11d   : > { %555 = vst.msk [vmem:[#allocation2 + $0x19] sm:$0xff] %vm554_vm0, %v4066_v36  ;;  %556 = vst.msk [vmem:[#allocation2 + $0x21] sm:$0xff] %vm554_vm0, %v4067_v38  ;;  %v4110_v36 = vunpack.c.l.bf16 %v4202_v35  ;;  %v4111_v37 = vunpack.c.h.bf16 %v4202_v35  ;;  %v4203_v38 = vld [vmem:[%s5401_s16 + $0x60] sm:$0xff]   ;;  %v4118_v42 = vunpack.c.l.bf16 %v4204_v41  ;;  %v4119_v43 = vunpack.c.h.bf16 %v4204_v41  ;;  %s3809_s25 = sshll.u32 %s6565_s24, 4  ;;  %s3796_s11 = scalar_lea.sflag [#allocation10], %s5397_s5  ;;  %s6694_s25 = int_to_ptr.vmem [resolvable:$true] %s3809_s25 }
 0x11e   : > { %557 = vst.msk [vmem:[#allocation2 + $0x31] sm:$0xff] %vm554_vm0, %v4070_v39  ;;  %558 = vst.msk [vmem:[#allocation2 + $0x39] sm:$0xff] %vm554_vm0, %v4071_v40  ;;  %v4114_v39 = vunpack.c.l.bf16 %v4203_v38  ;;  %v4115_v40 = vunpack.c.h.bf16 %v4203_v38  ;;  %v4127_v49 = vunpack.c.h.bf16 %v4206_v47  ;;  %vm779_vm3 = vcmask 97344   ;;  %s4931_s0 = scalar_lea.vmem %s6694_s25, 4096  ;;  %p6785_p10 = scmp.ne.s32.totalorder %s6771_s19, 0 }
 0x11f   : > { %559 = vst.msk [vmem:[#allocation2 + $0x49] sm:$0xff] %vm554_vm0, %v4074_v44  ;;  %560 = vst.msk [vmem:[#allocation2 + $0x51] sm:$0xff] %vm554_vm0, %v4075_v48  ;;  %4664 = vrot.lane.b32.xlu0 %v4663_v53, %s5032_s13  ;;  %v4205_v44 = vld [vmem:[%s5401_s16 + $0x70] sm:$0xff]   ;;  %v4126_v48 = vunpack.c.l.bf16 %v4206_v47  ;;  %vm446_vm4 = vcmask 91136   ;;  %vm1064_vm5 = vcmask 195680   ;;  %vm1281_vm6 = vcmask 294080   ;;  %s6692_s16 = scalar_lea.hbm %s6751_s8, %s4063_s26  ;;  %p4932_p4 = scmp.ne.s32.totalorder %s6694_s25, %s4931_s0 }
 0x120   : > { %444 = vst.msk [vmem:[#allocation2] sm:$0xff] %vm443_vm2, %v5031_v0  ;;  %445 = vst.msk [vmem:[#allocation2 + $0x8] sm:$0xff] %vm443_vm2, %v5031_v0  ;;  %4669 = vrot.lane.b32.xlu1 %v4668_v56, %s5032_s13  ;;  %v4122_v45 = vunpack.c.l.bf16 %v4205_v44  ;;  %v4123_v46 = vunpack.c.h.bf16 %v4205_v44  ;;  %vm1350_vm7 = vcmask 293888   ;;  %vm1914_vm8 = vcmask 1043456   ;;  %s5040_s4 = smov [#allocation22]  }
 0x121   : > { %449 = vst.msk [vmem:[#allocation2 + $0x198] sm:$0xff] %vm443_vm2, %v5031_v0  ;;  %450 = vst.msk [vmem:[#allocation2 + $0x1a0] sm:$0xff] %vm443_vm2, %v5031_v0  ;;  %vm5035_vm9 = vmmov 1   ;;  %vm1544_vm11 = vcmask 589088   ;;  %vm1738_vm12 = vcmask 884288   ;;  %vm2261_vm13 = vcmask 57344   ;;  %p4933_p5 = pnand %p4932_p4, %p6785_p10 }
 0x122   : > { %453 = vst.msk [vmem:[#allocation2] sm:$0x1] %vm452_vm1, %v5031_v0  ;;  %470 = vst.msk [vmem:[#allocation2 + $0x198] sm:$0x1] %vm452_vm1, %v5031_v0  ;;  %vm2255_vm14 = vcmask 58368   ;;  %vm1817_vm15 = vcmask 883712  }
 0x123   : > { %561 = vst.msk [vmem:[#allocation2 + $0x61] sm:$0xff] %vm554_vm0, %v4078_v51  ;;  %562 = vst.msk [vmem:[#allocation2 + $0x69] sm:$0xff] %vm554_vm0, %v4079_v52  ;;  %4674 = vrot.lane.b32.xlu0 %v4673_v61, %s5032_s13  ;;  %p4934_p7 = pneg %p4933_p5  ;;  %s4935_s12 = sshll.u32 %s5040_s4, 4  ;;  %s4936_s12 = int_to_ptr.vmem [resolvable:$false] %s4935_s12 }
 0x124   : > { %563 = vst.msk [vmem:[#allocation2 + $0x79] sm:$0xff] %vm554_vm0, %v4082_v7  ;;  %564 = vst.msk [vmem:[#allocation2 + $0x81] sm:$0xff] %vm554_vm0, %v4083_v8  ;;  %4679 = vrot.lane.b32.xlu1 %v4678_v1, %s5032_s13  ;;  %p4938_p9 = scmp.lt.s32.totalorder %s6694_s25, %s4936_s12 }
 0x125   : > { %565 = vst.msk [vmem:[#allocation2 + $0x91] sm:$0xff] %vm554_vm0, %v4086_v18  ;;  %566 = vst.msk [vmem:[#allocation2 + $0x99] sm:$0xff] %vm554_vm0, %v4087_v19 }
 0x126   : > { %567 = vst.msk [vmem:[#allocation2 + $0xa9] sm:$0xff] %vm554_vm0, %v4090_v21  ;;  %568 = vst.msk [vmem:[#allocation2 + $0xb1] sm:$0xff] %vm554_vm0, %v4091_v22 }
 0x127   : > { %4684 = vrot.lane.b32.xlu0 %v4683_v9, %s5032_s13  ;;  %569 = vst.msk [vmem:[#allocation2 + $0xc1] sm:$0xff] %vm554_vm0, %v4094_v24  ;;  %570 = vst.msk [vmem:[#allocation2 + $0xc9] sm:$0xff] %vm554_vm0, %v4095_v25 }
 0x128   : > { %4689 = vrot.lane.b32.xlu1 %v4688_v12, %s5032_s13  ;;  %571 = vst.msk [vmem:[#allocation2 + $0xd9] sm:$0xff] %vm554_vm0, %v4098_v27  ;;  %572 = vst.msk [vmem:[#allocation2 + $0xe1] sm:$0xff] %vm554_vm0, %v4099_v28 }
 0x129   : > { %573 = vst.msk [vmem:[#allocation2 + $0xf1] sm:$0xff] %vm554_vm0, %v4102_v30  ;;  %574 = vst.msk [vmem:[#allocation2 + $0xf9] sm:$0xff] %vm554_vm0, %v4103_v31 }
 0x12a   : > { %575 = vst.msk [vmem:[#allocation2 + $0x109] sm:$0xff] %vm554_vm0, %v4106_v33  ;;  %576 = vst.msk [vmem:[#allocation2 + $0x111] sm:$0xff] %vm554_vm0, %v4107_v34 }
 0x12b   : > { %4694 = vrot.lane.b32.xlu0 %v4693_v15, %s5032_s13  ;;  %577 = vst.msk [vmem:[#allocation2 + $0x121] sm:$0xff] %vm554_vm0, %v4110_v36  ;;  %578 = vst.msk [vmem:[#allocation2 + $0x129] sm:$0xff] %vm554_vm0, %v4111_v37 }
 0x12c   : > { %4699 = vrot.lane.b32.xlu1 %v4698_v16, %s5032_s13  ;;  %579 = vst.msk [vmem:[#allocation2 + $0x139] sm:$0xff] %vm554_vm0, %v4114_v39  ;;  %580 = vst.msk [vmem:[#allocation2 + $0x141] sm:$0xff] %vm554_vm0, %v4115_v40 }
 0x12d   : > { %581 = vst.msk [vmem:[#allocation2 + $0x151] sm:$0xff] %vm554_vm0, %v4118_v42  ;;  %582 = vst.msk [vmem:[#allocation2 + $0x159] sm:$0xff] %vm554_vm0, %v4119_v43 }
 0x12e   : > { %583 = vst.msk [vmem:[#allocation2 + $0x169] sm:$0xff] %vm554_vm0, %v4122_v45  ;;  %584 = vst.msk [vmem:[#allocation2 + $0x171] sm:$0xff] %vm554_vm0, %v4123_v46 }
 0x12f   : > { %585 = vst.msk [vmem:[#allocation2 + $0x181] sm:$0xff] %vm554_vm0, %v4126_v48  ;;  %586 = vst.msk [vmem:[#allocation2 + $0x189] sm:$0xff] %vm554_vm0, %v4127_v49 }
 0x130   : > { %447 = vst.msk [vmem:[#allocation2 + $0x10] sm:$0x3] %vm446_vm4, %v5031_v0  ;;  %451 = vst.msk [vmem:[#allocation2 + $0x1a8] sm:$0x3] %vm446_vm4, %v5031_v0  ;;  %vm3063_vm4 = vcmask 392384  }
 0x131   : > { %471 = vst.msk [vmem:[#allocation2 + $0x11] sm:$0x1] %vm452_vm1, %v5031_v0  ;;  %488 = vst.msk [vmem:[#allocation2 + $0x1a9] sm:$0x1] %vm452_vm1, %v5031_v0  ;;  %vm2583_vm1 = vcmask 130112  }
 0x132   : > { %vm4476_vm10 = vmpackc.low %vm1914_vm8, %vm5035_vm9  ;;  %2262 = vst.msk [vmem:[#allocation5] sm:$0x1] %vm2261_vm13, %v5031_v0 }
 0x133   : > { %2263 = vst.msk [vmem:[#allocation5 + $0x18] sm:$0x1] %vm2261_vm13, %v5031_v0  ;;  %2264 = vst.msk [vmem:[#allocation5 + $0x30] sm:$0x1] %vm2261_vm13, %v5031_v0 }
 0x134   : > { %2265 = vst.msk [vmem:[#allocation5 + $0x48] sm:$0x1] %vm2261_vm13, %v5031_v0  ;;  %2266 = vst.msk [vmem:[#allocation5 + $0x60] sm:$0x1] %vm2261_vm13, %v5031_v0 }
 0x135   : > { %2267 = vst.msk [vmem:[#allocation5 + $0x78] sm:$0x1] %vm2261_vm13, %v5031_v0  ;;  %2268 = vst.msk [vmem:[#allocation5 + $0x90] sm:$0x1] %vm2261_vm13, %v5031_v0 }
 0x136   : > { %2269 = vst.msk [vmem:[#allocation5 + $0xa8] sm:$0x1] %vm2261_vm13, %v5031_v0  ;;  %2270 = vst.msk [vmem:[#allocation5 + $0xc0] sm:$0x1] %vm2261_vm13, %v5031_v0 }
 0x137   : > { %2271 = vst.msk [vmem:[#allocation5 + $0xd8] sm:$0x1] %vm2261_vm13, %v5031_v0  ;;  %2272 = vst.msk [vmem:[#allocation5 + $0xf0] sm:$0x1] %vm2261_vm13, %v5031_v0 }
 0x138   : > { %2273 = vst.msk [vmem:[#allocation5 + $0x108] sm:$0x1] %vm2261_vm13, %v5031_v0  ;;  %2274 = vst.msk [vmem:[#allocation5 + $0x120] sm:$0x1] %vm2261_vm13, %v5031_v0 }
 0x139   : > { %2275 = vst.msk [vmem:[#allocation5 + $0x138] sm:$0x1] %vm2261_vm13, %v5031_v0  ;;  %2276 = vst.msk [vmem:[#allocation5 + $0x150] sm:$0x1] %vm2261_vm13, %v5031_v0 }
 0x13a   : > { %2277 = vst.msk [vmem:[#allocation5 + $0x168] sm:$0x1] %vm2261_vm13, %v5031_v0  ;;  %2278 = vst.msk [vmem:[#allocation5 + $0x180] sm:$0x1] %vm2261_vm13, %v5031_v0 }
 0x13b   : > { %2279 = vst.msk [vmem:[#allocation5 + $0x198] sm:$0x1] %vm2261_vm13, %v5031_v0  ;;  %2281 = vst.msk [vmem:[#allocation5 + $0x29] sm:$0x1] %vm2261_vm13, %v5031_v0 }
 0x13c   : > { %2282 = vst.msk [vmem:[#allocation5 + $0x41] sm:$0x1] %vm2261_vm13, %v5031_v0  ;;  %2283 = vst.msk [vmem:[#allocation5 + $0x59] sm:$0x1] %vm2261_vm13, %v5031_v0 }
 0x13d   : > { %2284 = vst.msk [vmem:[#allocation5 + $0x71] sm:$0x1] %vm2261_vm13, %v5031_v0  ;;  %2285 = vst.msk [vmem:[#allocation5 + $0x89] sm:$0x1] %vm2261_vm13, %v5031_v0 }
 0x13e   : > { %2286 = vst.msk [vmem:[#allocation5 + $0xa1] sm:$0x1] %vm2261_vm13, %v5031_v0  ;;  %2287 = vst.msk [vmem:[#allocation5 + $0xb9] sm:$0x1] %vm2261_vm13, %v5031_v0 }
 0x13f   : > { %2288 = vst.msk [vmem:[#allocation5 + $0xd1] sm:$0x1] %vm2261_vm13, %v5031_v0  ;;  %2289 = vst.msk [vmem:[#allocation5 + $0xe9] sm:$0x1] %vm2261_vm13, %v5031_v0 }
 0x140   : > { %2290 = vst.msk [vmem:[#allocation5 + $0x101] sm:$0x1] %vm2261_vm13, %v5031_v0  ;;  %2291 = vst.msk [vmem:[#allocation5 + $0x119] sm:$0x1] %vm2261_vm13, %v5031_v0 }
 0x141   : > { %2292 = vst.msk [vmem:[#allocation5 + $0x131] sm:$0x1] %vm2261_vm13, %v5031_v0  ;;  %2293 = vst.msk [vmem:[#allocation5 + $0x149] sm:$0x1] %vm2261_vm13, %v5031_v0 }
 0x142   : > { %2294 = vst.msk [vmem:[#allocation5 + $0x161] sm:$0x1] %vm2261_vm13, %v5031_v0  ;;  %2295 = vst.msk [vmem:[#allocation5 + $0x179] sm:$0x1] %vm2261_vm13, %v5031_v0 }
 0x143   : > { %2296 = vst.msk [vmem:[#allocation5 + $0x191] sm:$0x1] %vm2261_vm13, %v5031_v0 }
 0x144   : > { %2256 = vst.msk [vmem:[#allocation5 + $0x10] sm:$0x3] %vm2255_vm14, %v5031_v0  ;;  %2260 = vst.msk [vmem:[#allocation5 + $0x1a8] sm:$0x3] %vm2255_vm14, %v5031_v0 }
 0x145   : > { %2280 = vst.msk [vmem:[#allocation5 + $0x11] sm:$0x1] %vm2261_vm13, %v5031_v0  ;;  %2297 = vst.msk [vmem:[#allocation5 + $0x1a9] sm:$0x1] %vm2261_vm13, %v5031_v0 }
 0x14b   : > { %v2404_v0 = vld [vmem:[#allocation5 + $0x9] sm:$0xff] }
 0x181   : > { %v4625_v50 = vpop.permute.xlu0 %4624 }
 0x182   : > { %v4627_v51 = vunpack.i.h.bf16 %v4625_v50  ;;  %v4626_v52 = vunpack.i.l.bf16 %v4625_v50  ;;  %v4635_v53 = vpop.permute.xlu1 %4634 }
 0x183   : > { %v4637_v54 = vunpack.i.h.bf16 %v4635_v53  ;;  %v4636_v55 = vunpack.i.l.bf16 %v4635_v53 }
 0x184   : > { %780 = vst.msk [vmem:[#allocation2 + $0x19] sm:$0xff] %vm779_vm3, %v4626_v52  ;;  %781 = vst.msk [vmem:[#allocation2 + $0x21] sm:$0xff] %vm779_vm3, %v4627_v51 }
 0x185   : > { %v4630_v56 = vpop.permute.xlu0 %4629  ;;  %784 = vst.msk [vmem:[#allocation2 + $0x49] sm:$0xff] %vm779_vm3, %v4636_v55  ;;  %785 = vst.msk [vmem:[#allocation2 + $0x51] sm:$0xff] %vm779_vm3, %v4637_v54 }
 0x186   : > { %v4632_v57 = vunpack.i.h.bf16 %v4630_v56  ;;  %v4631_v58 = vunpack.i.l.bf16 %v4630_v56  ;;  %v4640_v59 = vpop.permute.xlu1 %4639 }
 0x187   : > { %v4642_v60 = vunpack.i.h.bf16 %v4640_v59  ;;  %v4641_v61 = vunpack.i.l.bf16 %v4640_v59 }
 0x188   : > { %782 = vst.msk [vmem:[#allocation2 + $0x31] sm:$0xff] %vm779_vm3, %v4631_v58  ;;  %783 = vst.msk [vmem:[#allocation2 + $0x39] sm:$0xff] %vm779_vm3, %v4632_v57 }
 0x189   : > { %786 = vst.msk [vmem:[#allocation2 + $0x61] sm:$0xff] %vm779_vm3, %v4641_v61  ;;  %787 = vst.msk [vmem:[#allocation2 + $0x69] sm:$0xff] %vm779_vm3, %v4642_v60  ;;  %v4645_v62 = vpop.permute.xlu0 %4644 }
 0x18a   : > { %v4647_v63 = vunpack.i.h.bf16 %v4645_v62  ;;  %v4646_v1 = vunpack.i.l.bf16 %v4645_v62  ;;  %v4650_v2 = vpop.permute.xlu1 %4649 }
 0x18b   : > { %v887_v3 = vld [vmem:[#allocation2 + $0x21] sm:$0xff]  ;;  %v886_v4 = vld [vmem:[#allocation2 + $0x19] sm:$0xff]  ;;  %v4652_v5 = vunpack.i.h.bf16 %v4650_v2  ;;  %v4651_v6 = vunpack.i.l.bf16 %v4650_v2 }
 0x18c   : > { %962 = vrot.lane.b32.xlu1 %v887_v3, %s5033_s23  ;;  %960 = vrot.lane.b32.xlu0 %v886_v4, %s5033_s23  ;;  %788 = vst.msk [vmem:[#allocation2 + $0x79] sm:$0xff] %vm779_vm3, %v4646_v1  ;;  %789 = vst.msk [vmem:[#allocation2 + $0x81] sm:$0xff] %vm779_vm3, %v4647_v63  ;;  %v815_v8 = vld [vmem:[#allocation2 + $0x20] sm:$0xff]  ;;  %v814_v12 = vld [vmem:[#allocation2 + $0x18] sm:$0xff] }
 0x18d   : > { %790 = vst.msk [vmem:[#allocation2 + $0x91] sm:$0xff] %vm779_vm3, %v4651_v6  ;;  %791 = vst.msk [vmem:[#allocation2 + $0x99] sm:$0xff] %vm779_vm3, %v4652_v5  ;;  %v4655_v7 = vpop.permute.xlu0 %4654  ;;  %v818_v13 = vld [vmem:[#allocation2 + $0x48] sm:$0xff]  ;;  %v1103_v14 = vld [vmem:[#allocation2 + $0x1a] sm:$0xff] }
 0x18e   : > { %v4657_v9 = vunpack.i.h.bf16 %v4655_v7  ;;  %v4656_v10 = vunpack.i.l.bf16 %v4655_v7  ;;  %v4660_v11 = vpop.permute.xlu1 %4659  ;;  %851 = vst.msk [vmem:[#allocation3 + $0x18] sm:$0xff] %vm443_vm2, %v815_v8  ;;  %850 = vst.msk [vmem:[#allocation3 + $0x10] sm:$0xff] %vm443_vm2, %v814_v12  ;;  %v819_v24 = vld [vmem:[#allocation2 + $0x50] sm:$0xff]  ;;  %v1104_v26 = vld [vmem:[#allocation2 + $0x22] sm:$0xff] }
 0x18f   : > { %v888_v15 = vld [vmem:[#allocation2 + $0x31] sm:$0xff]  ;;  %v4662_v16 = vunpack.i.h.bf16 %v4660_v11  ;;  %v4661_v17 = vunpack.i.l.bf16 %v4660_v11  ;;  %854 = vst.msk [vmem:[#allocation3 + $0x30] sm:$0xff] %vm443_vm2, %v818_v13  ;;  %v889_v25 = vld [vmem:[#allocation2 + $0x39] sm:$0xff]  ;;  %855 = vst.msk [vmem:[#allocation3 + $0x38] sm:$0xff] %vm443_vm2, %v819_v24 }
 0x190   : > { %1177 = vrot.lane.b32.xlu1 %v1103_v14, %s5034_s17  ;;  %964 = vrot.lane.b32.xlu0 %v888_v15, %s5033_s23  ;;  %792 = vst.msk [vmem:[#allocation2 + $0xa9] sm:$0xff] %vm779_vm3, %v4656_v10  ;;  %793 = vst.msk [vmem:[#allocation2 + $0xb1] sm:$0xff] %vm779_vm3, %v4657_v9  ;;  %v816_v19 = vld [vmem:[#allocation2 + $0x30] sm:$0xff]  ;;  %v817_v23 = vld [vmem:[#allocation2 + $0x38] sm:$0xff] }
 0x191   : > { %794 = vst.msk [vmem:[#allocation2 + $0xc1] sm:$0xff] %vm779_vm3, %v4661_v17  ;;  %795 = vst.msk [vmem:[#allocation2 + $0xc9] sm:$0xff] %vm779_vm3, %v4662_v16  ;;  %v4665_v18 = vpop.permute.xlu0 %4664  ;;  %v820_v33 = vld [vmem:[#allocation2 + $0x60] sm:$0xff]  ;;  %v821_v34 = vld [vmem:[#allocation2 + $0x68] sm:$0xff] }
 0x192   : > { %v4667_v20 = vunpack.i.h.bf16 %v4665_v18  ;;  %v4666_v21 = vunpack.i.l.bf16 %v4665_v18  ;;  %v4670_v22 = vpop.permute.xlu1 %4669  ;;  %852 = vst.msk [vmem:[#allocation3 + $0x20] sm:$0xff] %vm443_vm2, %v816_v19  ;;  %853 = vst.msk [vmem:[#allocation3 + $0x28] sm:$0xff] %vm443_vm2, %v817_v23  ;;  %v1105_v35 = vld [vmem:[#allocation2 + $0x32] sm:$0xff]  ;;  %v1106_v36 = vld [vmem:[#allocation2 + $0x3a] sm:$0xff] }
 0x193   : > { %v4672_v27 = vunpack.i.h.bf16 %v4670_v22  ;;  %v4671_v28 = vunpack.i.l.bf16 %v4670_v22  ;;  %856 = vst.msk [vmem:[#allocation3 + $0x40] sm:$0xff] %vm443_vm2, %v820_v33  ;;  %857 = vst.msk [vmem:[#allocation3 + $0x48] sm:$0xff] %vm443_vm2, %v821_v34  ;;  %v890_v39 = vld [vmem:[#allocation2 + $0x49] sm:$0xff]  ;;  %v891_v40 = vld [vmem:[#allocation2 + $0x51] sm:$0xff] }
 0x194   : > { %966 = vrot.lane.b32.xlu0 %v889_v25, %s5033_s23  ;;  %1179 = vrot.lane.b32.xlu1 %v1104_v26, %s5034_s17  ;;  %796 = vst.msk [vmem:[#allocation2 + $0xd9] sm:$0xff] %vm779_vm3, %v4666_v21  ;;  %797 = vst.msk [vmem:[#allocation2 + $0xe1] sm:$0xff] %vm779_vm3, %v4667_v20  ;;  %v822_v45 = vld [vmem:[#allocation2 + $0x78] sm:$0xff]  ;;  %v823_v46 = vld [vmem:[#allocation2 + $0x80] sm:$0xff] }
 0x195   : > { %798 = vst.msk [vmem:[#allocation2 + $0xf1] sm:$0xff] %vm779_vm3, %v4671_v28  ;;  %799 = vst.msk [vmem:[#allocation2 + $0xf9] sm:$0xff] %vm779_vm3, %v4672_v27  ;;  %v4675_v29 = vpop.permute.xlu0 %4674  ;;  %v824_v50 = vld [vmem:[#allocation2 + $0x90] sm:$0xff]  ;;  %v825_v54 = vld [vmem:[#allocation2 + $0x98] sm:$0xff] }
 0x196   : > { %v4677_v30 = vunpack.i.h.bf16 %v4675_v29  ;;  %v4676_v31 = vunpack.i.l.bf16 %v4675_v29  ;;  %v4680_v32 = vpop.permute.xlu1 %4679  ;;  %858 = vst.msk [vmem:[#allocation3 + $0x50] sm:$0xff] %vm443_vm2, %v822_v45  ;;  %859 = vst.msk [vmem:[#allocation3 + $0x58] sm:$0xff] %vm443_vm2, %v823_v46  ;;  %v1107_v57 = vld [vmem:[#allocation2 + $0x4a] sm:$0xff]  ;;  %v1108_v58 = vld [vmem:[#allocation2 + $0x52] sm:$0xff] }
 0x197   : > { %v4682_v37 = vunpack.i.h.bf16 %v4680_v32  ;;  %v4681_v38 = vunpack.i.l.bf16 %v4680_v32  ;;  %860 = vst.msk [vmem:[#allocation3 + $0x60] sm:$0xff] %vm443_vm2, %v824_v50  ;;  %v826_v55 = vld [vmem:[#allocation2 + $0xa8] sm:$0xff]  ;;  %v827_v56 = vld [vmem:[#allocation2 + $0xb0] sm:$0xff]  ;;  %861 = vst.msk [vmem:[#allocation3 + $0x68] sm:$0xff] %vm443_vm2, %v825_v54 }
 0x198   : > { %1181 = vrot.lane.b32.xlu0 %v1105_v35, %s5034_s17  ;;  %1183 = vrot.lane.b32.xlu1 %v1106_v36, %s5034_s17  ;;  %800 = vst.msk [vmem:[#allocation2 + $0x109] sm:$0xff] %vm779_vm3, %v4676_v31  ;;  %801 = vst.msk [vmem:[#allocation2 + $0x111] sm:$0xff] %vm779_vm3, %v4677_v30  ;;  %v892_v61 = vld [vmem:[#allocation2 + $0x61] sm:$0xff]  ;;  %v893_v62 = vld [vmem:[#allocation2 + $0x69] sm:$0xff] }
 0x199   : > { %802 = vst.msk [vmem:[#allocation2 + $0x121] sm:$0xff] %vm779_vm3, %v4681_v38  ;;  %803 = vst.msk [vmem:[#allocation2 + $0x129] sm:$0xff] %vm779_vm3, %v4682_v37  ;;  %v4685_v41 = vpop.permute.xlu0 %4684  ;;  %v828_v63 = vld [vmem:[#allocation2 + $0xc0] sm:$0xff]  ;;  %v829_v1 = vld [vmem:[#allocation2 + $0xc8] sm:$0xff] }
 0x19a   : > { %v4687_v42 = vunpack.i.h.bf16 %v4685_v41  ;;  %v4686_v43 = vunpack.i.l.bf16 %v4685_v41  ;;  %v4690_v44 = vpop.permute.xlu1 %4689  ;;  %862 = vst.msk [vmem:[#allocation3 + $0x70] sm:$0xff] %vm443_vm2, %v826_v55  ;;  %863 = vst.msk [vmem:[#allocation3 + $0x78] sm:$0xff] %vm443_vm2, %v827_v56  ;;  %v1109_v8 = vld [vmem:[#allocation2 + $0x62] sm:$0xff]  ;;  %v1110_v9 = vld [vmem:[#allocation2 + $0x6a] sm:$0xff] }
 0x19b   : > { %v4692_v47 = vunpack.i.h.bf16 %v4690_v44  ;;  %v4691_v48 = vunpack.i.l.bf16 %v4690_v44  ;;  %864 = vst.msk [vmem:[#allocation3 + $0x80] sm:$0xff] %vm443_vm2, %v828_v63  ;;  %v830_v2 = vld [vmem:[#allocation2 + $0xd8] sm:$0xff]  ;;  %v831_v3 = vld [vmem:[#allocation2 + $0xe0] sm:$0xff]  ;;  %865 = vst.msk [vmem:[#allocation3 + $0x88] sm:$0xff] %vm443_vm2, %v829_v1 }
 0x19c   : > { %968 = vrot.lane.b32.xlu0 %v890_v39, %s5033_s23  ;;  %970 = vrot.lane.b32.xlu1 %v891_v40, %s5033_s23  ;;  %804 = vst.msk [vmem:[#allocation2 + $0x139] sm:$0xff] %vm779_vm3, %v4686_v43  ;;  %805 = vst.msk [vmem:[#allocation2 + $0x141] sm:$0xff] %vm779_vm3, %v4687_v42  ;;  %v832_v4 = vld [vmem:[#allocation2 + $0xf0] sm:$0xff]  ;;  %v833_v5 = vld [vmem:[#allocation2 + $0xf8] sm:$0xff] }
 0x19d   : > { %806 = vst.msk [vmem:[#allocation2 + $0x151] sm:$0xff] %vm779_vm3, %v4691_v48  ;;  %807 = vst.msk [vmem:[#allocation2 + $0x159] sm:$0xff] %vm779_vm3, %v4692_v47  ;;  %v4695_v49 = vpop.permute.xlu0 %4694  ;;  %v894_v10 = vld [vmem:[#allocation2 + $0x79] sm:$0xff]  ;;  %v895_v11 = vld [vmem:[#allocation2 + $0x81] sm:$0xff] }
 0x19e   : > { %v4697_v51 = vunpack.i.h.bf16 %v4695_v49  ;;  %v4696_v52 = vunpack.i.l.bf16 %v4695_v49  ;;  %v4700_v53 = vpop.permute.xlu1 %4699  ;;  %866 = vst.msk [vmem:[#allocation3 + $0x90] sm:$0xff] %vm443_vm2, %v830_v2  ;;  %867 = vst.msk [vmem:[#allocation3 + $0x98] sm:$0xff] %vm443_vm2, %v831_v3  ;;  %v1111_v22 = vld [vmem:[#allocation2 + $0x7a] sm:$0xff]  ;;  %v1112_v23 = vld [vmem:[#allocation2 + $0x82] sm:$0xff] }
 0x19f   : > { %v4702_v59 = vunpack.i.h.bf16 %v4700_v53  ;;  %v4701_v60 = vunpack.i.l.bf16 %v4700_v53  ;;  %868 = vst.msk [vmem:[#allocation3 + $0xa0] sm:$0xff] %vm443_vm2, %v832_v4  ;;  %v834_v6 = vld [vmem:[#allocation2 + $0x108] sm:$0xff]  ;;  %v835_v7 = vld [vmem:[#allocation2 + $0x110] sm:$0xff]  ;;  %869 = vst.msk [vmem:[#allocation3 + $0xa8] sm:$0xff] %vm443_vm2, %v833_v5 }
 0x1a0   : > { %1185 = vrot.lane.b32.xlu0 %v1107_v57, %s5034_s17  ;;  %1187 = vrot.lane.b32.xlu1 %v1108_v58, %s5034_s17  ;;  %808 = vst.msk [vmem:[#allocation2 + $0x169] sm:$0xff] %vm779_vm3, %v4696_v52  ;;  %809 = vst.msk [vmem:[#allocation2 + $0x171] sm:$0xff] %vm779_vm3, %v4697_v51  ;;  %v836_v12 = vld [vmem:[#allocation2 + $0x120] sm:$0xff]  ;;  %v837_v13 = vld [vmem:[#allocation2 + $0x128] sm:$0xff] }
 0x1a1   : > { %810 = vst.msk [vmem:[#allocation2 + $0x181] sm:$0xff] %vm779_vm3, %v4701_v60  ;;  %811 = vst.msk [vmem:[#allocation2 + $0x189] sm:$0xff] %vm779_vm3, %v4702_v59  ;;  %v896_v24 = vld [vmem:[#allocation2 + $0x91] sm:$0xff]  ;;  %v897_v25 = vld [vmem:[#allocation2 + $0x99] sm:$0xff]  ;;  %vm2869_vm3 = vcmask 195584  }
 0x1a2   : > { %870 = vst.msk [vmem:[#allocation3 + $0xb0] sm:$0xff] %vm443_vm2, %v834_v6  ;;  %871 = vst.msk [vmem:[#allocation3 + $0xb8] sm:$0xff] %vm443_vm2, %v835_v7  ;;  %v1113_v26 = vld [vmem:[#allocation2 + $0x92] sm:$0xff]  ;;  %v1114_v27 = vld [vmem:[#allocation2 + $0x9a] sm:$0xff] }
 0x1a3   : > { %872 = vst.msk [vmem:[#allocation3 + $0xc0] sm:$0xff] %vm443_vm2, %v836_v12  ;;  %v838_v14 = vld [vmem:[#allocation2 + $0x138] sm:$0xff]  ;;  %v839_v15 = vld [vmem:[#allocation2 + $0x140] sm:$0xff]  ;;  %873 = vst.msk [vmem:[#allocation3 + $0xc8] sm:$0xff] %vm443_vm2, %v837_v13 }
 0x1a4   : > { %972 = vrot.lane.b32.xlu0 %v892_v61, %s5033_s23  ;;  %974 = vrot.lane.b32.xlu1 %v893_v62, %s5033_s23  ;;  %874 = vst.msk [vmem:[#allocation3 + $0xd0] sm:$0xff] %vm443_vm2, %v838_v14  ;;  %875 = vst.msk [vmem:[#allocation3 + $0xd8] sm:$0xff] %vm443_vm2, %v839_v15  ;;  %v840_v16 = vld [vmem:[#allocation2 + $0x150] sm:$0xff]  ;;  %v841_v17 = vld [vmem:[#allocation2 + $0x158] sm:$0xff] }
 0x1a5   : > { %876 = vst.msk [vmem:[#allocation3 + $0xe0] sm:$0xff] %vm443_vm2, %v840_v16  ;;  %877 = vst.msk [vmem:[#allocation3 + $0xe8] sm:$0xff] %vm443_vm2, %v841_v17  ;;  %v898_v28 = vld [vmem:[#allocation2 + $0xa9] sm:$0xff]  ;;  %v899_v29 = vld [vmem:[#allocation2 + $0xb1] sm:$0xff] }
 0x1a6   : > { %v1115_v30 = vld [vmem:[#allocation2 + $0xaa] sm:$0xff]  ;;  %v1116_v31 = vld [vmem:[#allocation2 + $0xb2] sm:$0xff]  ;;  %v900_v32 = vld [vmem:[#allocation2 + $0xc1] sm:$0xff] }
 0x1a7   : > { %v842_v18 = vld [vmem:[#allocation2 + $0x168] sm:$0xff]  ;;  %v843_v19 = vld [vmem:[#allocation2 + $0x170] sm:$0xff]  ;;  %v902_v36 = vld [vmem:[#allocation2 + $0xd9] sm:$0xff] }
 0x1a8   : > { %1189 = vrot.lane.b32.xlu0 %v1109_v8, %s5034_s17  ;;  %1191 = vrot.lane.b32.xlu1 %v1110_v9, %s5034_s17  ;;  %878 = vst.msk [vmem:[#allocation3 + $0xf0] sm:$0xff] %vm443_vm2, %v842_v18  ;;  %v844_v20 = vld [vmem:[#allocation2 + $0x180] sm:$0xff]  ;;  %v845_v21 = vld [vmem:[#allocation2 + $0x188] sm:$0xff]  ;;  %879 = vst.msk [vmem:[#allocation3 + $0xf8] sm:$0xff] %vm443_vm2, %v843_v19 }
 0x1a9   : > { %880 = vst.msk [vmem:[#allocation3 + $0x100] sm:$0xff] %vm443_vm2, %v844_v20  ;;  %881 = vst.msk [vmem:[#allocation3 + $0x108] sm:$0xff] %vm443_vm2, %v845_v21  ;;  %v901_v33 = vld [vmem:[#allocation2 + $0xc9] sm:$0xff]  ;;  %v903_v37 = vld [vmem:[#allocation2 + $0xe1] sm:$0xff] }
 0x1aa   : > { %v1117_v34 = vld [vmem:[#allocation2 + $0xc2] sm:$0xff]  ;;  %v1118_v35 = vld [vmem:[#allocation2 + $0xca] sm:$0xff]  ;;  %v1119_v38 = vld [vmem:[#allocation2 + $0xda] sm:$0xff] }
 0x1ab   : > { %v1120_v39 = vld [vmem:[#allocation2 + $0xe2] sm:$0xff]  ;;  %v904_v40 = vld [vmem:[#allocation2 + $0xf1] sm:$0xff]  ;;  %v905_v41 = vld [vmem:[#allocation2 + $0xf9] sm:$0xff] }
 0x1ac   : > { %976 = vrot.lane.b32.xlu0 %v894_v10, %s5033_s23  ;;  %978 = vrot.lane.b32.xlu1 %v895_v11, %s5033_s23  ;;  %v1121_v42 = vld [vmem:[#allocation2 + $0xf2] sm:$0xff]  ;;  %v1122_v43 = vld [vmem:[#allocation2 + $0xfa] sm:$0xff]  ;;  %v906_v44 = vld [vmem:[#allocation2 + $0x109] sm:$0xff] }
 0x1ad   : > { %v907_v45 = vld [vmem:[#allocation2 + $0x111] sm:$0xff]  ;;  %v908_v48 = vld [vmem:[#allocation2 + $0x121] sm:$0xff]  ;;  %v909_v49 = vld [vmem:[#allocation2 + $0x129] sm:$0xff] }
 0x1ae   : > { %v1123_v46 = vld [vmem:[#allocation2 + $0x10a] sm:$0xff]  ;;  %v1124_v47 = vld [vmem:[#allocation2 + $0x112] sm:$0xff]  ;;  %v1125_v50 = vld [vmem:[#allocation2 + $0x122] sm:$0xff] }
 0x1af   : > { %v1126_v51 = vld [vmem:[#allocation2 + $0x12a] sm:$0xff]  ;;  %v910_v52 = vld [vmem:[#allocation2 + $0x139] sm:$0xff]  ;;  %v911_v53 = vld [vmem:[#allocation2 + $0x141] sm:$0xff] }
 0x1b0   : > { %1193 = vrot.lane.b32.xlu0 %v1111_v22, %s5034_s17  ;;  %1195 = vrot.lane.b32.xlu1 %v1112_v23, %s5034_s17  ;;  %v1127_v54 = vld [vmem:[#allocation2 + $0x13a] sm:$0xff]  ;;  %v1128_v55 = vld [vmem:[#allocation2 + $0x142] sm:$0xff]  ;;  %v912_v56 = vld [vmem:[#allocation2 + $0x151] sm:$0xff] }
 0x1b1   : > { %v913_v57 = vld [vmem:[#allocation2 + $0x159] sm:$0xff]  ;;  %v914_v61 = vld [vmem:[#allocation2 + $0x169] sm:$0xff]  ;;  %v915_v62 = vld [vmem:[#allocation2 + $0x171] sm:$0xff] }
 0x1b2   : > { %v1129_v58 = vld [vmem:[#allocation2 + $0x152] sm:$0xff]  ;;  %v1130_v59 = vld [vmem:[#allocation2 + $0x15a] sm:$0xff]  ;;  %v813_v63 = vld [vmem:[#allocation2 + $0x8] sm:$0xff] }
 0x1b3   : > { %v812_v60 = vld [vmem:[#allocation2] sm:$0xff]  ;;  %849 = vst.msk [vmem:[#allocation3 + $0x8] sm:$0xff] %vm443_vm2, %v813_v63  ;;  %v1131_v3 = vld [vmem:[#allocation2 + $0x16a] sm:$0xff]  ;;  %v1132_v4 = vld [vmem:[#allocation2 + $0x172] sm:$0xff] }
 0x1b4   : > { %980 = vrot.lane.b32.xlu0 %v896_v24, %s5033_s23  ;;  %982 = vrot.lane.b32.xlu1 %v897_v25, %s5033_s23  ;;  %848 = vst.msk [vmem:[#allocation3] sm:$0xff] %vm443_vm2, %v812_v60  ;;  %v1803_v5 = vld [vmem:[#allocation13] sm:$0xff]  ;;  %v1804_v6 = vld [vmem:[#allocation13 + $0x8] sm:$0xff]  ;;  %v1805_v12 = vld [vmem:[#allocation13 + $0x10] sm:$0xff] }
 0x1b5   : > { %v4451_v7 = vpack.c.bf16 %v1804_v6, %v1803_v5  ;;  %v916_v8 = vld [vmem:[#allocation2 + $0x181] sm:$0xff]  ;;  %v1806_v13 = vld [vmem:[#allocation13 + $0x18] sm:$0xff]  ;;  %v885_v15 = vld [vmem:[#allocation2 + $0x9] sm:$0xff] }
 0x1b6   : > { %v884_v9 = vld [vmem:[#allocation2 + $0x1] sm:$0xff]  ;;  %v4455_v14 = vpack.c.bf16 %v1806_v13, %v1805_v12  ;;  %v917_v18 = vld [vmem:[#allocation2 + $0x189] sm:$0xff]  ;;  %v846_v20 = vld [vmem:[#allocation2 + $0x198] sm:$0xff] }
 0x1b7   : > { %4452 = vmatprep.subr.bf16.mxu0 %v4451_v7  ;;  %v847_v19 = vld [vmem:[#allocation2 + $0x1a0] sm:$0xff]  ;;  %v1808_v22 = vld [vmem:[#allocation13 + $0x28] sm:$0xff]  ;;  %882 = vst.msk [vmem:[#allocation3 + $0x110] sm:$0xff] %vm443_vm2, %v846_v20 }
 0x1b8   : > { %1197 = vrot.lane.b32.xlu0 %v1113_v26, %s5034_s17  ;;  %1199 = vrot.lane.b32.xlu1 %v1114_v27, %s5034_s17  ;;  %883 = vst.msk [vmem:[#allocation3 + $0x118] sm:$0xff] %vm443_vm2, %v847_v19  ;;  %v1807_v21 = vld [vmem:[#allocation13 + $0x20] sm:$0xff]  ;;  %vm2800_vm2 = vcmask 195712  }
 0x1b9   : > { %4454 = vmatpush3.bf16.msra.mxu0 %v4451_v7  ;;  %v4459_v23 = vpack.c.bf16 %v1808_v22, %v1807_v21  ;;  %v1101_v24 = vld [vmem:[#allocation2 + $0x2] sm:$0xff] }
 0x1ba   : > { %4456 = vmatprep.subr.bf16.mxu0 %v4455_v14 }
 0x1bc   : > { %984 = vrot.lane.b32.xlu0 %v898_v28, %s5033_s23  ;;  %986 = vrot.lane.b32.xlu1 %v899_v29, %s5033_s23  ;;  %v1133_v28 = vld [vmem:[#allocation2 + $0x182] sm:$0xff]  ;;  %v1809_v29 = vld [vmem:[#allocation13 + $0x30] sm:$0xff] }
 0x1bd   : > { %4458 = vmatpush3.bf16.msra.mxu0 %v4455_v14 }
 0x1be   : > { %4460 = vmatprep.subr.bf16.mxu0 %v4459_v23 }
 0x1c0   : > { %1201 = vrot.lane.b32.xlu0 %v1115_v30, %s5034_s17  ;;  %1203 = vrot.lane.b32.xlu1 %v1116_v31, %s5034_s17  ;;  %v1810_v30 = vld [vmem:[#allocation13 + $0x38] sm:$0xff] }
 0x1c1   : > { %4462 = vmatpush3.bf16.msra.mxu0 %v4459_v23  ;;  %v4463_v31 = vpack.c.bf16 %v1810_v30, %v1809_v29 }
 0x1c3   : > { %4464 = vmatprep.subr.bf16.mxu0 %v4463_v31 }
 0x1c4   : > { %988 = vrot.lane.b32.xlu0 %v900_v32, %s5033_s23  ;;  %990 = vrot.lane.b32.xlu1 %v901_v33, %s5033_s23  ;;  %v1102_v32 = vld [vmem:[#allocation2 + $0xa] sm:$0xff] }
 0x1c5   : > { %4466 = vmatpush3.bf16.msra.mxu0 %v4463_v31 }
 0x1c8   : > { %1205 = vrot.lane.b32.xlu0 %v1117_v34, %s5034_s17  ;;  %1207 = vrot.lane.b32.xlu1 %v1118_v35, %s5034_s17 }
 0x1cc   : > { %992 = vrot.lane.b32.xlu0 %v902_v36, %s5033_s23  ;;  %994 = vrot.lane.b32.xlu1 %v903_v37, %s5033_s23  ;;  %v1134_v36 = vld [vmem:[#allocation2 + $0x18a] sm:$0xff]  ;;  %v1811_v37 = vld [vmem:[#allocation13 + $0x40] sm:$0xff] }
 0x1d0   : > { %1209 = vrot.lane.b32.xlu0 %v1119_v38, %s5034_s17  ;;  %1211 = vrot.lane.b32.xlu1 %v1120_v39, %s5034_s17  ;;  %v1812_v38 = vld [vmem:[#allocation13 + $0x48] sm:$0xff] }
 0x1d1   : > { %v4467_v39 = vpack.c.bf16 %v1812_v38, %v1811_v37 }
 0x1d3   : > { %4468 = vmatprep.subr.bf16.mxu0 %v4467_v39 }
 0x1d4   : > { %996 = vrot.lane.b32.xlu0 %v904_v40, %s5033_s23  ;;  %998 = vrot.lane.b32.xlu1 %v905_v41, %s5033_s23  ;;  %v919_v40 = vld [vmem:[#allocation2 + $0x1a1] sm:$0xff]  ;;  %v918_v41 = vld [vmem:[#allocation2 + $0x199] sm:$0xff] }
 0x1d5   : > { %4470 = vmatpush3.bf16.msra.mxu0 %v4467_v39 }
 0x1d8   : > { %1213 = vrot.lane.b32.xlu0 %v1121_v42, %s5034_s17  ;;  %1215 = vrot.lane.b32.xlu1 %v1122_v43, %s5034_s17 }
 0x1dc   : > { %1000 = vrot.lane.b32.xlu0 %v906_v44, %s5033_s23  ;;  %1002 = vrot.lane.b32.xlu1 %v907_v45, %s5033_s23 }
 0x1e0   : > { %1217 = vrot.lane.b32.xlu0 %v1123_v46, %s5034_s17  ;;  %1219 = vrot.lane.b32.xlu1 %v1124_v47, %s5034_s17  ;;  %v1813_v46 = vld [vmem:[#allocation13 + $0x50] sm:$0xff]  ;;  %v1814_v47 = vld [vmem:[#allocation13 + $0x58] sm:$0xff] }
 0x1e4   : > { %1004 = vrot.lane.b32.xlu0 %v908_v48, %s5033_s23  ;;  %1006 = vrot.lane.b32.xlu1 %v909_v49, %s5033_s23  ;;  %v4471_v48 = vpack.c.bf16 %v1814_v47, %v1813_v46  ;;  %v1136_v49 = vld [vmem:[#allocation2 + $0x1a2] sm:$0xff] }
 0x1e6   : > { %4472 = vmatprep.subr.bf16.mxu0 %v4471_v48 }
 0x1e7   : > { %4474 = vmatpush3.bf16.msra.mxu0 %v4471_v48 }
 0x1e8   : > { %1221 = vrot.lane.b32.xlu0 %v1125_v50, %s5034_s17  ;;  %1223 = vrot.lane.b32.xlu1 %v1126_v51, %s5034_s17  ;;  %v1135_v50 = vld [vmem:[#allocation2 + $0x19a] sm:$0xff] }
 0x1ec   : > { %1008 = vrot.lane.b32.xlu0 %v910_v52, %s5033_s23  ;;  %1010 = vrot.lane.b32.xlu1 %v911_v53, %s5033_s23  ;;  %v1815_v53 = vld [vmem:[#allocation13 + $0x60] sm:$0xff] }
 0x1f0   : > { %1225 = vrot.lane.b32.xlu0 %v1127_v54, %s5034_s17  ;;  %1227 = vrot.lane.b32.xlu1 %v1128_v55, %s5034_s17  ;;  %v1816_v54 = vld [vmem:[#allocation13 + $0x68] sm:$0xf] }
 0x1f1   : > { %v4475_v55 = vpack.c.bf16 %v1816_v54, %v1815_v53 }
 0x1f3   : > { %4477 = vmatprep.subr.msk.bf16.mxu0 %vm4476_vm10, %v4475_v55 }
 0x1f4   : > { %1012 = vrot.lane.b32.xlu0 %v912_v56, %s5033_s23  ;;  %1014 = vrot.lane.b32.xlu1 %v913_v57, %s5033_s23 }
 0x1f5   : > { %4480 = vmatpush3.bf16.msk.msra.mxu0 %vm4476_vm10, %v4475_v55 }
 0x1f8   : > { %1229 = vrot.lane.b32.xlu0 %v1129_v58, %s5034_s17  ;;  %1231 = vrot.lane.b32.xlu1 %v1130_v59, %s5034_s17 }
 0x1fc   : > { %1016 = vrot.lane.b32.xlu0 %v914_v61, %s5033_s23  ;;  %1018 = vrot.lane.b32.xlu1 %v915_v62, %s5033_s23 }
 0x1fe   : > { %v963_v1 = vpop.permute.xlu1 %962  ;;  %v961_v2 = vpop.permute.xlu0 %960 }
 0x1ff   : > { %1068 = vst.msk [vmem:[#allocation3 + $0x18] sm:$0xff] %vm1064_vm5, %v963_v1  ;;  %1067 = vst.msk [vmem:[#allocation3 + $0x10] sm:$0xff] %vm1064_vm5, %v961_v2 }
 0x200   : > { %1233 = vrot.lane.b32.xlu0 %v1131_v3, %s5034_s17  ;;  %1235 = vrot.lane.b32.xlu1 %v1132_v4, %s5034_s17 }
 0x202   : > { %v1178_v10 = vpop.permute.xlu1 %1177  ;;  %v965_v11 = vpop.permute.xlu0 %964 }
 0x203   : > { %1284 = vst.msk [vmem:[#allocation3 + $0x10] sm:$0xff] %vm1281_vm6, %v1178_v10 }
 0x204   : > { %1069 = vst.msk [vmem:[#allocation3 + $0x20] sm:$0xff] %vm1064_vm5, %v965_v11  ;;  %1020 = vrot.lane.b32.xlu1 %v916_v8, %s5033_s23  ;;  %956 = vrot.lane.b32.xlu0 %v884_v9, %s5033_s23 }
 0x206   : > { %v967_v16 = vpop.permute.xlu0 %966  ;;  %v1180_v17 = vpop.permute.xlu1 %1179 }
 0x207   : > { %1070 = vst.msk [vmem:[#allocation3 + $0x28] sm:$0xff] %vm1064_vm5, %v967_v16 }
 0x208   : > { %1285 = vst.msk [vmem:[#allocation3 + $0x18] sm:$0xff] %vm1281_vm6, %v1180_v17  ;;  %1022 = vrot.lane.b32.xlu1 %v917_v18, %s5033_s23  ;;  %958 = vrot.lane.b32.xlu0 %v885_v15, %s5033_s23 }
 0x20a   : > { %v1182_v25 = vpop.permute.xlu0 %1181  ;;  %v1184_v26 = vpop.permute.xlu1 %1183  ;;  %v5738_v27 = vld [vmem:[#allocation3 + $0x10] sm:$0xff] }
 0x20b   : > { %1286 = vst.msk [vmem:[#allocation3 + $0x20] sm:$0xff] %vm1281_vm6, %v1182_v25  ;;  %1287 = vst.msk [vmem:[#allocation3 + $0x28] sm:$0xff] %vm1281_vm6, %v1184_v26 }
 0x20c   : > { %1353 = vst.msk [vmem:[#allocation4 + $0x10] sm:$0xff] %vm1350_vm7, %v5738_v27  ;;  %1237 = vrot.lane.b32.xlu1 %v1133_v28, %s5034_s17  ;;  %1173 = vrot.lane.b32.xlu0 %v1101_v24, %s5034_s17 }
 0x20e   : > { %v969_v33 = vpop.permute.xlu0 %968  ;;  %v971_v34 = vpop.permute.xlu1 %970 }
 0x20f   : > { %v1385_v35 = vld [vmem:[#allocation3 + $0x18] sm:$0xff]  ;;  %1071 = vst.msk [vmem:[#allocation3 + $0x30] sm:$0xff] %vm1064_vm5, %v969_v33  ;;  %1072 = vst.msk [vmem:[#allocation3 + $0x38] sm:$0xff] %vm1064_vm5, %v971_v34 }
 0x210   : > { %1354 = vst.msk [vmem:[#allocation4 + $0x18] sm:$0xff] %vm1350_vm7, %v1385_v35  ;;  %1239 = vrot.lane.b32.xlu1 %v1134_v36, %s5034_s17  ;;  %1175 = vrot.lane.b32.xlu0 %v1102_v32, %s5034_s17 }
 0x212   : > { %v1186_v42 = vpop.permute.xlu0 %1185  ;;  %v1188_v43 = vpop.permute.xlu1 %1187  ;;  %v1579_v44 = vld [vmem:[#allocation3 + $0x28] sm:$0xff]  ;;  %v1578_v45 = vld [vmem:[#allocation3 + $0x20] sm:$0xff] }
 0x213   : > { %1288 = vst.msk [vmem:[#allocation3 + $0x30] sm:$0xff] %vm1281_vm6, %v1186_v42  ;;  %1289 = vst.msk [vmem:[#allocation3 + $0x38] sm:$0xff] %vm1281_vm6, %v1188_v43 }
 0x214   : > { %1356 = vst.msk [vmem:[#allocation4 + $0x28] sm:$0xff] %vm1350_vm7, %v1579_v44  ;;  %1355 = vst.msk [vmem:[#allocation4 + $0x20] sm:$0xff] %vm1350_vm7, %v1578_v45  ;;  %1026 = vrot.lane.b32.xlu1 %v919_v40, %s5033_s23  ;;  %1024 = vrot.lane.b32.xlu0 %v918_v41, %s5033_s23  ;;  %s4937_s23 = scalar_lea.vmem %s4936_s12, 8192 }
 0x215   : > { %p4939_p8 = scmp.lt.s32.totalorder %s4937_s23, %s4931_s0 }
 0x216   : > { %v973_v51 = vpop.permute.xlu0 %972  ;;  %v975_v52 = vpop.permute.xlu1 %974 }
 0x217   : > { %1073 = vst.msk [vmem:[#allocation3 + $0x40] sm:$0xff] %vm1064_vm5, %v973_v51  ;;  %1074 = vst.msk [vmem:[#allocation3 + $0x48] sm:$0xff] %vm1064_vm5, %v975_v52  ;;  %p4940_p11 = por %p4939_p8, %p4938_p9 }
 0x218   : > { %1243 = vrot.lane.b32.xlu1 %v1136_v49, %s5034_s17  ;;  %1241 = vrot.lane.b32.xlu0 %v1135_v50, %s5034_s17 }
 0x219   : > { %p4941_p0 = pnand %p4940_p11, %p4934_p7 }
 0x21a   : > { %v1190_v56 = vpop.permute.xlu0 %1189  ;;  %v1192_v57 = vpop.permute.xlu1 %1191  ;;  %v1581_v58 = vld [vmem:[#allocation3 + $0x38] sm:$0xff]  ;;  %v1580_v59 = vld [vmem:[#allocation3 + $0x30] sm:$0xff] }
 0x21b   : > { %1290 = vst.msk [vmem:[#allocation3 + $0x40] sm:$0xff] %vm1281_vm6, %v1190_v56  ;;  %1291 = vst.msk [vmem:[#allocation3 + $0x48] sm:$0xff] %vm1281_vm6, %v1192_v57 }
 0x21c   : > { %1358 = vst.msk [vmem:[#allocation4 + $0x38] sm:$0xff] %vm1350_vm7, %v1581_v58  ;;  %1357 = vst.msk [vmem:[#allocation4 + $0x30] sm:$0xff] %vm1350_vm7, %v1580_v59  ;;  %1450 = vrot.lane.b32.xlu1 %v1385_v35, %s5036_s18  ;;  %1448 = vrot.lane.b32.xlu0 %v5738_v27, %s5036_s18 }
 0x21e   : > { %v977_v60 = vpop.permute.xlu0 %976  ;;  %v979_v61 = vpop.permute.xlu1 %978 }
 0x21f   : > { %1075 = vst.msk [vmem:[#allocation3 + $0x50] sm:$0xff] %vm1064_vm5, %v977_v60  ;;  %1076 = vst.msk [vmem:[#allocation3 + $0x58] sm:$0xff] %vm1064_vm5, %v979_v61 }
 0x220   : > { %1644 = vrot.lane.b32.xlu1 %v1579_v44, %s5037_s22  ;;  %1642 = vrot.lane.b32.xlu0 %v1578_v45, %s5037_s22 }
 0x222   : > { %v1194_v62 = vpop.permute.xlu0 %1193  ;;  %v1196_v63 = vpop.permute.xlu1 %1195  ;;  %v1583_v1 = vld [vmem:[#allocation3 + $0x48] sm:$0xff]  ;;  %v1582_v2 = vld [vmem:[#allocation3 + $0x40] sm:$0xff] }
 0x223   : > { %1292 = vst.msk [vmem:[#allocation3 + $0x50] sm:$0xff] %vm1281_vm6, %v1194_v62  ;;  %1293 = vst.msk [vmem:[#allocation3 + $0x58] sm:$0xff] %vm1281_vm6, %v1196_v63 }
 0x224   : > { %1360 = vst.msk [vmem:[#allocation4 + $0x48] sm:$0xff] %vm1350_vm7, %v1583_v1  ;;  %1359 = vst.msk [vmem:[#allocation4 + $0x40] sm:$0xff] %vm1350_vm7, %v1582_v2  ;;  %1454 = vrot.lane.b32.xlu1 %v1579_v44, %s5036_s18  ;;  %1452 = vrot.lane.b32.xlu0 %v1578_v45, %s5036_s18 }
 0x226   : > { %v981_v3 = vpop.permute.xlu0 %980  ;;  %v983_v4 = vpop.permute.xlu1 %982 }
 0x227   : > { %1077 = vst.msk [vmem:[#allocation3 + $0x60] sm:$0xff] %vm1064_vm5, %v981_v3  ;;  %1078 = vst.msk [vmem:[#allocation3 + $0x68] sm:$0xff] %vm1064_vm5, %v983_v4 }
 0x228   : > { %1648 = vrot.lane.b32.xlu1 %v1581_v58, %s5037_s22  ;;  %1646 = vrot.lane.b32.xlu0 %v1580_v59, %s5037_s22 }
 0x22a   : > { %v1198_v5 = vpop.permute.xlu0 %1197  ;;  %v1200_v6 = vpop.permute.xlu1 %1199  ;;  %v1585_v7 = vld [vmem:[#allocation3 + $0x58] sm:$0xff]  ;;  %v1584_v8 = vld [vmem:[#allocation3 + $0x50] sm:$0xff] }
 0x22b   : > { %1294 = vst.msk [vmem:[#allocation3 + $0x60] sm:$0xff] %vm1281_vm6, %v1198_v5  ;;  %1295 = vst.msk [vmem:[#allocation3 + $0x68] sm:$0xff] %vm1281_vm6, %v1200_v6 }
 0x22c   : > { %1362 = vst.msk [vmem:[#allocation4 + $0x58] sm:$0xff] %vm1350_vm7, %v1585_v7  ;;  %1361 = vst.msk [vmem:[#allocation4 + $0x50] sm:$0xff] %vm1350_vm7, %v1584_v8  ;;  %1458 = vrot.lane.b32.xlu1 %v1581_v58, %s5036_s18  ;;  %1456 = vrot.lane.b32.xlu0 %v1580_v59, %s5036_s18 }
 0x22e   : > { %v985_v9 = vpop.permute.xlu0 %984  ;;  %v987_v10 = vpop.permute.xlu1 %986 }
 0x22f   : > { %1079 = vst.msk [vmem:[#allocation3 + $0x70] sm:$0xff] %vm1064_vm5, %v985_v9  ;;  %1080 = vst.msk [vmem:[#allocation3 + $0x78] sm:$0xff] %vm1064_vm5, %v987_v10 }
 0x230   : > { %1652 = vrot.lane.b32.xlu1 %v1583_v1, %s5037_s22  ;;  %1650 = vrot.lane.b32.xlu0 %v1582_v2, %s5037_s22 }
 0x232   : > { %v1202_v11 = vpop.permute.xlu0 %1201  ;;  %v1204_v12 = vpop.permute.xlu1 %1203  ;;  %v1587_v13 = vld [vmem:[#allocation3 + $0x68] sm:$0xff]  ;;  %v1586_v14 = vld [vmem:[#allocation3 + $0x60] sm:$0xff] }
 0x233   : > { %1296 = vst.msk [vmem:[#allocation3 + $0x70] sm:$0xff] %vm1281_vm6, %v1202_v11  ;;  %1297 = vst.msk [vmem:[#allocation3 + $0x78] sm:$0xff] %vm1281_vm6, %v1204_v12 }
 0x234   : > { %1364 = vst.msk [vmem:[#allocation4 + $0x68] sm:$0xff] %vm1350_vm7, %v1587_v13  ;;  %1363 = vst.msk [vmem:[#allocation4 + $0x60] sm:$0xff] %vm1350_vm7, %v1586_v14  ;;  %1462 = vrot.lane.b32.xlu1 %v1583_v1, %s5036_s18  ;;  %1460 = vrot.lane.b32.xlu0 %v1582_v2, %s5036_s18 }
 0x236   : > { %v989_v15 = vpop.permute.xlu0 %988  ;;  %v991_v16 = vpop.permute.xlu1 %990 }
 0x237   : > { %1081 = vst.msk [vmem:[#allocation3 + $0x80] sm:$0xff] %vm1064_vm5, %v989_v15  ;;  %1082 = vst.msk [vmem:[#allocation3 + $0x88] sm:$0xff] %vm1064_vm5, %v991_v16 }
 0x238   : > { %1656 = vrot.lane.b32.xlu1 %v1585_v7, %s5037_s22  ;;  %1654 = vrot.lane.b32.xlu0 %v1584_v8, %s5037_s22 }
 0x23a   : > { %v1206_v17 = vpop.permute.xlu0 %1205  ;;  %v1208_v18 = vpop.permute.xlu1 %1207  ;;  %v1589_v19 = vld [vmem:[#allocation3 + $0x78] sm:$0xff]  ;;  %v1588_v20 = vld [vmem:[#allocation3 + $0x70] sm:$0xff] }
 0x23b   : > { %1298 = vst.msk [vmem:[#allocation3 + $0x80] sm:$0xff] %vm1281_vm6, %v1206_v17  ;;  %1299 = vst.msk [vmem:[#allocation3 + $0x88] sm:$0xff] %vm1281_vm6, %v1208_v18 }
 0x23c   : > { %1366 = vst.msk [vmem:[#allocation4 + $0x78] sm:$0xff] %vm1350_vm7, %v1589_v19  ;;  %1365 = vst.msk [vmem:[#allocation4 + $0x70] sm:$0xff] %vm1350_vm7, %v1588_v20  ;;  %1466 = vrot.lane.b32.xlu1 %v1585_v7, %s5036_s18  ;;  %1464 = vrot.lane.b32.xlu0 %v1584_v8, %s5036_s18 }
 0x23e   : > { %v993_v21 = vpop.permute.xlu0 %992  ;;  %v995_v22 = vpop.permute.xlu1 %994 }
 0x23f   : > { %1083 = vst.msk [vmem:[#allocation3 + $0x90] sm:$0xff] %vm1064_vm5, %v993_v21  ;;  %1084 = vst.msk [vmem:[#allocation3 + $0x98] sm:$0xff] %vm1064_vm5, %v995_v22 }
 0x240   : > { %1660 = vrot.lane.b32.xlu1 %v1587_v13, %s5037_s22  ;;  %1658 = vrot.lane.b32.xlu0 %v1586_v14, %s5037_s22 }
 0x242   : > { %v1210_v23 = vpop.permute.xlu0 %1209  ;;  %v1212_v24 = vpop.permute.xlu1 %1211  ;;  %v1591_v25 = vld [vmem:[#allocation3 + $0x88] sm:$0xff]  ;;  %v1590_v26 = vld [vmem:[#allocation3 + $0x80] sm:$0xff] }
 0x243   : > { %1300 = vst.msk [vmem:[#allocation3 + $0x90] sm:$0xff] %vm1281_vm6, %v1210_v23  ;;  %1301 = vst.msk [vmem:[#allocation3 + $0x98] sm:$0xff] %vm1281_vm6, %v1212_v24 }
 0x244   : > { %1368 = vst.msk [vmem:[#allocation4 + $0x88] sm:$0xff] %vm1350_vm7, %v1591_v25  ;;  %1367 = vst.msk [vmem:[#allocation4 + $0x80] sm:$0xff] %vm1350_vm7, %v1590_v26  ;;  %1470 = vrot.lane.b32.xlu1 %v1587_v13, %s5036_s18  ;;  %1468 = vrot.lane.b32.xlu0 %v1586_v14, %s5036_s18 }
 0x246   : > { %v997_v27 = vpop.permute.xlu0 %996  ;;  %v999_v28 = vpop.permute.xlu1 %998 }
 0x247   : > { %1085 = vst.msk [vmem:[#allocation3 + $0xa0] sm:$0xff] %vm1064_vm5, %v997_v27  ;;  %1086 = vst.msk [vmem:[#allocation3 + $0xa8] sm:$0xff] %vm1064_vm5, %v999_v28 }
 0x248   : > { %1664 = vrot.lane.b32.xlu1 %v1589_v19, %s5037_s22  ;;  %1662 = vrot.lane.b32.xlu0 %v1588_v20, %s5037_s22 }
 0x24a   : > { %v1214_v29 = vpop.permute.xlu0 %1213  ;;  %v1216_v30 = vpop.permute.xlu1 %1215  ;;  %v1593_v31 = vld [vmem:[#allocation3 + $0x98] sm:$0xff]  ;;  %v1592_v32 = vld [vmem:[#allocation3 + $0x90] sm:$0xff] }
 0x24b   : > { %1302 = vst.msk [vmem:[#allocation3 + $0xa0] sm:$0xff] %vm1281_vm6, %v1214_v29  ;;  %1303 = vst.msk [vmem:[#allocation3 + $0xa8] sm:$0xff] %vm1281_vm6, %v1216_v30 }
 0x24c   : > { %1370 = vst.msk [vmem:[#allocation4 + $0x98] sm:$0xff] %vm1350_vm7, %v1593_v31  ;;  %1369 = vst.msk [vmem:[#allocation4 + $0x90] sm:$0xff] %vm1350_vm7, %v1592_v32  ;;  %1474 = vrot.lane.b32.xlu1 %v1589_v19, %s5036_s18  ;;  %1472 = vrot.lane.b32.xlu0 %v1588_v20, %s5036_s18 }
 0x24e   : > { %v1001_v33 = vpop.permute.xlu0 %1000  ;;  %v1003_v34 = vpop.permute.xlu1 %1002 }
 0x24f   : > { %1087 = vst.msk [vmem:[#allocation3 + $0xb0] sm:$0xff] %vm1064_vm5, %v1001_v33  ;;  %1088 = vst.msk [vmem:[#allocation3 + $0xb8] sm:$0xff] %vm1064_vm5, %v1003_v34  ;;  %v2620_v33 = vld [vmem:[#allocation5 + $0x2] sm:$0xff] }
 0x250   : > { %1668 = vrot.lane.b32.xlu1 %v1591_v25, %s5037_s22  ;;  %1666 = vrot.lane.b32.xlu0 %v1590_v26, %s5037_s22 }
 0x252   : > { %v1218_v35 = vpop.permute.xlu0 %1217  ;;  %v1220_v36 = vpop.permute.xlu1 %1219  ;;  %v1595_v37 = vld [vmem:[#allocation3 + $0xa8] sm:$0xff]  ;;  %v1594_v38 = vld [vmem:[#allocation3 + $0xa0] sm:$0xff] }
 0x253   : > { %1304 = vst.msk [vmem:[#allocation3 + $0xb0] sm:$0xff] %vm1281_vm6, %v1218_v35  ;;  %1305 = vst.msk [vmem:[#allocation3 + $0xb8] sm:$0xff] %vm1281_vm6, %v1220_v36 }
 0x254   : > { %1372 = vst.msk [vmem:[#allocation4 + $0xa8] sm:$0xff] %vm1350_vm7, %v1595_v37  ;;  %1371 = vst.msk [vmem:[#allocation4 + $0xa0] sm:$0xff] %vm1350_vm7, %v1594_v38  ;;  %1478 = vrot.lane.b32.xlu1 %v1591_v25, %s5036_s18  ;;  %1476 = vrot.lane.b32.xlu0 %v1590_v26, %s5036_s18  ;;  %v2403_v26 = vld [vmem:[#allocation5 + $0x1] sm:$0xff] }
 0x256   : > { %v1005_v39 = vpop.permute.xlu0 %1004  ;;  %v1007_v40 = vpop.permute.xlu1 %1006 }
 0x257   : > { %1089 = vst.msk [vmem:[#allocation3 + $0xc0] sm:$0xff] %vm1064_vm5, %v1005_v39  ;;  %1090 = vst.msk [vmem:[#allocation3 + $0xc8] sm:$0xff] %vm1064_vm5, %v1007_v40 }
 0x258   : > { %1672 = vrot.lane.b32.xlu1 %v1593_v31, %s5037_s22  ;;  %1670 = vrot.lane.b32.xlu0 %v1592_v32, %s5037_s22 }
 0x25a   : > { %v1222_v41 = vpop.permute.xlu0 %1221  ;;  %v1224_v42 = vpop.permute.xlu1 %1223  ;;  %v1597_v43 = vld [vmem:[#allocation3 + $0xb8] sm:$0xff]  ;;  %v1596_v44 = vld [vmem:[#allocation3 + $0xb0] sm:$0xff] }
 0x25b   : > { %1306 = vst.msk [vmem:[#allocation3 + $0xc0] sm:$0xff] %vm1281_vm6, %v1222_v41  ;;  %1307 = vst.msk [vmem:[#allocation3 + $0xc8] sm:$0xff] %vm1281_vm6, %v1224_v42 }
 0x25c   : > { %1374 = vst.msk [vmem:[#allocation4 + $0xb8] sm:$0xff] %vm1350_vm7, %v1597_v43  ;;  %1373 = vst.msk [vmem:[#allocation4 + $0xb0] sm:$0xff] %vm1350_vm7, %v1596_v44  ;;  %1482 = vrot.lane.b32.xlu1 %v1593_v31, %s5036_s18  ;;  %1480 = vrot.lane.b32.xlu0 %v1592_v32, %s5036_s18 }
 0x25e   : > { %v1009_v45 = vpop.permute.xlu0 %1008  ;;  %v1011_v46 = vpop.permute.xlu1 %1010 }
 0x25f   : > { %1091 = vst.msk [vmem:[#allocation3 + $0xd0] sm:$0xff] %vm1064_vm5, %v1009_v45  ;;  %1092 = vst.msk [vmem:[#allocation3 + $0xd8] sm:$0xff] %vm1064_vm5, %v1011_v46 }
 0x260   : > { %1676 = vrot.lane.b32.xlu1 %v1595_v37, %s5037_s22  ;;  %1674 = vrot.lane.b32.xlu0 %v1594_v38, %s5037_s22 }
 0x262   : > { %v1226_v47 = vpop.permute.xlu0 %1225  ;;  %v1228_v48 = vpop.permute.xlu1 %1227  ;;  %v1599_v49 = vld [vmem:[#allocation3 + $0xc8] sm:$0xff]  ;;  %v1598_v50 = vld [vmem:[#allocation3 + $0xc0] sm:$0xff] }
 0x263   : > { %1308 = vst.msk [vmem:[#allocation3 + $0xd0] sm:$0xff] %vm1281_vm6, %v1226_v47  ;;  %1309 = vst.msk [vmem:[#allocation3 + $0xd8] sm:$0xff] %vm1281_vm6, %v1228_v48 }
 0x264   : > { %1376 = vst.msk [vmem:[#allocation4 + $0xc8] sm:$0xff] %vm1350_vm7, %v1599_v49  ;;  %1375 = vst.msk [vmem:[#allocation4 + $0xc0] sm:$0xff] %vm1350_vm7, %v1598_v50  ;;  %1486 = vrot.lane.b32.xlu1 %v1595_v37, %s5036_s18  ;;  %1484 = vrot.lane.b32.xlu0 %v1594_v38, %s5036_s18 }
 0x266   : > { %v1013_v51 = vpop.permute.xlu0 %1012  ;;  %v1015_v52 = vpop.permute.xlu1 %1014 }
 0x267   : > { %1093 = vst.msk [vmem:[#allocation3 + $0xe0] sm:$0xff] %vm1064_vm5, %v1013_v51  ;;  %1094 = vst.msk [vmem:[#allocation3 + $0xe8] sm:$0xff] %vm1064_vm5, %v1015_v52 }
 0x268   : > { %1680 = vrot.lane.b32.xlu1 %v1597_v43, %s5037_s22  ;;  %1678 = vrot.lane.b32.xlu0 %v1596_v44, %s5037_s22 }
 0x26a   : > { %v1230_v53 = vpop.permute.xlu0 %1229  ;;  %v1232_v54 = vpop.permute.xlu1 %1231  ;;  %v1601_v55 = vld [vmem:[#allocation3 + $0xd8] sm:$0xff]  ;;  %v1600_v56 = vld [vmem:[#allocation3 + $0xd0] sm:$0xff] }
 0x26b   : > { %1310 = vst.msk [vmem:[#allocation3 + $0xe0] sm:$0xff] %vm1281_vm6, %v1230_v53  ;;  %1311 = vst.msk [vmem:[#allocation3 + $0xe8] sm:$0xff] %vm1281_vm6, %v1232_v54 }
 0x26c   : > { %1378 = vst.msk [vmem:[#allocation4 + $0xd8] sm:$0xff] %vm1350_vm7, %v1601_v55  ;;  %1377 = vst.msk [vmem:[#allocation4 + $0xd0] sm:$0xff] %vm1350_vm7, %v1600_v56  ;;  %1490 = vrot.lane.b32.xlu1 %v1597_v43, %s5036_s18  ;;  %1488 = vrot.lane.b32.xlu0 %v1596_v44, %s5036_s18 }
 0x26e   : > { %v1017_v57 = vpop.permute.xlu0 %1016  ;;  %v1019_v58 = vpop.permute.xlu1 %1018 }
 0x26f   : > { %1095 = vst.msk [vmem:[#allocation3 + $0xf0] sm:$0xff] %vm1064_vm5, %v1017_v57  ;;  %1096 = vst.msk [vmem:[#allocation3 + $0xf8] sm:$0xff] %vm1064_vm5, %v1019_v58 }
 0x270   : > { %1684 = vrot.lane.b32.xlu1 %v1599_v49, %s5037_s22  ;;  %1682 = vrot.lane.b32.xlu0 %v1598_v50, %s5037_s22 }
 0x272   : > { %v1234_v59 = vpop.permute.xlu0 %1233  ;;  %v1236_v60 = vpop.permute.xlu1 %1235  ;;  %v1603_v61 = vld [vmem:[#allocation3 + $0xe8] sm:$0xff]  ;;  %v1602_v62 = vld [vmem:[#allocation3 + $0xe0] sm:$0xff] }
 0x273   : > { %1312 = vst.msk [vmem:[#allocation3 + $0xf0] sm:$0xff] %vm1281_vm6, %v1234_v59  ;;  %1313 = vst.msk [vmem:[#allocation3 + $0xf8] sm:$0xff] %vm1281_vm6, %v1236_v60 }
 0x274   : > { %1380 = vst.msk [vmem:[#allocation4 + $0xe8] sm:$0xff] %vm1350_vm7, %v1603_v61  ;;  %1379 = vst.msk [vmem:[#allocation4 + $0xe0] sm:$0xff] %vm1350_vm7, %v1602_v62  ;;  %1494 = vrot.lane.b32.xlu1 %v1599_v49, %s5036_s18  ;;  %1492 = vrot.lane.b32.xlu0 %v1598_v50, %s5036_s18 }
 0x276   : > { %v1021_v63 = vpop.permute.xlu1 %1020  ;;  %v957_v1 = vpop.permute.xlu0 %956 }
 0x277   : > { %1097 = vst.msk [vmem:[#allocation3 + $0x100] sm:$0xff] %vm1064_vm5, %v1021_v63  ;;  %1065 = vst.msk [vmem:[#allocation3] sm:$0xff] %vm1064_vm5, %v957_v1 }
 0x278   : > { %1688 = vrot.lane.b32.xlu1 %v1601_v55, %s5037_s22  ;;  %1686 = vrot.lane.b32.xlu0 %v1600_v56, %s5037_s22 }
 0x27a   : > { %v1023_v2 = vpop.permute.xlu1 %1022  ;;  %v959_v3 = vpop.permute.xlu0 %958  ;;  %v1605_v4 = vld [vmem:[#allocation3 + $0xf8] sm:$0xff]  ;;  %v1604_v5 = vld [vmem:[#allocation3 + $0xf0] sm:$0xff] }
 0x27b   : > { %1098 = vst.msk [vmem:[#allocation3 + $0x108] sm:$0xff] %vm1064_vm5, %v1023_v2  ;;  %1066 = vst.msk [vmem:[#allocation3 + $0x8] sm:$0xff] %vm1064_vm5, %v959_v3 }
 0x27c   : > { %1382 = vst.msk [vmem:[#allocation4 + $0xf8] sm:$0xff] %vm1350_vm7, %v1605_v4  ;;  %1381 = vst.msk [vmem:[#allocation4 + $0xf0] sm:$0xff] %vm1350_vm7, %v1604_v5  ;;  %1498 = vrot.lane.b32.xlu1 %v1601_v55, %s5036_s18  ;;  %1496 = vrot.lane.b32.xlu0 %v1600_v56, %s5036_s18 }
 0x27e   : > { %v1238_v6 = vpop.permute.xlu1 %1237  ;;  %v1174_v7 = vpop.permute.xlu0 %1173 }
 0x27f   : > { %1314 = vst.msk [vmem:[#allocation3 + $0x100] sm:$0xff] %vm1281_vm6, %v1238_v6  ;;  %1282 = vst.msk [vmem:[#allocation3] sm:$0xff] %vm1281_vm6, %v1174_v7 }
 0x280   : > { %1692 = vrot.lane.b32.xlu1 %v1603_v61, %s5037_s22  ;;  %1690 = vrot.lane.b32.xlu0 %v1602_v62, %s5037_s22 }
 0x282   : > { %v1240_v8 = vpop.permute.xlu1 %1239  ;;  %v1176_v9 = vpop.permute.xlu0 %1175 }
 0x283   : > { %1315 = vst.msk [vmem:[#allocation3 + $0x108] sm:$0xff] %vm1281_vm6, %v1240_v8  ;;  %1283 = vst.msk [vmem:[#allocation3 + $0x8] sm:$0xff] %vm1281_vm6, %v1176_v9 }
 0x284   : > { %1502 = vrot.lane.b32.xlu1 %v1603_v61, %s5036_s18  ;;  %1500 = vrot.lane.b32.xlu0 %v1602_v62, %s5036_s18 }
 0x286   : > { %v1027_v10 = vpop.permute.xlu1 %1026  ;;  %v1025_v11 = vpop.permute.xlu0 %1024  ;;  %v1318_v12 = vld [vmem:[#allocation3] sm:$0xff] }
 0x287   : > { %1100 = vst.msk [vmem:[#allocation3 + $0x118] sm:$0xff] %vm1064_vm5, %v1027_v10  ;;  %1099 = vst.msk [vmem:[#allocation3 + $0x110] sm:$0xff] %vm1064_vm5, %v1025_v11  ;;  %v1606_v19 = vld [vmem:[#allocation3 + $0x100] sm:$0xff]  ;;  %vm3257_vm5 = vcmask 589184  }
 0x288   : > { %1351 = vst.msk [vmem:[#allocation4] sm:$0xff] %vm1350_vm7, %v1318_v12  ;;  %1696 = vrot.lane.b32.xlu1 %v1605_v4, %s5037_s22  ;;  %1694 = vrot.lane.b32.xlu0 %v1604_v5, %s5037_s22 }
 0x28a   : > { %v1244_v13 = vpop.permute.xlu1 %1243  ;;  %v1242_v14 = vpop.permute.xlu0 %1241  ;;  %v1319_v15 = vld [vmem:[#allocation3 + $0x8] sm:$0xff] }
 0x28b   : > { %1317 = vst.msk [vmem:[#allocation3 + $0x118] sm:$0xff] %vm1281_vm6, %v1244_v13  ;;  %1316 = vst.msk [vmem:[#allocation3 + $0x110] sm:$0xff] %vm1281_vm6, %v1242_v14  ;;  %v1607_v18 = vld [vmem:[#allocation3 + $0x108] sm:$0xff]  ;;  %vm3331_vm6 = vcmask 588800  }
 0x28c   : > { %1352 = vst.msk [vmem:[#allocation4 + $0x8] sm:$0xff] %vm1350_vm7, %v1319_v15  ;;  %1506 = vrot.lane.b32.xlu1 %v1605_v4, %s5036_s18  ;;  %1504 = vrot.lane.b32.xlu0 %v1604_v5, %s5036_s18 }
 0x28e   : > { %v1451_v16 = vpop.permute.xlu1 %1450  ;;  %v1449_v17 = vpop.permute.xlu0 %1448 }
 0x28f   : > { %1546 = vst.msk [vmem:[#allocation4 + $0x8] sm:$0xff] %vm1544_vm11, %v1451_v16  ;;  %1545 = vst.msk [vmem:[#allocation4] sm:$0xff] %vm1544_vm11, %v1449_v17 }
 0x290   : > { %1700 = vrot.lane.b32.xlu1 %v1607_v18, %s5037_s22  ;;  %1698 = vrot.lane.b32.xlu0 %v1606_v19, %s5037_s22 }
 0x292   : > { %v1645_v20 = vpop.permute.xlu1 %1644  ;;  %v1643_v21 = vpop.permute.xlu0 %1642  ;;  %v1609_v24 = vld [vmem:[#allocation3 + $0x118] sm:$0xff]  ;;  %v1608_v25 = vld [vmem:[#allocation3 + $0x110] sm:$0xff] }
 0x293   : > { %1740 = vst.msk [vmem:[#allocation4 + $0x8] sm:$0xff] %vm1738_vm12, %v1645_v20  ;;  %1739 = vst.msk [vmem:[#allocation4] sm:$0xff] %vm1738_vm12, %v1643_v21 }
 0x294   : > { %1510 = vrot.lane.b32.xlu1 %v1607_v18, %s5036_s18  ;;  %1508 = vrot.lane.b32.xlu0 %v1606_v19, %s5036_s18 }
 0x296   : > { %v1455_v22 = vpop.permute.xlu1 %1454  ;;  %v1453_v23 = vpop.permute.xlu0 %1452 }
 0x297   : > { %1548 = vst.msk [vmem:[#allocation4 + $0x18] sm:$0xff] %vm1544_vm11, %v1455_v22  ;;  %1547 = vst.msk [vmem:[#allocation4 + $0x10] sm:$0xff] %vm1544_vm11, %v1453_v23 }
 0x298   : > { %1704 = vrot.lane.b32.xlu1 %v1609_v24, %s5037_s22  ;;  %1702 = vrot.lane.b32.xlu0 %v1608_v25, %s5037_s22 }
 0x29a   : > { %v1649_v27 = vpop.permute.xlu1 %1648  ;;  %v1647_v28 = vpop.permute.xlu0 %1646  ;;  %v1771_v29 = vld [vmem:[#allocation4] sm:$0xff]  ;;  %v1772_v30 = vld [vmem:[#allocation4 + $0x8] sm:$0xff] }
 0x29b   : > { %1742 = vst.msk [vmem:[#allocation4 + $0x18] sm:$0xff] %vm1738_vm12, %v1649_v27  ;;  %1741 = vst.msk [vmem:[#allocation4 + $0x10] sm:$0xff] %vm1738_vm12, %v1647_v28  ;;  %4337 = vmatprep.mubr.msk.f32.mxu0 %vm1817_vm15, %v1771_v29 }
 0x29c   : > { %4338 = vmatmul.mubr.msk.f32.vlgmr.msra.gmra.mrb[0].mxu0 %vm1817_vm15, %v1772_v30  ;;  %2475 = vrot.lane.b32.xlu0 %v2403_v26, %s5032_s13 }
 0x29e   : > { %v1459_v31 = vpop.permute.xlu1 %1458  ;;  %v1457_v32 = vpop.permute.xlu0 %1456 }
 0x29f   : > { %1550 = vst.msk [vmem:[#allocation4 + $0x28] sm:$0xff] %vm1544_vm11, %v1459_v31  ;;  %1549 = vst.msk [vmem:[#allocation4 + $0x20] sm:$0xff] %vm1544_vm11, %v1457_v32 }
 0x2a0   : > { %2477 = vrot.lane.b32.xlu0 %v2404_v0, %s5032_s13 }
 0x2a2   : > { %v1653_v34 = vpop.permute.xlu1 %1652  ;;  %v1651_v35 = vpop.permute.xlu0 %1650  ;;  %v1773_v36 = vld [vmem:[#allocation4 + $0x10] sm:$0xff]  ;;  %v1774_v37 = vld [vmem:[#allocation4 + $0x18] sm:$0xff] }
 0x2a3   : > { %1744 = vst.msk [vmem:[#allocation4 + $0x28] sm:$0xff] %vm1738_vm12, %v1653_v34  ;;  %1743 = vst.msk [vmem:[#allocation4 + $0x20] sm:$0xff] %vm1738_vm12, %v1651_v35  ;;  %4340 = vmatprep.mubr.msk.f32.mxu0 %vm1817_vm15, %v1773_v36  ;;  %v2621_v34 = vld [vmem:[#allocation5 + $0xa] sm:$0xff] }
 0x2a4   : > { %4341 = vmatmul.mubr.msk.f32.gmra.mrb[2].mxu0 %vm1817_vm15, %v1774_v37  ;;  %2692 = vrot.lane.b32.xlu0 %v2620_v33, %s5038_s14  ;;  %v2438_v37 = vld [vmem:[#allocation5 + $0x1a1] sm:$0xff] }
 0x2a5   : > { %2545 = vrot.lane.b32.xlu1 %v2438_v37, %s5032_s13 }
 0x2a6   : > { %v1463_v38 = vpop.permute.xlu1 %1462  ;;  %v1461_v39 = vpop.permute.xlu0 %1460 }
 0x2a7   : > { %1552 = vst.msk [vmem:[#allocation4 + $0x38] sm:$0xff] %vm1544_vm11, %v1463_v38  ;;  %1551 = vst.msk [vmem:[#allocation4 + $0x30] sm:$0xff] %vm1544_vm11, %v1461_v39  ;;  %v2437_v38 = vld [vmem:[#allocation5 + $0x199] sm:$0xff] }
 0x2a8   : > { %2694 = vrot.lane.b32.xlu0 %v2621_v34, %s5038_s14 }
 0x2aa   : > { %v1657_v40 = vpop.permute.xlu1 %1656  ;;  %v1655_v41 = vpop.permute.xlu0 %1654  ;;  %v1775_v42 = vld [vmem:[#allocation4 + $0x20] sm:$0xff]  ;;  %v1776_v43 = vld [vmem:[#allocation4 + $0x28] sm:$0xff] }
 0x2ab   : > { %1746 = vst.msk [vmem:[#allocation4 + $0x38] sm:$0xff] %vm1738_vm12, %v1657_v40  ;;  %1745 = vst.msk [vmem:[#allocation4 + $0x30] sm:$0xff] %vm1738_vm12, %v1655_v41  ;;  %4343 = vmatprep.mubr.msk.f32.mxu0 %vm1817_vm15, %v1775_v42 }
 0x2ac   : > { %4344 = vmatmul.mubr.msk.f32.gmra.mrb[4].mxu0 %vm1817_vm15, %v1776_v43  ;;  %2543 = vrot.lane.b32.xlu0 %v2437_v38, %s5032_s13  ;;  %v2655_v43 = vld [vmem:[#allocation5 + $0x1a2] sm:$0xff] }
 0x2ad   : > { %2762 = vrot.lane.b32.xlu1 %v2655_v43, %s5038_s14 }
 0x2ae   : > { %v1467_v44 = vpop.permute.xlu1 %1466  ;;  %v1465_v45 = vpop.permute.xlu0 %1464 }
 0x2af   : > { %1554 = vst.msk [vmem:[#allocation4 + $0x48] sm:$0xff] %vm1544_vm11, %v1467_v44  ;;  %1553 = vst.msk [vmem:[#allocation4 + $0x40] sm:$0xff] %vm1544_vm11, %v1465_v45  ;;  %v2654_v44 = vld [vmem:[#allocation5 + $0x19a] sm:$0xff] }
 0x2b0   : > { %2760 = vrot.lane.b32.xlu0 %v2654_v44, %s5038_s14 }
 0x2b2   : > { %v1661_v46 = vpop.permute.xlu1 %1660  ;;  %v1659_v47 = vpop.permute.xlu0 %1658  ;;  %v1777_v48 = vld [vmem:[#allocation4 + $0x30] sm:$0xff]  ;;  %v1778_v49 = vld [vmem:[#allocation4 + $0x38] sm:$0xff] }
 0x2b3   : > { %1748 = vst.msk [vmem:[#allocation4 + $0x48] sm:$0xff] %vm1738_vm12, %v1661_v46  ;;  %1747 = vst.msk [vmem:[#allocation4 + $0x40] sm:$0xff] %vm1738_vm12, %v1659_v47  ;;  %4346 = vmatprep.mubr.msk.f32.mxu0 %vm1817_vm15, %v1777_v48 }
 0x2b4   : > { %4347 = vmatmul.mubr.msk.f32.gmra.mrb[6].mxu0 %vm1817_vm15, %v1778_v49 }
 0x2b6   : > { %v1471_v50 = vpop.permute.xlu1 %1470  ;;  %v1469_v51 = vpop.permute.xlu0 %1468 }
 0x2b7   : > { %1556 = vst.msk [vmem:[#allocation4 + $0x58] sm:$0xff] %vm1544_vm11, %v1471_v50  ;;  %1555 = vst.msk [vmem:[#allocation4 + $0x50] sm:$0xff] %vm1544_vm11, %v1469_v51 }
 0x2ba   : > { %v1665_v52 = vpop.permute.xlu1 %1664  ;;  %v1663_v53 = vpop.permute.xlu0 %1662  ;;  %v1779_v54 = vld [vmem:[#allocation4 + $0x40] sm:$0xff]  ;;  %v1780_v55 = vld [vmem:[#allocation4 + $0x48] sm:$0xff] }
 0x2bb   : > { %1750 = vst.msk [vmem:[#allocation4 + $0x58] sm:$0xff] %vm1738_vm12, %v1665_v52  ;;  %1749 = vst.msk [vmem:[#allocation4 + $0x50] sm:$0xff] %vm1738_vm12, %v1663_v53  ;;  %4349 = vmatprep.mubr.msk.f32.mxu0 %vm1817_vm15, %v1779_v54 }
 0x2bc   : > { %4350 = vmatmul.mubr.msk.f32.gmra.mrb[8].mxu0 %vm1817_vm15, %v1780_v55 }
 0x2be   : > { %v1475_v56 = vpop.permute.xlu1 %1474  ;;  %v1473_v57 = vpop.permute.xlu0 %1472 }
 0x2bf   : > { %1558 = vst.msk [vmem:[#allocation4 + $0x68] sm:$0xff] %vm1544_vm11, %v1475_v56  ;;  %1557 = vst.msk [vmem:[#allocation4 + $0x60] sm:$0xff] %vm1544_vm11, %v1473_v57 }
 0x2c2   : > { %v1669_v58 = vpop.permute.xlu1 %1668  ;;  %v1667_v59 = vpop.permute.xlu0 %1666  ;;  %v1781_v60 = vld [vmem:[#allocation4 + $0x50] sm:$0xff]  ;;  %v1782_v61 = vld [vmem:[#allocation4 + $0x58] sm:$0xff] }
 0x2c3   : > { %1752 = vst.msk [vmem:[#allocation4 + $0x68] sm:$0xff] %vm1738_vm12, %v1669_v58  ;;  %1751 = vst.msk [vmem:[#allocation4 + $0x60] sm:$0xff] %vm1738_vm12, %v1667_v59  ;;  %4352 = vmatprep.mubr.msk.f32.mxu0 %vm1817_vm15, %v1781_v60  ;;  %v2331_v60 = vld [vmem:[#allocation5] sm:$0xff] }
 0x2c4   : > { %4353 = vmatmul.mubr.msk.f32.gmra.mrb[10].mxu0 %vm1817_vm15, %v1782_v61  ;;  %v2332_v61 = vld [vmem:[#allocation5 + $0x8] sm:$0xff]  ;;  %2367 = vst.msk [vmem:[#allocation6] sm:$0xff] %vm554_vm0, %v2331_v60 }
 0x2c5   : > { %2368 = vst.msk [vmem:[#allocation6 + $0x8] sm:$0xff] %vm554_vm0, %v2332_v61 }
 0x2c6   : > { %v1479_v62 = vpop.permute.xlu1 %1478  ;;  %v1477_v63 = vpop.permute.xlu0 %1476 }
 0x2c7   : > { %1560 = vst.msk [vmem:[#allocation4 + $0x78] sm:$0xff] %vm1544_vm11, %v1479_v62  ;;  %1559 = vst.msk [vmem:[#allocation4 + $0x70] sm:$0xff] %vm1544_vm11, %v1477_v63 }
 0x2ca   : > { %v1673_v1 = vpop.permute.xlu1 %1672  ;;  %v1671_v2 = vpop.permute.xlu0 %1670  ;;  %v1783_v3 = vld [vmem:[#allocation4 + $0x60] sm:$0xff]  ;;  %v1784_v4 = vld [vmem:[#allocation4 + $0x68] sm:$0xff] }
 0x2cb   : > { %1754 = vst.msk [vmem:[#allocation4 + $0x78] sm:$0xff] %vm1738_vm12, %v1673_v1  ;;  %1753 = vst.msk [vmem:[#allocation4 + $0x70] sm:$0xff] %vm1738_vm12, %v1671_v2  ;;  %4355 = vmatprep.mubr.msk.f32.mxu0 %vm1817_vm15, %v1783_v3  ;;  %v2366_v2 = vld [vmem:[#allocation5 + $0x1a0] sm:$0xff] }
 0x2cc   : > { %4356 = vmatmul.mubr.msk.f32.gmra.mrb[12].mxu0 %vm1817_vm15, %v1784_v4  ;;  %2402 = vst.msk [vmem:[#allocation6 + $0x118] sm:$0xff] %vm554_vm0, %v2366_v2 }
 0x2ce   : > { %v1483_v5 = vpop.permute.xlu1 %1482  ;;  %v1481_v6 = vpop.permute.xlu0 %1480 }
 0x2cf   : > { %1562 = vst.msk [vmem:[#allocation4 + $0x88] sm:$0xff] %vm1544_vm11, %v1483_v5  ;;  %1561 = vst.msk [vmem:[#allocation4 + $0x80] sm:$0xff] %vm1544_vm11, %v1481_v6  ;;  %v6100_v5 = vld [vmem:[#allocation14] ss:$0 sm:$0xff] }
 0x2d2   : > { %v1677_v7 = vpop.permute.xlu1 %1676  ;;  %v1675_v8 = vpop.permute.xlu0 %1674  ;;  %v1785_v9 = vld [vmem:[#allocation4 + $0x70] sm:$0xff]  ;;  %v1786_v10 = vld [vmem:[#allocation4 + $0x78] sm:$0xff] }
 0x2d3   : > { %1756 = vst.msk [vmem:[#allocation4 + $0x88] sm:$0xff] %vm1738_vm12, %v1677_v7  ;;  %1755 = vst.msk [vmem:[#allocation4 + $0x80] sm:$0xff] %vm1738_vm12, %v1675_v8  ;;  %4358 = vmatprep.mubr.msk.f32.mxu0 %vm1817_vm15, %v1785_v9  ;;  %v6102_v7 = vld [vmem:[#allocation16] ss:$0 sm:$0xff]  ;;  %v2365_v8 = vld [vmem:[#allocation5 + $0x198] sm:$0xff] }
 0x2d4   : > { %4359 = vmatmul.mubr.msk.f32.gmra.mrb[14].mxu0 %vm1817_vm15, %v1786_v10  ;;  %2401 = vst.msk [vmem:[#allocation6 + $0x110] sm:$0xff] %vm554_vm0, %v2365_v8 }
 0x2d6   : > { %v1487_v11 = vpop.permute.xlu1 %1486  ;;  %v1485_v12 = vpop.permute.xlu0 %1484 }
 0x2d7   : > { %1564 = vst.msk [vmem:[#allocation4 + $0x98] sm:$0xff] %vm1544_vm11, %v1487_v11  ;;  %1563 = vst.msk [vmem:[#allocation4 + $0x90] sm:$0xff] %vm1544_vm11, %v1485_v12 }
 0x2da   : > { %v1681_v13 = vpop.permute.xlu1 %1680  ;;  %v1679_v14 = vpop.permute.xlu0 %1678  ;;  %v1787_v15 = vld [vmem:[#allocation4 + $0x80] sm:$0xff]  ;;  %v1788_v16 = vld [vmem:[#allocation4 + $0x88] sm:$0xff] }
 0x2db   : > { %1758 = vst.msk [vmem:[#allocation4 + $0x98] sm:$0xff] %vm1738_vm12, %v1681_v13  ;;  %1757 = vst.msk [vmem:[#allocation4 + $0x90] sm:$0xff] %vm1738_vm12, %v1679_v14  ;;  %4361 = vmatprep.mubr.msk.f32.mxu0 %vm1817_vm15, %v1787_v15 }
 0x2dc   : > { %4362 = vmatmul.mubr.msk.f32.gmra.mrb[16].mxu0 %vm1817_vm15, %v1788_v16 }
 0x2de   : > { %v1491_v17 = vpop.permute.xlu1 %1490  ;;  %v1489_v18 = vpop.permute.xlu0 %1488 }
 0x2df   : > { %1566 = vst.msk [vmem:[#allocation4 + $0xa8] sm:$0xff] %vm1544_vm11, %v1491_v17  ;;  %1565 = vst.msk [vmem:[#allocation4 + $0xa0] sm:$0xff] %vm1544_vm11, %v1489_v18 }
 0x2e2   : > { %v1685_v19 = vpop.permute.xlu1 %1684  ;;  %v1683_v20 = vpop.permute.xlu0 %1682  ;;  %v1789_v21 = vld [vmem:[#allocation4 + $0x90] sm:$0xff]  ;;  %v1790_v22 = vld [vmem:[#allocation4 + $0x98] sm:$0xff] }
 0x2e3   : > { %1760 = vst.msk [vmem:[#allocation4 + $0xa8] sm:$0xff] %vm1738_vm12, %v1685_v19  ;;  %1759 = vst.msk [vmem:[#allocation4 + $0xa0] sm:$0xff] %vm1738_vm12, %v1683_v20  ;;  %4364 = vmatprep.mubr.msk.f32.mxu0 %vm1817_vm15, %v1789_v21 }
 0x2e4   : > { %4365 = vmatmul.mubr.msk.f32.gmra.mrb[18].mxu0 %vm1817_vm15, %v1790_v22 }
 0x2e6   : > { %v1495_v23 = vpop.permute.xlu1 %1494  ;;  %v1493_v24 = vpop.permute.xlu0 %1492 }
 0x2e7   : > { %1568 = vst.msk [vmem:[#allocation4 + $0xb8] sm:$0xff] %vm1544_vm11, %v1495_v23  ;;  %1567 = vst.msk [vmem:[#allocation4 + $0xb0] sm:$0xff] %vm1544_vm11, %v1493_v24 }
 0x2ea   : > { %v1689_v25 = vpop.permute.xlu1 %1688  ;;  %v1687_v26 = vpop.permute.xlu0 %1686  ;;  %v1791_v27 = vld [vmem:[#allocation4 + $0xa0] sm:$0xff]  ;;  %v1792_v28 = vld [vmem:[#allocation4 + $0xa8] sm:$0xff] }
 0x2eb   : > { %1762 = vst.msk [vmem:[#allocation4 + $0xb8] sm:$0xff] %vm1738_vm12, %v1689_v25  ;;  %1761 = vst.msk [vmem:[#allocation4 + $0xb0] sm:$0xff] %vm1738_vm12, %v1687_v26  ;;  %4367 = vmatprep.mubr.msk.f32.mxu0 %vm1817_vm15, %v1791_v27 }
 0x2ec   : > { %4368 = vmatmul.mubr.msk.f32.gmra.mrb[20].mxu0 %vm1817_vm15, %v1792_v28 }
 0x2ee   : > { %v1499_v29 = vpop.permute.xlu1 %1498  ;;  %v1497_v30 = vpop.permute.xlu0 %1496 }
 0x2ef   : > { %1570 = vst.msk [vmem:[#allocation4 + $0xc8] sm:$0xff] %vm1544_vm11, %v1499_v29  ;;  %1569 = vst.msk [vmem:[#allocation4 + $0xc0] sm:$0xff] %vm1544_vm11, %v1497_v30 }
 0x2f2   : > { %v1693_v0 = vpop.permute.xlu1 %1692  ;;  %v1691_v31 = vpop.permute.xlu0 %1690  ;;  %v1793_v32 = vld [vmem:[#allocation4 + $0xb0] sm:$0xff]  ;;  %v1794_v33 = vld [vmem:[#allocation4 + $0xb8] sm:$0xff] }
 0x2f3   : > { %1764 = vst.msk [vmem:[#allocation4 + $0xc8] sm:$0xff] %vm1738_vm12, %v1693_v0  ;;  %1763 = vst.msk [vmem:[#allocation4 + $0xc0] sm:$0xff] %vm1738_vm12, %v1691_v31  ;;  %4370 = vmatprep.mubr.msk.f32.mxu0 %vm1817_vm15, %v1793_v32 }
 0x2f4   : > { %4371 = vmatmul.mubr.msk.f32.gmra.mrb[22].mxu0 %vm1817_vm15, %v1794_v33 }
 0x2f6   : > { %v1503_v35 = vpop.permute.xlu1 %1502  ;;  %v1501_v36 = vpop.permute.xlu0 %1500 }
 0x2f7   : > { %1572 = vst.msk [vmem:[#allocation4 + $0xd8] sm:$0xff] %vm1544_vm11, %v1503_v35  ;;  %1571 = vst.msk [vmem:[#allocation4 + $0xd0] sm:$0xff] %vm1544_vm11, %v1501_v36 }
 0x2fa   : > { %v1697_v39 = vpop.permute.xlu1 %1696  ;;  %v1695_v40 = vpop.permute.xlu0 %1694  ;;  %v1795_v41 = vld [vmem:[#allocation4 + $0xc0] sm:$0xff]  ;;  %v1796_v42 = vld [vmem:[#allocation4 + $0xc8] sm:$0xff] }
 0x2fb   : > { %1766 = vst.msk [vmem:[#allocation4 + $0xd8] sm:$0xff] %vm1738_vm12, %v1697_v39  ;;  %1765 = vst.msk [vmem:[#allocation4 + $0xd0] sm:$0xff] %vm1738_vm12, %v1695_v40  ;;  %4373 = vmatprep.mubr.msk.f32.mxu0 %vm1817_vm15, %v1795_v41 }
 0x2fc   : > { %4374 = vmatmul.mubr.msk.f32.gmra.mrb[24].mxu0 %vm1817_vm15, %v1796_v42 }
 0x2fe   : > { %v1507_v45 = vpop.permute.xlu1 %1506  ;;  %v1505_v46 = vpop.permute.xlu0 %1504 }
 0x2ff   : > { %1574 = vst.msk [vmem:[#allocation4 + $0xe8] sm:$0xff] %vm1544_vm11, %v1507_v45  ;;  %1573 = vst.msk [vmem:[#allocation4 + $0xe0] sm:$0xff] %vm1544_vm11, %v1505_v46 }
 0x302   : > { %v1701_v47 = vpop.permute.xlu1 %1700  ;;  %v1699_v48 = vpop.permute.xlu0 %1698  ;;  %v1797_v49 = vld [vmem:[#allocation4 + $0xd0] sm:$0xff]  ;;  %v1798_v50 = vld [vmem:[#allocation4 + $0xd8] sm:$0xff] }
 0x303   : > { %1768 = vst.msk [vmem:[#allocation4 + $0xe8] sm:$0xff] %vm1738_vm12, %v1701_v47  ;;  %1767 = vst.msk [vmem:[#allocation4 + $0xe0] sm:$0xff] %vm1738_vm12, %v1699_v48  ;;  %4376 = vmatprep.mubr.msk.f32.mxu0 %vm1817_vm15, %v1797_v49 }
 0x304   : > { %4377 = vmatmul.mubr.msk.f32.gmra.mrb[26].mxu0 %vm1817_vm15, %v1798_v50 }
 0x306   : > { %v1511_v51 = vpop.permute.xlu1 %1510  ;;  %v1509_v52 = vpop.permute.xlu0 %1508 }
 0x307   : > { %1576 = vst.msk [vmem:[#allocation4 + $0xf8] sm:$0xff] %vm1544_vm11, %v1511_v51  ;;  %1575 = vst.msk [vmem:[#allocation4 + $0xf0] sm:$0xff] %vm1544_vm11, %v1509_v52 }
 0x30a   : > { %v1705_v53 = vpop.permute.xlu1 %1704  ;;  %v1703_v54 = vpop.permute.xlu0 %1702  ;;  %v1799_v55 = vld [vmem:[#allocation4 + $0xe0] sm:$0xff]  ;;  %v1800_v56 = vld [vmem:[#allocation4 + $0xe8] sm:$0xff] }
 0x30b   : > { %1770 = vst.msk [vmem:[#allocation4 + $0xf8] sm:$0xff] %vm1738_vm12, %v1705_v53  ;;  %1769 = vst.msk [vmem:[#allocation4 + $0xf0] sm:$0xff] %vm1738_vm12, %v1703_v54  ;;  %4379 = vmatprep.mubr.msk.f32.mxu0 %vm1817_vm15, %v1799_v55 }
 0x30c   : > { %4380 = vmatmul.mubr.msk.f32.gmra.mrb[28].mxu0 %vm1817_vm15, %v1800_v56 }
 0x30e   : > { %v2476_v59 = vpop.permute.xlu0 %2475 }
 0x30f   : > { %2584 = vst.msk [vmem:[#allocation6] sm:$0xff] %vm2583_vm1, %v2476_v59 }
 0x312   : > { %v1801_v57 = vld [vmem:[#allocation4 + $0xf0] sm:$0xff]  ;;  %v1802_v58 = vld [vmem:[#allocation4 + $0xf8] sm:$0xff]  ;;  %v2478_v62 = vpop.permute.xlu0 %2477 }
 0x313   : > { %4382 = vmatprep.mubr.msk.f32.mxu0 %vm1817_vm15, %v1801_v57  ;;  %2585 = vst.msk [vmem:[#allocation6 + $0x8] sm:$0xff] %vm2583_vm1, %v2478_v62 }
 0x314   : > { %4383 = vmatmul.mubr.msk.f32.gmra.mrb[30].mxu0 %vm1817_vm15, %v1802_v58 }
 0x316   : > { %v2693_v63 = vpop.permute.xlu0 %2692 }
 0x317   : > { %2801 = vst.msk [vmem:[#allocation6] sm:$0xff] %vm2800_vm2, %v2693_v63  ;;  %v2546_v3 = vpop.permute.xlu1 %2545 }
 0x318   : > { %2619 = vst.msk [vmem:[#allocation6 + $0x118] sm:$0xff] %vm2583_vm1, %v2546_v3 }
 0x31a   : > { %v2695_v1 = vpop.permute.xlu0 %2694 }
 0x31b   : > { %2802 = vst.msk [vmem:[#allocation6 + $0x8] sm:$0xff] %vm2800_vm2, %v2695_v1 }
 0x31e   : > { %v2544_v4 = vpop.permute.xlu0 %2543  ;;  %v2837_v16 = vld [vmem:[#allocation6] sm:$0xff] }
 0x31f   : > { %v2763_v9 = vpop.permute.xlu1 %2762  ;;  %2618 = vst.msk [vmem:[#allocation6 + $0x110] sm:$0xff] %vm2583_vm1, %v2544_v4 }
 0x320   : > { %2836 = vst.msk [vmem:[#allocation6 + $0x118] sm:$0xff] %vm2800_vm2, %v2763_v9 }
 0x321   : > { %2870 = vst.msk [vmem:[#allocation7] sm:$0xff] %vm2869_vm3, %v2837_v16 }
 0x322   : > { %v2761_v13 = vpop.permute.xlu0 %2760  ;;  %v2838_v20 = vld [vmem:[#allocation6 + $0x8] sm:$0xff] }
 0x323   : > { %2835 = vst.msk [vmem:[#allocation6 + $0x110] sm:$0xff] %vm2800_vm2, %v2761_v13 }
 0x324   : > { %2871 = vst.msk [vmem:[#allocation7 + $0x8] sm:$0xff] %vm2869_vm3, %v2838_v20 }
 0x36f   : > { %v4339_v6 = vpop.f32.mrb[0].mxu0 }
 0x370   : > { %v2151_v10 = vmul.f32 %v4339_v6, %v6100_v5  ;;  %v1984_v11 = vpop.f32.mrb[1].mxu0 }
 0x371   : > { %v2150_v12 = vmul.f32 %v6100_v5, %v1984_v11 }
 0x372   : > { %v2190_v14 = vadd.f32 %v6102_v7, %v2151_v10 }
 0x373   : > { %v2189_v15 = vadd.f32 %v6102_v7, %v2150_v12 }
 0x374   : > { %v2222_v17 = vmax.f32 %v2190_v14, 0.0 }
 0x375   : > { %v2221_v18 = vmax.f32 %v2189_v15, 0.0 }
 0x376   : > { %2300 = vst.msk [vmem:[#allocation5 + $0x21] sm:$0xff] %vm554_vm0, %v2222_v17 }
 0x377   : > { %2299 = vst.msk [vmem:[#allocation5 + $0x19] sm:$0xff] %vm554_vm0, %v2221_v18  ;;  %v4342_v19 = vpop.f32.mrb[2].mxu0 }
 0x378   : > { %v2153_v21 = vmul.f32 %v4342_v19, %v6100_v5  ;;  %v1994_v22 = vpop.f32.mrb[3].mxu0 }
 0x379   : > { %v2152_v23 = vmul.f32 %v6100_v5, %v1994_v22 }
 0x37a   : > { %v2192_v24 = vadd.f32 %v6102_v7, %v2153_v21 }
 0x37b   : > { %v2191_v25 = vadd.f32 %v6102_v7, %v2152_v23 }
 0x37c   : > { %v2224_v26 = vmax.f32 %v2192_v24, 0.0 }
 0x37d   : > { %v2223_v27 = vmax.f32 %v2191_v25, 0.0  ;;  %v2406_v28 = vld [vmem:[#allocation5 + $0x21] sm:$0xff] }
 0x37e   : > { %2302 = vst.msk [vmem:[#allocation5 + $0x39] sm:$0xff] %vm554_vm0, %v2224_v26  ;;  %2481 = vrot.lane.b32.xlu1 %v2406_v28, %s5032_s13  ;;  %v2405_v29 = vld [vmem:[#allocation5 + $0x19] sm:$0xff]  ;;  %v2623_v35 = vld [vmem:[#allocation5 + $0x22] sm:$0xff] }
 0x37f   : > { %v2334_v30 = vld [vmem:[#allocation5 + $0x20] sm:$0xff]  ;;  %2301 = vst.msk [vmem:[#allocation5 + $0x31] sm:$0xff] %vm554_vm0, %v2223_v27  ;;  %2479 = vrot.lane.b32.xlu0 %v2405_v29, %s5032_s13  ;;  %v4345_v0 = vpop.f32.mrb[4].mxu0  ;;  %v2333_v31 = vld [vmem:[#allocation5 + $0x18] sm:$0xff] }
 0x380   : > { %2370 = vst.msk [vmem:[#allocation6 + $0x18] sm:$0xff] %vm554_vm0, %v2334_v30  ;;  %v2155_v32 = vmul.f32 %v4345_v0, %v6100_v5  ;;  %v2004_v33 = vpop.f32.mrb[5].mxu0  ;;  %2369 = vst.msk [vmem:[#allocation6 + $0x10] sm:$0xff] %vm554_vm0, %v2333_v31  ;;  %v2622_v40 = vld [vmem:[#allocation5 + $0x1a] sm:$0xff] }
 0x381   : > { %v2154_v34 = vmul.f32 %v6100_v5, %v2004_v33 }
 0x382   : > { %v2194_v36 = vadd.f32 %v6102_v7, %v2155_v32  ;;  %2698 = vrot.lane.b32.xlu1 %v2623_v35, %s5038_s14 }
 0x383   : > { %v2193_v37 = vadd.f32 %v6102_v7, %v2154_v34 }
 0x384   : > { %v2226_v38 = vmax.f32 %v2194_v36, 0.0 }
 0x385   : > { %v2225_v39 = vmax.f32 %v2193_v37, 0.0  ;;  %v2408_v41 = vld [vmem:[#allocation5 + $0x39] sm:$0xff] }
 0x386   : > { %2304 = vst.msk [vmem:[#allocation5 + $0x51] sm:$0xff] %vm554_vm0, %v2226_v38  ;;  %2696 = vrot.lane.b32.xlu1 %v2622_v40, %s5038_s14  ;;  %2485 = vrot.lane.b32.xlu0 %v2408_v41, %s5032_s13  ;;  %v2336_v42 = vld [vmem:[#allocation5 + $0x38] sm:$0xff]  ;;  %v2335_v44 = vld [vmem:[#allocation5 + $0x30] sm:$0xff] }
 0x387   : > { %2303 = vst.msk [vmem:[#allocation5 + $0x49] sm:$0xff] %vm554_vm0, %v2225_v39  ;;  %v4348_v43 = vpop.f32.mrb[6].mxu0  ;;  %2372 = vst.msk [vmem:[#allocation6 + $0x28] sm:$0xff] %vm554_vm0, %v2336_v42  ;;  %v2625_v48 = vld [vmem:[#allocation5 + $0x3a] sm:$0xff]  ;;  %v2407_v49 = vld [vmem:[#allocation5 + $0x31] sm:$0xff] }
 0x388   : > { %v2157_v45 = vmul.f32 %v4348_v43, %v6100_v5  ;;  %v2014_v46 = vpop.f32.mrb[7].mxu0  ;;  %2371 = vst.msk [vmem:[#allocation6 + $0x20] sm:$0xff] %vm554_vm0, %v2335_v44  ;;  %v2624_v54 = vld [vmem:[#allocation5 + $0x32] sm:$0xff] }
 0x389   : > { %v2156_v47 = vmul.f32 %v6100_v5, %v2014_v46 }
 0x38a   : > { %v2196_v50 = vadd.f32 %v6102_v7, %v2157_v45  ;;  %2702 = vrot.lane.b32.xlu1 %v2625_v48, %s5038_s14  ;;  %2483 = vrot.lane.b32.xlu0 %v2407_v49, %s5032_s13 }
 0x38b   : > { %v2195_v51 = vadd.f32 %v6102_v7, %v2156_v47 }
 0x38c   : > { %v2228_v52 = vmax.f32 %v2196_v50, 0.0 }
 0x38d   : > { %v2227_v53 = vmax.f32 %v2195_v51, 0.0  ;;  %v2410_v55 = vld [vmem:[#allocation5 + $0x51] sm:$0xff] }
 0x38e   : > { %2306 = vst.msk [vmem:[#allocation5 + $0x69] sm:$0xff] %vm554_vm0, %v2228_v52  ;;  %2700 = vrot.lane.b32.xlu0 %v2624_v54, %s5038_s14  ;;  %2489 = vrot.lane.b32.xlu1 %v2410_v55, %s5032_s13  ;;  %v2338_v56 = vld [vmem:[#allocation5 + $0x50] sm:$0xff]  ;;  %v2337_v58 = vld [vmem:[#allocation5 + $0x48] sm:$0xff] }
 0x38f   : > { %2305 = vst.msk [vmem:[#allocation5 + $0x61] sm:$0xff] %vm554_vm0, %v2227_v53  ;;  %v4351_v57 = vpop.f32.mrb[8].mxu0  ;;  %2374 = vst.msk [vmem:[#allocation6 + $0x38] sm:$0xff] %vm554_vm0, %v2338_v56  ;;  %v2627_v62 = vld [vmem:[#allocation5 + $0x52] sm:$0xff]  ;;  %v2409_v63 = vld [vmem:[#allocation5 + $0x49] sm:$0xff] }
 0x390   : > { %v2159_v59 = vmul.f32 %v4351_v57, %v6100_v5  ;;  %v2024_v60 = vpop.f32.mrb[9].mxu0  ;;  %2373 = vst.msk [vmem:[#allocation6 + $0x30] sm:$0xff] %vm554_vm0, %v2337_v58  ;;  %v2626_v6 = vld [vmem:[#allocation5 + $0x4a] sm:$0xff] }
 0x391   : > { %v2158_v61 = vmul.f32 %v6100_v5, %v2024_v60 }
 0x392   : > { %v2198_v1 = vadd.f32 %v6102_v7, %v2159_v59  ;;  %2706 = vrot.lane.b32.xlu1 %v2627_v62, %s5038_s14  ;;  %2487 = vrot.lane.b32.xlu0 %v2409_v63, %s5032_s13 }
 0x393   : > { %v2197_v2 = vadd.f32 %v6102_v7, %v2158_v61 }
 0x394   : > { %v2230_v3 = vmax.f32 %v2198_v1, 0.0 }
 0x395   : > { %v2229_v4 = vmax.f32 %v2197_v2, 0.0  ;;  %v2412_v8 = vld [vmem:[#allocation5 + $0x69] sm:$0xff] }
 0x396   : > { %2308 = vst.msk [vmem:[#allocation5 + $0x81] sm:$0xff] %vm554_vm0, %v2230_v3  ;;  %2704 = vrot.lane.b32.xlu0 %v2626_v6, %s5038_s14  ;;  %2493 = vrot.lane.b32.xlu1 %v2412_v8, %s5032_s13  ;;  %v2340_v9 = vld [vmem:[#allocation5 + $0x68] sm:$0xff]  ;;  %v2339_v11 = vld [vmem:[#allocation5 + $0x60] sm:$0xff] }
 0x397   : > { %2307 = vst.msk [vmem:[#allocation5 + $0x79] sm:$0xff] %vm554_vm0, %v2229_v4  ;;  %v4354_v10 = vpop.f32.mrb[10].mxu0  ;;  %2376 = vst.msk [vmem:[#allocation6 + $0x48] sm:$0xff] %vm554_vm0, %v2340_v9  ;;  %v2629_v15 = vld [vmem:[#allocation5 + $0x6a] sm:$0xff]  ;;  %v2411_v16 = vld [vmem:[#allocation5 + $0x61] sm:$0xff] }
 0x398   : > { %v2161_v12 = vmul.f32 %v4354_v10, %v6100_v5  ;;  %v2034_v13 = vpop.f32.mrb[11].mxu0  ;;  %2375 = vst.msk [vmem:[#allocation6 + $0x40] sm:$0xff] %vm554_vm0, %v2339_v11  ;;  %v2628_v21 = vld [vmem:[#allocation5 + $0x62] sm:$0xff] }
 0x399   : > { %v2160_v14 = vmul.f32 %v6100_v5, %v2034_v13 }
 0x39a   : > { %v2200_v17 = vadd.f32 %v6102_v7, %v2161_v12  ;;  %2710 = vrot.lane.b32.xlu1 %v2629_v15, %s5038_s14  ;;  %2491 = vrot.lane.b32.xlu0 %v2411_v16, %s5032_s13 }
 0x39b   : > { %v2199_v18 = vadd.f32 %v6102_v7, %v2160_v14 }
 0x39c   : > { %v2232_v19 = vmax.f32 %v2200_v17, 0.0 }
 0x39d   : > { %v2231_v20 = vmax.f32 %v2199_v18, 0.0  ;;  %v2414_v22 = vld [vmem:[#allocation5 + $0x81] sm:$0xff] }
 0x39e   : > { %2310 = vst.msk [vmem:[#allocation5 + $0x99] sm:$0xff] %vm554_vm0, %v2232_v19  ;;  %2708 = vrot.lane.b32.xlu0 %v2628_v21, %s5038_s14  ;;  %2497 = vrot.lane.b32.xlu1 %v2414_v22, %s5032_s13  ;;  %v2342_v23 = vld [vmem:[#allocation5 + $0x80] sm:$0xff]  ;;  %v2341_v25 = vld [vmem:[#allocation5 + $0x78] sm:$0xff] }
 0x39f   : > { %2309 = vst.msk [vmem:[#allocation5 + $0x91] sm:$0xff] %vm554_vm0, %v2231_v20  ;;  %v4357_v24 = vpop.f32.mrb[12].mxu0  ;;  %2378 = vst.msk [vmem:[#allocation6 + $0x58] sm:$0xff] %vm554_vm0, %v2342_v23  ;;  %v2631_v29 = vld [vmem:[#allocation5 + $0x82] sm:$0xff]  ;;  %v2413_v30 = vld [vmem:[#allocation5 + $0x79] sm:$0xff] }
 0x3a0   : > { %v2163_v26 = vmul.f32 %v4357_v24, %v6100_v5  ;;  %v2044_v27 = vpop.f32.mrb[13].mxu0  ;;  %2377 = vst.msk [vmem:[#allocation6 + $0x50] sm:$0xff] %vm554_vm0, %v2341_v25  ;;  %v2630_v34 = vld [vmem:[#allocation5 + $0x7a] sm:$0xff] }
 0x3a1   : > { %v2162_v28 = vmul.f32 %v6100_v5, %v2044_v27 }
 0x3a2   : > { %v2202_v0 = vadd.f32 %v6102_v7, %v2163_v26  ;;  %2714 = vrot.lane.b32.xlu1 %v2631_v29, %s5038_s14  ;;  %2495 = vrot.lane.b32.xlu0 %v2413_v30, %s5032_s13 }
 0x3a3   : > { %v2201_v31 = vadd.f32 %v6102_v7, %v2162_v28 }
 0x3a4   : > { %v2234_v32 = vmax.f32 %v2202_v0, 0.0 }
 0x3a5   : > { %v2233_v33 = vmax.f32 %v2201_v31, 0.0  ;;  %v2416_v35 = vld [vmem:[#allocation5 + $0x99] sm:$0xff] }
 0x3a6   : > { %2312 = vst.msk [vmem:[#allocation5 + $0xb1] sm:$0xff] %vm554_vm0, %v2234_v32  ;;  %2712 = vrot.lane.b32.xlu0 %v2630_v34, %s5038_s14  ;;  %2501 = vrot.lane.b32.xlu1 %v2416_v35, %s5032_s13  ;;  %v2344_v36 = vld [vmem:[#allocation5 + $0x98] sm:$0xff]  ;;  %v2343_v38 = vld [vmem:[#allocation5 + $0x90] sm:$0xff] }
 0x3a7   : > { %2311 = vst.msk [vmem:[#allocation5 + $0xa9] sm:$0xff] %vm554_vm0, %v2233_v33  ;;  %v4360_v37 = vpop.f32.mrb[14].mxu0  ;;  %2380 = vst.msk [vmem:[#allocation6 + $0x68] sm:$0xff] %vm554_vm0, %v2344_v36  ;;  %v2633_v42 = vld [vmem:[#allocation5 + $0x9a] sm:$0xff]  ;;  %v2415_v43 = vld [vmem:[#allocation5 + $0x91] sm:$0xff] }
 0x3a8   : > { %v2165_v39 = vmul.f32 %v4360_v37, %v6100_v5  ;;  %v2054_v40 = vpop.f32.mrb[15].mxu0  ;;  %2379 = vst.msk [vmem:[#allocation6 + $0x60] sm:$0xff] %vm554_vm0, %v2343_v38  ;;  %v2632_v48 = vld [vmem:[#allocation5 + $0x92] sm:$0xff] }
 0x3a9   : > { %v2164_v41 = vmul.f32 %v6100_v5, %v2054_v40 }
 0x3aa   : > { %v2204_v44 = vadd.f32 %v6102_v7, %v2165_v39  ;;  %2718 = vrot.lane.b32.xlu1 %v2633_v42, %s5038_s14  ;;  %2499 = vrot.lane.b32.xlu0 %v2415_v43, %s5032_s13 }
 0x3ab   : > { %v2203_v45 = vadd.f32 %v6102_v7, %v2164_v41 }
 0x3ac   : > { %v2236_v46 = vmax.f32 %v2204_v44, 0.0 }
 0x3ad   : > { %v2235_v47 = vmax.f32 %v2203_v45, 0.0  ;;  %v2418_v49 = vld [vmem:[#allocation5 + $0xb1] sm:$0xff] }
 0x3ae   : > { %2314 = vst.msk [vmem:[#allocation5 + $0xc9] sm:$0xff] %vm554_vm0, %v2236_v46  ;;  %2716 = vrot.lane.b32.xlu0 %v2632_v48, %s5038_s14  ;;  %2505 = vrot.lane.b32.xlu1 %v2418_v49, %s5032_s13  ;;  %v2346_v50 = vld [vmem:[#allocation5 + $0xb0] sm:$0xff]  ;;  %v2345_v52 = vld [vmem:[#allocation5 + $0xa8] sm:$0xff] }
 0x3af   : > { %2313 = vst.msk [vmem:[#allocation5 + $0xc1] sm:$0xff] %vm554_vm0, %v2235_v47  ;;  %v4363_v51 = vpop.f32.mrb[16].mxu0  ;;  %2382 = vst.msk [vmem:[#allocation6 + $0x78] sm:$0xff] %vm554_vm0, %v2346_v50  ;;  %v2635_v56 = vld [vmem:[#allocation5 + $0xb2] sm:$0xff]  ;;  %v2417_v57 = vld [vmem:[#allocation5 + $0xa9] sm:$0xff] }
 0x3b0   : > { %v2167_v53 = vmul.f32 %v4363_v51, %v6100_v5  ;;  %v2064_v54 = vpop.f32.mrb[17].mxu0  ;;  %2381 = vst.msk [vmem:[#allocation6 + $0x70] sm:$0xff] %vm554_vm0, %v2345_v52  ;;  %v2634_v62 = vld [vmem:[#allocation5 + $0xaa] sm:$0xff] }
 0x3b1   : > { %v2166_v55 = vmul.f32 %v6100_v5, %v2064_v54 }
 0x3b2   : > { %v2206_v58 = vadd.f32 %v6102_v7, %v2167_v53  ;;  %2722 = vrot.lane.b32.xlu1 %v2635_v56, %s5038_s14  ;;  %2503 = vrot.lane.b32.xlu0 %v2417_v57, %s5032_s13 }
 0x3b3   : > { %v2205_v59 = vadd.f32 %v6102_v7, %v2166_v55 }
 0x3b4   : > { %v2238_v60 = vmax.f32 %v2206_v58, 0.0 }
 0x3b5   : > { %v2237_v61 = vmax.f32 %v2205_v59, 0.0  ;;  %v2420_v63 = vld [vmem:[#allocation5 + $0xc9] sm:$0xff] }
 0x3b6   : > { %2316 = vst.msk [vmem:[#allocation5 + $0xe1] sm:$0xff] %vm554_vm0, %v2238_v60  ;;  %2720 = vrot.lane.b32.xlu0 %v2634_v62, %s5038_s14  ;;  %2509 = vrot.lane.b32.xlu1 %v2420_v63, %s5032_s13  ;;  %v2348_v1 = vld [vmem:[#allocation5 + $0xc8] sm:$0xff]  ;;  %v2347_v3 = vld [vmem:[#allocation5 + $0xc0] sm:$0xff] }
 0x3b7   : > { %2315 = vst.msk [vmem:[#allocation5 + $0xd9] sm:$0xff] %vm554_vm0, %v2237_v61  ;;  %v4366_v2 = vpop.f32.mrb[18].mxu0  ;;  %2384 = vst.msk [vmem:[#allocation6 + $0x88] sm:$0xff] %vm554_vm0, %v2348_v1  ;;  %v2637_v9 = vld [vmem:[#allocation5 + $0xca] sm:$0xff]  ;;  %v2419_v10 = vld [vmem:[#allocation5 + $0xc1] sm:$0xff] }
 0x3b8   : > { %v2169_v4 = vmul.f32 %v4366_v2, %v6100_v5  ;;  %v2074_v6 = vpop.f32.mrb[19].mxu0  ;;  %2383 = vst.msk [vmem:[#allocation6 + $0x80] sm:$0xff] %vm554_vm0, %v2347_v3  ;;  %v2636_v15 = vld [vmem:[#allocation5 + $0xc2] sm:$0xff] }
 0x3b9   : > { %v2168_v8 = vmul.f32 %v6100_v5, %v2074_v6 }
 0x3ba   : > { %v2208_v11 = vadd.f32 %v6102_v7, %v2169_v4  ;;  %2726 = vrot.lane.b32.xlu1 %v2637_v9, %s5038_s14  ;;  %2507 = vrot.lane.b32.xlu0 %v2419_v10, %s5032_s13 }
 0x3bb   : > { %v2207_v12 = vadd.f32 %v6102_v7, %v2168_v8 }
 0x3bc   : > { %v2240_v13 = vmax.f32 %v2208_v11, 0.0 }
 0x3bd   : > { %v2239_v14 = vmax.f32 %v2207_v12, 0.0  ;;  %v2422_v16 = vld [vmem:[#allocation5 + $0xe1] sm:$0xff] }
 0x3be   : > { %2318 = vst.msk [vmem:[#allocation5 + $0xf9] sm:$0xff] %vm554_vm0, %v2240_v13  ;;  %2724 = vrot.lane.b32.xlu0 %v2636_v15, %s5038_s14  ;;  %2513 = vrot.lane.b32.xlu1 %v2422_v16, %s5032_s13  ;;  %v2350_v17 = vld [vmem:[#allocation5 + $0xe0] sm:$0xff]  ;;  %v2349_v19 = vld [vmem:[#allocation5 + $0xd8] sm:$0xff] }
 0x3bf   : > { %2317 = vst.msk [vmem:[#allocation5 + $0xf1] sm:$0xff] %vm554_vm0, %v2239_v14  ;;  %v4369_v18 = vpop.f32.mrb[20].mxu0  ;;  %2386 = vst.msk [vmem:[#allocation6 + $0x98] sm:$0xff] %vm554_vm0, %v2350_v17  ;;  %v2639_v23 = vld [vmem:[#allocation5 + $0xe2] sm:$0xff]  ;;  %v2421_v24 = vld [vmem:[#allocation5 + $0xd9] sm:$0xff] }
 0x3c0   : > { %v2171_v20 = vmul.f32 %v4369_v18, %v6100_v5  ;;  %v2084_v21 = vpop.f32.mrb[21].mxu0  ;;  %2385 = vst.msk [vmem:[#allocation6 + $0x90] sm:$0xff] %vm554_vm0, %v2349_v19  ;;  %v2638_v29 = vld [vmem:[#allocation5 + $0xda] sm:$0xff] }
 0x3c1   : > { %v2170_v22 = vmul.f32 %v6100_v5, %v2084_v21 }
 0x3c2   : > { %v2210_v25 = vadd.f32 %v6102_v7, %v2171_v20  ;;  %2730 = vrot.lane.b32.xlu1 %v2639_v23, %s5038_s14  ;;  %2511 = vrot.lane.b32.xlu0 %v2421_v24, %s5032_s13 }
 0x3c3   : > { %v2209_v26 = vadd.f32 %v6102_v7, %v2170_v22 }
 0x3c4   : > { %v2242_v27 = vmax.f32 %v2210_v25, 0.0 }
 0x3c5   : > { %v2241_v28 = vmax.f32 %v2209_v26, 0.0  ;;  %v2424_v30 = vld [vmem:[#allocation5 + $0xf9] sm:$0xff] }
 0x3c6   : > { %2320 = vst.msk [vmem:[#allocation5 + $0x111] sm:$0xff] %vm554_vm0, %v2242_v27  ;;  %2728 = vrot.lane.b32.xlu0 %v2638_v29, %s5038_s14  ;;  %2517 = vrot.lane.b32.xlu1 %v2424_v30, %s5032_s13  ;;  %v2352_v0 = vld [vmem:[#allocation5 + $0xf8] sm:$0xff]  ;;  %v2351_v32 = vld [vmem:[#allocation5 + $0xf0] sm:$0xff] }
 0x3c7   : > { %2319 = vst.msk [vmem:[#allocation5 + $0x109] sm:$0xff] %vm554_vm0, %v2241_v28  ;;  %v4372_v31 = vpop.f32.mrb[22].mxu0  ;;  %2388 = vst.msk [vmem:[#allocation6 + $0xa8] sm:$0xff] %vm554_vm0, %v2352_v0  ;;  %v2641_v36 = vld [vmem:[#allocation5 + $0xfa] sm:$0xff]  ;;  %v2423_v37 = vld [vmem:[#allocation5 + $0xf1] sm:$0xff] }
 0x3c8   : > { %v2173_v33 = vmul.f32 %v4372_v31, %v6100_v5  ;;  %v2094_v34 = vpop.f32.mrb[23].mxu0  ;;  %2387 = vst.msk [vmem:[#allocation6 + $0xa0] sm:$0xff] %vm554_vm0, %v2351_v32  ;;  %v2640_v42 = vld [vmem:[#allocation5 + $0xf2] sm:$0xff] }
 0x3c9   : > { %v2172_v35 = vmul.f32 %v6100_v5, %v2094_v34 }
 0x3ca   : > { %v2212_v38 = vadd.f32 %v6102_v7, %v2173_v33  ;;  %2734 = vrot.lane.b32.xlu1 %v2641_v36, %s5038_s14  ;;  %2515 = vrot.lane.b32.xlu0 %v2423_v37, %s5032_s13 }
 0x3cb   : > { %v2211_v39 = vadd.f32 %v6102_v7, %v2172_v35 }
 0x3cc   : > { %v2244_v40 = vmax.f32 %v2212_v38, 0.0 }
 0x3cd   : > { %v2243_v41 = vmax.f32 %v2211_v39, 0.0  ;;  %v2426_v43 = vld [vmem:[#allocation5 + $0x111] sm:$0xff] }
 0x3ce   : > { %2322 = vst.msk [vmem:[#allocation5 + $0x129] sm:$0xff] %vm554_vm0, %v2244_v40  ;;  %2732 = vrot.lane.b32.xlu0 %v2640_v42, %s5038_s14  ;;  %2521 = vrot.lane.b32.xlu1 %v2426_v43, %s5032_s13  ;;  %v2354_v44 = vld [vmem:[#allocation5 + $0x110] sm:$0xff]  ;;  %v2353_v46 = vld [vmem:[#allocation5 + $0x108] sm:$0xff] }
 0x3cf   : > { %2321 = vst.msk [vmem:[#allocation5 + $0x121] sm:$0xff] %vm554_vm0, %v2243_v41  ;;  %v4375_v45 = vpop.f32.mrb[24].mxu0  ;;  %2390 = vst.msk [vmem:[#allocation6 + $0xb8] sm:$0xff] %vm554_vm0, %v2354_v44  ;;  %v2643_v50 = vld [vmem:[#allocation5 + $0x112] sm:$0xff]  ;;  %v2425_v51 = vld [vmem:[#allocation5 + $0x109] sm:$0xff] }
 0x3d0   : > { %v2175_v47 = vmul.f32 %v4375_v45, %v6100_v5  ;;  %v2104_v48 = vpop.f32.mrb[25].mxu0  ;;  %2389 = vst.msk [vmem:[#allocation6 + $0xb0] sm:$0xff] %vm554_vm0, %v2353_v46  ;;  %v2642_v56 = vld [vmem:[#allocation5 + $0x10a] sm:$0xff] }
 0x3d1   : > { %v2174_v49 = vmul.f32 %v6100_v5, %v2104_v48  ;;  %v3322_v42 = vld [vmem:[#allocation17] sm:$0xff]  ;;  %v3323_v43 = vld [vmem:[#allocation17 + $0x8] sm:$0xff] }
 0x3d2   : > { %v2214_v52 = vadd.f32 %v6102_v7, %v2175_v47  ;;  %2738 = vrot.lane.b32.xlu1 %v2643_v50, %s5038_s14  ;;  %2519 = vrot.lane.b32.xlu0 %v2425_v51, %s5032_s13  ;;  %v4481_v44 = vpack.c.bf16 %v3323_v43, %v3322_v42  ;;  %v3324_v50 = vld [vmem:[#allocation17 + $0x10] sm:$0xff]  ;;  %v3325_v51 = vld [vmem:[#allocation17 + $0x18] sm:$0xff] }
 0x3d3   : > { %v2213_v53 = vadd.f32 %v6102_v7, %v2174_v49 }
 0x3d4   : > { %v2246_v54 = vmax.f32 %v2214_v52, 0.0  ;;  %4482 = vmatprep.subr.bf16.mxu1 %v4481_v44 }
 0x3d5   : > { %v2245_v55 = vmax.f32 %v2213_v53, 0.0  ;;  %v2428_v57 = vld [vmem:[#allocation5 + $0x129] sm:$0xff]  ;;  %4484 = vmatpush3.bf16.msra.mxu1 %v4481_v44 }
 0x3d6   : > { %2324 = vst.msk [vmem:[#allocation5 + $0x141] sm:$0xff] %vm554_vm0, %v2246_v54  ;;  %2736 = vrot.lane.b32.xlu0 %v2642_v56, %s5038_s14  ;;  %2525 = vrot.lane.b32.xlu1 %v2428_v57, %s5032_s13  ;;  %v2356_v58 = vld [vmem:[#allocation5 + $0x128] sm:$0xff]  ;;  %v2355_v60 = vld [vmem:[#allocation5 + $0x120] sm:$0xff]  ;;  %v4485_v54 = vpack.c.bf16 %v3325_v51, %v3324_v50 }
 0x3d7   : > { %2323 = vst.msk [vmem:[#allocation5 + $0x139] sm:$0xff] %vm554_vm0, %v2245_v55  ;;  %v4378_v59 = vpop.f32.mrb[26].mxu0  ;;  %2392 = vst.msk [vmem:[#allocation6 + $0xc8] sm:$0xff] %vm554_vm0, %v2356_v58  ;;  %v2645_v1 = vld [vmem:[#allocation5 + $0x12a] sm:$0xff]  ;;  %v2427_v2 = vld [vmem:[#allocation5 + $0x121] sm:$0xff] }
 0x3d8   : > { %v2177_v61 = vmul.f32 %v4378_v59, %v6100_v5  ;;  %v2114_v62 = vpop.f32.mrb[27].mxu0  ;;  %2391 = vst.msk [vmem:[#allocation6 + $0xc0] sm:$0xff] %vm554_vm0, %v2355_v60  ;;  %v2644_v9 = vld [vmem:[#allocation5 + $0x122] sm:$0xff]  ;;  %4486 = vmatprep.subr.bf16.mxu1 %v4485_v54  ;;  %v3327_v57 = vld [vmem:[#allocation17 + $0x28] sm:$0xff] }
 0x3d9   : > { %v2176_v63 = vmul.f32 %v6100_v5, %v2114_v62  ;;  %v3326_v56 = vld [vmem:[#allocation17 + $0x20] sm:$0xff]  ;;  %4488 = vmatpush3.bf16.msra.mxu1 %v4485_v54 }
 0x3da   : > { %v2216_v3 = vadd.f32 %v6102_v7, %v2177_v61  ;;  %2742 = vrot.lane.b32.xlu1 %v2645_v1, %s5038_s14  ;;  %2523 = vrot.lane.b32.xlu0 %v2427_v2, %s5032_s13  ;;  %v4489_v58 = vpack.c.bf16 %v3327_v57, %v3326_v56  ;;  %v3329_v1 = vld [vmem:[#allocation17 + $0x38] sm:$0xff] }
 0x3db   : > { %v2215_v4 = vadd.f32 %v6102_v7, %v2176_v63  ;;  %v3328_v63 = vld [vmem:[#allocation17 + $0x30] sm:$0xff] }
 0x3dc   : > { %v2248_v6 = vmax.f32 %v2216_v3, 0.0  ;;  %4490 = vmatprep.subr.bf16.mxu1 %v4489_v58  ;;  %v4493_v2 = vpack.c.bf16 %v3329_v1, %v3328_v63 }
 0x3dd   : > { %v2247_v8 = vmax.f32 %v2215_v4, 0.0  ;;  %v2430_v10 = vld [vmem:[#allocation5 + $0x141] sm:$0xff]  ;;  %4492 = vmatpush3.bf16.msra.mxu1 %v4489_v58 }
 0x3de   : > { %2326 = vst.msk [vmem:[#allocation5 + $0x159] sm:$0xff] %vm554_vm0, %v2248_v6  ;;  %2740 = vrot.lane.b32.xlu0 %v2644_v9, %s5038_s14  ;;  %2529 = vrot.lane.b32.xlu1 %v2430_v10, %s5032_s13  ;;  %v2358_v11 = vld [vmem:[#allocation5 + $0x140] sm:$0xff]  ;;  %v2357_v13 = vld [vmem:[#allocation5 + $0x138] sm:$0xff] }
 0x3df   : > { %2325 = vst.msk [vmem:[#allocation5 + $0x151] sm:$0xff] %vm554_vm0, %v2247_v8  ;;  %v4381_v12 = vpop.f32.mrb[28].mxu0  ;;  %2394 = vst.msk [vmem:[#allocation6 + $0xd8] sm:$0xff] %vm554_vm0, %v2358_v11  ;;  %v2647_v17 = vld [vmem:[#allocation5 + $0x142] sm:$0xff]  ;;  %v2429_v18 = vld [vmem:[#allocation5 + $0x139] sm:$0xff]  ;;  %4494 = vmatprep.subr.bf16.mxu1 %v4493_v2 }
 0x3e0   : > { %v2179_v14 = vmul.f32 %v4381_v12, %v6100_v5  ;;  %v2124_v15 = vpop.f32.mrb[29].mxu0  ;;  %2393 = vst.msk [vmem:[#allocation6 + $0xd0] sm:$0xff] %vm554_vm0, %v2357_v13  ;;  %v2646_v23 = vld [vmem:[#allocation5 + $0x13a] sm:$0xff]  ;;  %v3330_v9 = vld [vmem:[#allocation17 + $0x40] sm:$0xff] }
 0x3e1   : > { %v2178_v16 = vmul.f32 %v6100_v5, %v2124_v15  ;;  %4496 = vmatpush3.bf16.msra.mxu1 %v4493_v2 }
 0x3e2   : > { %v2218_v19 = vadd.f32 %v6102_v7, %v2179_v14  ;;  %2746 = vrot.lane.b32.xlu1 %v2647_v17, %s5038_s14  ;;  %2527 = vrot.lane.b32.xlu0 %v2429_v18, %s5032_s13 }
 0x3e3   : > { %v2217_v20 = vadd.f32 %v6102_v7, %v2178_v16  ;;  %4401 = vmatprep.subr.mxu1 %v3330_v9 }
 0x3e4   : > { %v2250_v21 = vmax.f32 %v2218_v19, 0.0 }
 0x3e5   : > { %v2249_v22 = vmax.f32 %v2217_v20, 0.0  ;;  %v2432_v24 = vld [vmem:[#allocation5 + $0x159] sm:$0xff]  ;;  %4402 = vmatpush3.msra.mxu1 %v3330_v9 }
 0x3e6   : > { %2328 = vst.msk [vmem:[#allocation5 + $0x171] sm:$0xff] %vm554_vm0, %v2250_v21  ;;  %2744 = vrot.lane.b32.xlu0 %v2646_v23, %s5038_s14  ;;  %2533 = vrot.lane.b32.xlu1 %v2432_v24, %s5032_s13  ;;  %v2360_v25 = vld [vmem:[#allocation5 + $0x158] sm:$0xff]  ;;  %v2359_v27 = vld [vmem:[#allocation5 + $0x150] sm:$0xff] }
 0x3e7   : > { %2327 = vst.msk [vmem:[#allocation5 + $0x169] sm:$0xff] %vm554_vm0, %v2249_v22  ;;  %v4384_v26 = vpop.f32.mrb[30].mxu0  ;;  %2396 = vst.msk [vmem:[#allocation6 + $0xe8] sm:$0xff] %vm554_vm0, %v2360_v25  ;;  %v2649_v0 = vld [vmem:[#allocation5 + $0x15a] sm:$0xff]  ;;  %v2431_v31 = vld [vmem:[#allocation5 + $0x151] sm:$0xff] }
 0x3e8   : > { %v2181_v28 = vmul.f32 %v4384_v26, %v6100_v5  ;;  %v2134_v29 = vpop.f32.mrb[31].mxu0  ;;  %2395 = vst.msk [vmem:[#allocation6 + $0xe0] sm:$0xff] %vm554_vm0, %v2359_v27  ;;  %v2648_v36 = vld [vmem:[#allocation5 + $0x152] sm:$0xff] }
 0x3e9   : > { %v2180_v30 = vmul.f32 %v6100_v5, %v2134_v29 }
 0x3ea   : > { %v2220_v32 = vadd.f32 %v6102_v7, %v2181_v28  ;;  %2750 = vrot.lane.b32.xlu1 %v2649_v0, %s5038_s14  ;;  %2531 = vrot.lane.b32.xlu0 %v2431_v31, %s5032_s13 }
 0x3eb   : > { %v2219_v33 = vadd.f32 %v6102_v7, %v2180_v30 }
 0x3ec   : > { %v2252_v34 = vmax.f32 %v2220_v32, 0.0 }
 0x3ed   : > { %v2251_v35 = vmax.f32 %v2219_v33, 0.0  ;;  %v2434_v37 = vld [vmem:[#allocation5 + $0x171] sm:$0xff] }
 0x3ee   : > { %2330 = vst.msk [vmem:[#allocation5 + $0x189] sm:$0xff] %vm554_vm0, %v2252_v34  ;;  %2748 = vrot.lane.b32.xlu0 %v2648_v36, %s5038_s14  ;;  %2537 = vrot.lane.b32.xlu1 %v2434_v37, %s5032_s13  ;;  %v2362_v5 = vld [vmem:[#allocation5 + $0x170] sm:$0xff]  ;;  %v2361_v38 = vld [vmem:[#allocation5 + $0x168] sm:$0xff] }
 0x3ef   : > { %2329 = vst.msk [vmem:[#allocation5 + $0x181] sm:$0xff] %vm554_vm0, %v2251_v35  ;;  %2398 = vst.msk [vmem:[#allocation6 + $0xf8] sm:$0xff] %vm554_vm0, %v2362_v5  ;;  %v2651_v40 = vld [vmem:[#allocation5 + $0x172] sm:$0xff]  ;;  %v2433_v41 = vld [vmem:[#allocation5 + $0x169] sm:$0xff] }
 0x3f0   : > { %v2482_v39 = vpop.permute.xlu1 %2481  ;;  %2397 = vst.msk [vmem:[#allocation6 + $0xf0] sm:$0xff] %vm554_vm0, %v2361_v38  ;;  %v2650_v46 = vld [vmem:[#allocation5 + $0x16a] sm:$0xff] }
 0x3f1   : > { %2587 = vst.msk [vmem:[#allocation6 + $0x18] sm:$0xff] %vm2583_vm1, %v2482_v39  ;;  %v2480_v7 = vpop.permute.xlu0 %2479 }
 0x3f2   : > { %2586 = vst.msk [vmem:[#allocation6 + $0x10] sm:$0xff] %vm2583_vm1, %v2480_v7  ;;  %2754 = vrot.lane.b32.xlu1 %v2651_v40, %s5038_s14  ;;  %2535 = vrot.lane.b32.xlu0 %v2433_v41, %s5032_s13 }
 0x3f4   : > { %v2699_v45 = vpop.permute.xlu1 %2698 }
 0x3f5   : > { %2804 = vst.msk [vmem:[#allocation6 + $0x18] sm:$0xff] %vm2800_vm2, %v2699_v45  ;;  %v2436_v47 = vld [vmem:[#allocation5 + $0x189] sm:$0xff] }
 0x3f6   : > { %2752 = vrot.lane.b32.xlu0 %v2650_v46, %s5038_s14  ;;  %2541 = vrot.lane.b32.xlu1 %v2436_v47, %s5032_s13  ;;  %v2364_v48 = vld [vmem:[#allocation5 + $0x188] sm:$0xff]  ;;  %v2363_v49 = vld [vmem:[#allocation5 + $0x180] sm:$0xff] }
 0x3f7   : > { %2400 = vst.msk [vmem:[#allocation6 + $0x108] sm:$0xff] %vm554_vm0, %v2364_v48  ;;  %2399 = vst.msk [vmem:[#allocation6 + $0x100] sm:$0xff] %vm554_vm0, %v2363_v49  ;;  %v2653_v55 = vld [vmem:[#allocation5 + $0x18a] sm:$0xff]  ;;  %v2435_v62 = vld [vmem:[#allocation5 + $0x181] sm:$0xff] }
 0x3f8   : > { %v2697_v52 = vpop.permute.xlu1 %2696  ;;  %v2486_v53 = vpop.permute.xlu0 %2485  ;;  %v2652_v8 = vld [vmem:[#allocation5 + $0x182] sm:$0xff] }
 0x3f9   : > { %2803 = vst.msk [vmem:[#allocation6 + $0x10] sm:$0xff] %vm2800_vm2, %v2697_v52 }
 0x3fa   : > { %2589 = vst.msk [vmem:[#allocation6 + $0x28] sm:$0xff] %vm2583_vm1, %v2486_v53  ;;  %2758 = vrot.lane.b32.xlu1 %v2653_v55, %s5038_s14 }
 0x3fc   : > { %v2703_v59 = vpop.permute.xlu1 %2702  ;;  %v2484_v60 = vpop.permute.xlu0 %2483  ;;  %v2904_v61 = vld [vmem:[#allocation6 + $0x18] sm:$0xff] }
 0x3fd   : > { %2806 = vst.msk [vmem:[#allocation6 + $0x28] sm:$0xff] %vm2800_vm2, %v2703_v59 }
 0x3fe   : > { %2588 = vst.msk [vmem:[#allocation6 + $0x20] sm:$0xff] %vm2583_vm1, %v2484_v60  ;;  %2539 = vrot.lane.b32.xlu1 %v2435_v62, %s5032_s13 }
 0x3ff   : > { %2873 = vst.msk [vmem:[#allocation7 + $0x18] sm:$0xff] %vm2869_vm3, %v2904_v61 }
 0x400   : > { %v2701_v3 = vpop.permute.xlu0 %2700  ;;  %v2490_v4 = vpop.permute.xlu1 %2489  ;;  %v2903_v6 = vld [vmem:[#allocation6 + $0x10] sm:$0xff] }
 0x401   : > { %2805 = vst.msk [vmem:[#allocation6 + $0x20] sm:$0xff] %vm2800_vm2, %v2701_v3  ;;  %2967 = vrot.lane.b32.xlu0 %v2903_v6, %s5034_s17 }
 0x402   : > { %2591 = vst.msk [vmem:[#allocation6 + $0x38] sm:$0xff] %vm2583_vm1, %v2490_v4  ;;  %2756 = vrot.lane.b32.xlu1 %v2652_v8, %s5038_s14 }
 0x403   : > { %2872 = vst.msk [vmem:[#allocation7 + $0x10] sm:$0xff] %vm2869_vm3, %v2903_v6 }
 0x404   : > { %v2707_v10 = vpop.permute.xlu1 %2706  ;;  %v2488_v11 = vpop.permute.xlu0 %2487  ;;  %v3098_v12 = vld [vmem:[#allocation6 + $0x28] sm:$0xff] }
 0x405   : > { %2808 = vst.msk [vmem:[#allocation6 + $0x38] sm:$0xff] %vm2800_vm2, %v2707_v10 }
 0x406   : > { %2590 = vst.msk [vmem:[#allocation6 + $0x30] sm:$0xff] %vm2583_vm1, %v2488_v11  ;;  %2969 = vrot.lane.b32.xlu1 %v2904_v61, %s5034_s17 }
 0x407   : > { %2875 = vst.msk [vmem:[#allocation7 + $0x28] sm:$0xff] %vm2869_vm3, %v3098_v12 }
 0x408   : > { %v2705_v13 = vpop.permute.xlu0 %2704  ;;  %v2494_v14 = vpop.permute.xlu1 %2493  ;;  %v3097_v15 = vld [vmem:[#allocation6 + $0x20] sm:$0xff] }
 0x409   : > { %2807 = vst.msk [vmem:[#allocation6 + $0x30] sm:$0xff] %vm2800_vm2, %v2705_v13  ;;  %3161 = vrot.lane.b32.xlu0 %v3097_v15, %s5039_s2 }
 0x40a   : > { %2593 = vst.msk [vmem:[#allocation6 + $0x48] sm:$0xff] %vm2583_vm1, %v2494_v14  ;;  %3163 = vrot.lane.b32.xlu1 %v3098_v12, %s5039_s2 }
 0x40b   : > { %2874 = vst.msk [vmem:[#allocation7 + $0x20] sm:$0xff] %vm2869_vm3, %v3097_v15 }
 0x40c   : > { %v2711_v16 = vpop.permute.xlu1 %2710  ;;  %v2492_v17 = vpop.permute.xlu0 %2491  ;;  %v3100_v18 = vld [vmem:[#allocation6 + $0x38] sm:$0xff] }
 0x40d   : > { %2810 = vst.msk [vmem:[#allocation6 + $0x48] sm:$0xff] %vm2800_vm2, %v2711_v16  ;;  %2971 = vrot.lane.b32.xlu0 %v3097_v15, %s5034_s17 }
 0x40e   : > { %2592 = vst.msk [vmem:[#allocation6 + $0x40] sm:$0xff] %vm2583_vm1, %v2492_v17  ;;  %2973 = vrot.lane.b32.xlu1 %v3098_v12, %s5034_s17 }
 0x40f   : > { %2877 = vst.msk [vmem:[#allocation7 + $0x38] sm:$0xff] %vm2869_vm3, %v3100_v18 }
 0x410   : > { %v2709_v19 = vpop.permute.xlu0 %2708  ;;  %v2498_v20 = vpop.permute.xlu1 %2497  ;;  %v3099_v21 = vld [vmem:[#allocation6 + $0x30] sm:$0xff] }
 0x411   : > { %2809 = vst.msk [vmem:[#allocation6 + $0x40] sm:$0xff] %vm2800_vm2, %v2709_v19  ;;  %3165 = vrot.lane.b32.xlu0 %v3099_v21, %s5039_s2 }
 0x412   : > { %2595 = vst.msk [vmem:[#allocation6 + $0x58] sm:$0xff] %vm2583_vm1, %v2498_v20  ;;  %3167 = vrot.lane.b32.xlu1 %v3100_v18, %s5039_s2 }
 0x413   : > { %2876 = vst.msk [vmem:[#allocation7 + $0x30] sm:$0xff] %vm2869_vm3, %v3099_v21 }
 0x414   : > { %v2715_v22 = vpop.permute.xlu1 %2714  ;;  %v2496_v23 = vpop.permute.xlu0 %2495  ;;  %v3102_v24 = vld [vmem:[#allocation6 + $0x48] sm:$0xff] }
 0x415   : > { %2812 = vst.msk [vmem:[#allocation6 + $0x58] sm:$0xff] %vm2800_vm2, %v2715_v22  ;;  %2975 = vrot.lane.b32.xlu0 %v3099_v21, %s5034_s17 }
 0x416   : > { %2594 = vst.msk [vmem:[#allocation6 + $0x50] sm:$0xff] %vm2583_vm1, %v2496_v23  ;;  %2977 = vrot.lane.b32.xlu1 %v3100_v18, %s5034_s17 }
 0x417   : > { %2879 = vst.msk [vmem:[#allocation7 + $0x48] sm:$0xff] %vm2869_vm3, %v3102_v24 }
 0x418   : > { %v2713_v25 = vpop.permute.xlu0 %2712  ;;  %v2502_v26 = vpop.permute.xlu1 %2501  ;;  %v3101_v27 = vld [vmem:[#allocation6 + $0x40] sm:$0xff] }
 0x419   : > { %2811 = vst.msk [vmem:[#allocation6 + $0x50] sm:$0xff] %vm2800_vm2, %v2713_v25  ;;  %3169 = vrot.lane.b32.xlu0 %v3101_v27, %s5039_s2 }
 0x41a   : > { %2597 = vst.msk [vmem:[#allocation6 + $0x68] sm:$0xff] %vm2583_vm1, %v2502_v26  ;;  %3171 = vrot.lane.b32.xlu1 %v3102_v24, %s5039_s2 }
 0x41b   : > { %2878 = vst.msk [vmem:[#allocation7 + $0x40] sm:$0xff] %vm2869_vm3, %v3101_v27 }
 0x41c   : > { %v2719_v28 = vpop.permute.xlu1 %2718  ;;  %v2500_v29 = vpop.permute.xlu0 %2499  ;;  %v3104_v30 = vld [vmem:[#allocation6 + $0x58] sm:$0xff] }
 0x41d   : > { %2814 = vst.msk [vmem:[#allocation6 + $0x68] sm:$0xff] %vm2800_vm2, %v2719_v28  ;;  %2979 = vrot.lane.b32.xlu0 %v3101_v27, %s5034_s17 }
 0x41e   : > { %2596 = vst.msk [vmem:[#allocation6 + $0x60] sm:$0xff] %vm2583_vm1, %v2500_v29  ;;  %2981 = vrot.lane.b32.xlu1 %v3102_v24, %s5034_s17 }
 0x41f   : > { %2881 = vst.msk [vmem:[#allocation7 + $0x58] sm:$0xff] %vm2869_vm3, %v3104_v30 }
 0x420   : > { %v2717_v0 = vpop.permute.xlu0 %2716  ;;  %v2506_v31 = vpop.permute.xlu1 %2505  ;;  %v3103_v32 = vld [vmem:[#allocation6 + $0x50] sm:$0xff] }
 0x421   : > { %2813 = vst.msk [vmem:[#allocation6 + $0x60] sm:$0xff] %vm2800_vm2, %v2717_v0  ;;  %3173 = vrot.lane.b32.xlu0 %v3103_v32, %s5039_s2 }
 0x422   : > { %2599 = vst.msk [vmem:[#allocation6 + $0x78] sm:$0xff] %vm2583_vm1, %v2506_v31  ;;  %3175 = vrot.lane.b32.xlu1 %v3104_v30, %s5039_s2 }
 0x423   : > { %2880 = vst.msk [vmem:[#allocation7 + $0x50] sm:$0xff] %vm2869_vm3, %v3103_v32 }
 0x424   : > { %v2723_v33 = vpop.permute.xlu1 %2722  ;;  %v2504_v34 = vpop.permute.xlu0 %2503  ;;  %v3106_v35 = vld [vmem:[#allocation6 + $0x68] sm:$0xff] }
 0x425   : > { %2816 = vst.msk [vmem:[#allocation6 + $0x78] sm:$0xff] %vm2800_vm2, %v2723_v33  ;;  %2983 = vrot.lane.b32.xlu0 %v3103_v32, %s5034_s17 }
 0x426   : > { %2598 = vst.msk [vmem:[#allocation6 + $0x70] sm:$0xff] %vm2583_vm1, %v2504_v34  ;;  %2985 = vrot.lane.b32.xlu1 %v3104_v30, %s5034_s17 }
 0x427   : > { %2883 = vst.msk [vmem:[#allocation7 + $0x68] sm:$0xff] %vm2869_vm3, %v3106_v35 }
 0x428   : > { %v2721_v36 = vpop.permute.xlu0 %2720  ;;  %v2510_v37 = vpop.permute.xlu1 %2509  ;;  %v3105_v5 = vld [vmem:[#allocation6 + $0x60] sm:$0xff] }
 0x429   : > { %2815 = vst.msk [vmem:[#allocation6 + $0x70] sm:$0xff] %vm2800_vm2, %v2721_v36  ;;  %3177 = vrot.lane.b32.xlu0 %v3105_v5, %s5039_s2  ;;  %v3128_v36 = vld [vmem:[#allocation6 + $0x118] sm:$0xff] }
 0x42a   : > { %2601 = vst.msk [vmem:[#allocation6 + $0x88] sm:$0xff] %vm2583_vm1, %v2510_v37  ;;  %3179 = vrot.lane.b32.xlu1 %v3106_v35, %s5039_s2 }
 0x42b   : > { %2882 = vst.msk [vmem:[#allocation7 + $0x60] sm:$0xff] %vm2869_vm3, %v3105_v5 }
 0x42c   : > { %v2727_v38 = vpop.permute.xlu1 %2726  ;;  %v2508_v39 = vpop.permute.xlu0 %2507  ;;  %v3108_v7 = vld [vmem:[#allocation6 + $0x78] sm:$0xff] }
 0x42d   : > { %2818 = vst.msk [vmem:[#allocation6 + $0x88] sm:$0xff] %vm2800_vm2, %v2727_v38  ;;  %2987 = vrot.lane.b32.xlu0 %v3105_v5, %s5034_s17 }
 0x42e   : > { %2600 = vst.msk [vmem:[#allocation6 + $0x80] sm:$0xff] %vm2583_vm1, %v2508_v39  ;;  %2989 = vrot.lane.b32.xlu1 %v3106_v35, %s5034_s17 }
 0x42f   : > { %2885 = vst.msk [vmem:[#allocation7 + $0x78] sm:$0xff] %vm2869_vm3, %v3108_v7 }
 0x430   : > { %v2725_v40 = vpop.permute.xlu0 %2724  ;;  %v2514_v41 = vpop.permute.xlu1 %2513  ;;  %v3107_v42 = vld [vmem:[#allocation6 + $0x70] sm:$0xff] }
 0x431   : > { %2817 = vst.msk [vmem:[#allocation6 + $0x80] sm:$0xff] %vm2800_vm2, %v2725_v40  ;;  %3181 = vrot.lane.b32.xlu0 %v3107_v42, %s5039_s2 }
 0x432   : > { %2603 = vst.msk [vmem:[#allocation6 + $0x98] sm:$0xff] %vm2583_vm1, %v2514_v41  ;;  %3183 = vrot.lane.b32.xlu1 %v3108_v7, %s5039_s2 }
 0x433   : > { %2884 = vst.msk [vmem:[#allocation7 + $0x70] sm:$0xff] %vm2869_vm3, %v3107_v42 }
 0x434   : > { %v2731_v43 = vpop.permute.xlu1 %2730  ;;  %v2512_v44 = vpop.permute.xlu0 %2511  ;;  %v3110_v45 = vld [vmem:[#allocation6 + $0x88] sm:$0xff] }
 0x435   : > { %2820 = vst.msk [vmem:[#allocation6 + $0x98] sm:$0xff] %vm2800_vm2, %v2731_v43  ;;  %2991 = vrot.lane.b32.xlu0 %v3107_v42, %s5034_s17 }
 0x436   : > { %2602 = vst.msk [vmem:[#allocation6 + $0x90] sm:$0xff] %vm2583_vm1, %v2512_v44  ;;  %2993 = vrot.lane.b32.xlu1 %v3108_v7, %s5034_s17  ;;  %v3127_v7 = vld [vmem:[#allocation6 + $0x110] sm:$0xff] }
 0x437   : > { %2887 = vst.msk [vmem:[#allocation7 + $0x88] sm:$0xff] %vm2869_vm3, %v3110_v45 }
 0x438   : > { %v2729_v46 = vpop.permute.xlu0 %2728  ;;  %v2518_v47 = vpop.permute.xlu1 %2517  ;;  %v3109_v48 = vld [vmem:[#allocation6 + $0x80] sm:$0xff] }
 0x439   : > { %2819 = vst.msk [vmem:[#allocation6 + $0x90] sm:$0xff] %vm2800_vm2, %v2729_v46  ;;  %3185 = vrot.lane.b32.xlu0 %v3109_v48, %s5039_s2 }
 0x43a   : > { %2605 = vst.msk [vmem:[#allocation6 + $0xa8] sm:$0xff] %vm2583_vm1, %v2518_v47  ;;  %3187 = vrot.lane.b32.xlu1 %v3110_v45, %s5039_s2 }
 0x43b   : > { %2886 = vst.msk [vmem:[#allocation7 + $0x80] sm:$0xff] %vm2869_vm3, %v3109_v48 }
 0x43c   : > { %v2735_v49 = vpop.permute.xlu1 %2734  ;;  %v2516_v50 = vpop.permute.xlu0 %2515  ;;  %v3112_v51 = vld [vmem:[#allocation6 + $0x98] sm:$0xff] }
 0x43d   : > { %2822 = vst.msk [vmem:[#allocation6 + $0xa8] sm:$0xff] %vm2800_vm2, %v2735_v49  ;;  %2995 = vrot.lane.b32.xlu0 %v3109_v48, %s5034_s17 }
 0x43e   : > { %2604 = vst.msk [vmem:[#allocation6 + $0xa0] sm:$0xff] %vm2583_vm1, %v2516_v50  ;;  %2997 = vrot.lane.b32.xlu1 %v3110_v45, %s5034_s17 }
 0x43f   : > { %2889 = vst.msk [vmem:[#allocation7 + $0x98] sm:$0xff] %vm2869_vm3, %v3112_v51 }
 0x440   : > { %v2733_v52 = vpop.permute.xlu0 %2732  ;;  %v2522_v53 = vpop.permute.xlu1 %2521  ;;  %v3111_v54 = vld [vmem:[#allocation6 + $0x90] sm:$0xff] }
 0x441   : > { %2821 = vst.msk [vmem:[#allocation6 + $0xa0] sm:$0xff] %vm2800_vm2, %v2733_v52  ;;  %3189 = vrot.lane.b32.xlu0 %v3111_v54, %s5039_s2 }
 0x442   : > { %2607 = vst.msk [vmem:[#allocation6 + $0xb8] sm:$0xff] %vm2583_vm1, %v2522_v53  ;;  %3191 = vrot.lane.b32.xlu1 %v3112_v51, %s5039_s2 }
 0x443   : > { %2888 = vst.msk [vmem:[#allocation7 + $0x90] sm:$0xff] %vm2869_vm3, %v3111_v54 }
 0x444   : > { %v2739_v55 = vpop.permute.xlu1 %2738  ;;  %v2520_v56 = vpop.permute.xlu0 %2519  ;;  %v3114_v57 = vld [vmem:[#allocation6 + $0xa8] sm:$0xff] }
 0x445   : > { %2824 = vst.msk [vmem:[#allocation6 + $0xb8] sm:$0xff] %vm2800_vm2, %v2739_v55  ;;  %2999 = vrot.lane.b32.xlu0 %v3111_v54, %s5034_s17 }
 0x446   : > { %2606 = vst.msk [vmem:[#allocation6 + $0xb0] sm:$0xff] %vm2583_vm1, %v2520_v56  ;;  %3001 = vrot.lane.b32.xlu1 %v3112_v51, %s5034_s17 }
 0x447   : > { %2891 = vst.msk [vmem:[#allocation7 + $0xa8] sm:$0xff] %vm2869_vm3, %v3114_v57 }
 0x448   : > { %v2737_v58 = vpop.permute.xlu0 %2736  ;;  %v2526_v59 = vpop.permute.xlu1 %2525  ;;  %v3113_v60 = vld [vmem:[#allocation6 + $0xa0] sm:$0xff] }
 0x449   : > { %2823 = vst.msk [vmem:[#allocation6 + $0xb0] sm:$0xff] %vm2800_vm2, %v2737_v58  ;;  %3193 = vrot.lane.b32.xlu0 %v3113_v60, %s5039_s2 }
 0x44a   : > { %2609 = vst.msk [vmem:[#allocation6 + $0xc8] sm:$0xff] %vm2583_vm1, %v2526_v59  ;;  %3195 = vrot.lane.b32.xlu1 %v3114_v57, %s5039_s2 }
 0x44b   : > { %2890 = vst.msk [vmem:[#allocation7 + $0xa0] sm:$0xff] %vm2869_vm3, %v3113_v60 }
 0x44c   : > { %v2743_v61 = vpop.permute.xlu1 %2742  ;;  %v2524_v62 = vpop.permute.xlu0 %2523  ;;  %v3116_v63 = vld [vmem:[#allocation6 + $0xb8] sm:$0xff] }
 0x44d   : > { %2826 = vst.msk [vmem:[#allocation6 + $0xc8] sm:$0xff] %vm2800_vm2, %v2743_v61  ;;  %3003 = vrot.lane.b32.xlu0 %v3113_v60, %s5034_s17 }
 0x44e   : > { %2608 = vst.msk [vmem:[#allocation6 + $0xc0] sm:$0xff] %vm2583_vm1, %v2524_v62  ;;  %3005 = vrot.lane.b32.xlu1 %v3114_v57, %s5034_s17 }
 0x44f   : > { %2893 = vst.msk [vmem:[#allocation7 + $0xb8] sm:$0xff] %vm2869_vm3, %v3116_v63 }
 0x450   : > { %v2741_v1 = vpop.permute.xlu0 %2740  ;;  %v2530_v2 = vpop.permute.xlu1 %2529  ;;  %v3115_v3 = vld [vmem:[#allocation6 + $0xb0] sm:$0xff] }
 0x451   : > { %2825 = vst.msk [vmem:[#allocation6 + $0xc0] sm:$0xff] %vm2800_vm2, %v2741_v1  ;;  %3197 = vrot.lane.b32.xlu0 %v3115_v3, %s5039_s2 }
 0x452   : > { %2611 = vst.msk [vmem:[#allocation6 + $0xd8] sm:$0xff] %vm2583_vm1, %v2530_v2  ;;  %3199 = vrot.lane.b32.xlu1 %v3116_v63, %s5039_s2 }
 0x453   : > { %2892 = vst.msk [vmem:[#allocation7 + $0xb0] sm:$0xff] %vm2869_vm3, %v3115_v3 }
 0x454   : > { %v2747_v4 = vpop.permute.xlu1 %2746  ;;  %v2528_v6 = vpop.permute.xlu0 %2527  ;;  %v3118_v8 = vld [vmem:[#allocation6 + $0xc8] sm:$0xff] }
 0x455   : > { %2828 = vst.msk [vmem:[#allocation6 + $0xd8] sm:$0xff] %vm2800_vm2, %v2747_v4  ;;  %3007 = vrot.lane.b32.xlu0 %v3115_v3, %s5034_s17 }
 0x456   : > { %2610 = vst.msk [vmem:[#allocation6 + $0xd0] sm:$0xff] %vm2583_vm1, %v2528_v6  ;;  %3009 = vrot.lane.b32.xlu1 %v3116_v63, %s5034_s17 }
 0x457   : > { %2895 = vst.msk [vmem:[#allocation7 + $0xc8] sm:$0xff] %vm2869_vm3, %v3118_v8 }
 0x458   : > { %v2745_v9 = vpop.permute.xlu0 %2744  ;;  %v2534_v10 = vpop.permute.xlu1 %2533  ;;  %v3117_v11 = vld [vmem:[#allocation6 + $0xc0] sm:$0xff] }
 0x459   : > { %2827 = vst.msk [vmem:[#allocation6 + $0xd0] sm:$0xff] %vm2800_vm2, %v2745_v9  ;;  %3201 = vrot.lane.b32.xlu0 %v3117_v11, %s5039_s2 }
 0x45a   : > { %2613 = vst.msk [vmem:[#allocation6 + $0xe8] sm:$0xff] %vm2583_vm1, %v2534_v10  ;;  %3203 = vrot.lane.b32.xlu1 %v3118_v8, %s5039_s2 }
 0x45b   : > { %2894 = vst.msk [vmem:[#allocation7 + $0xc0] sm:$0xff] %vm2869_vm3, %v3117_v11 }
 0x45c   : > { %v2751_v12 = vpop.permute.xlu1 %2750  ;;  %v2532_v13 = vpop.permute.xlu0 %2531  ;;  %v3120_v14 = vld [vmem:[#allocation6 + $0xd8] sm:$0xff] }
 0x45d   : > { %2830 = vst.msk [vmem:[#allocation6 + $0xe8] sm:$0xff] %vm2800_vm2, %v2751_v12  ;;  %3011 = vrot.lane.b32.xlu0 %v3117_v11, %s5034_s17 }
 0x45e   : > { %2612 = vst.msk [vmem:[#allocation6 + $0xe0] sm:$0xff] %vm2583_vm1, %v2532_v13  ;;  %3013 = vrot.lane.b32.xlu1 %v3118_v8, %s5034_s17 }
 0x45f   : > { %2897 = vst.msk [vmem:[#allocation7 + $0xd8] sm:$0xff] %vm2869_vm3, %v3120_v14 }
 0x460   : > { %v2749_v15 = vpop.permute.xlu0 %2748  ;;  %v2538_v16 = vpop.permute.xlu1 %2537  ;;  %v3119_v17 = vld [vmem:[#allocation6 + $0xd0] sm:$0xff] }
 0x461   : > { %2829 = vst.msk [vmem:[#allocation6 + $0xe0] sm:$0xff] %vm2800_vm2, %v2749_v15  ;;  %3205 = vrot.lane.b32.xlu0 %v3119_v17, %s5039_s2 }
 0x462   : > { %2615 = vst.msk [vmem:[#allocation6 + $0xf8] sm:$0xff] %vm2583_vm1, %v2538_v16  ;;  %3207 = vrot.lane.b32.xlu1 %v3120_v14, %s5039_s2 }
 0x463   : > { %2896 = vst.msk [vmem:[#allocation7 + $0xd0] sm:$0xff] %vm2869_vm3, %v3119_v17 }
 0x464   : > { %v2755_v18 = vpop.permute.xlu1 %2754  ;;  %v2536_v19 = vpop.permute.xlu0 %2535  ;;  %v3122_v20 = vld [vmem:[#allocation6 + $0xe8] sm:$0xff] }
 0x465   : > { %2832 = vst.msk [vmem:[#allocation6 + $0xf8] sm:$0xff] %vm2800_vm2, %v2755_v18  ;;  %3015 = vrot.lane.b32.xlu0 %v3119_v17, %s5034_s17 }
 0x466   : > { %2614 = vst.msk [vmem:[#allocation6 + $0xf0] sm:$0xff] %vm2583_vm1, %v2536_v19  ;;  %3017 = vrot.lane.b32.xlu1 %v3120_v14, %s5034_s17 }
 0x467   : > { %2899 = vst.msk [vmem:[#allocation7 + $0xe8] sm:$0xff] %vm2869_vm3, %v3122_v20 }
 0x468   : > { %v2753_v21 = vpop.permute.xlu0 %2752  ;;  %v2542_v22 = vpop.permute.xlu1 %2541  ;;  %v3121_v23 = vld [vmem:[#allocation6 + $0xe0] sm:$0xff] }
 0x469   : > { %2831 = vst.msk [vmem:[#allocation6 + $0xf0] sm:$0xff] %vm2800_vm2, %v2753_v21  ;;  %3209 = vrot.lane.b32.xlu0 %v3121_v23, %s5039_s2 }
 0x46a   : > { %2617 = vst.msk [vmem:[#allocation6 + $0x108] sm:$0xff] %vm2583_vm1, %v2542_v22  ;;  %3211 = vrot.lane.b32.xlu1 %v3122_v20, %s5039_s2 }
 0x46b   : > { %2898 = vst.msk [vmem:[#allocation7 + $0xe0] sm:$0xff] %vm2869_vm3, %v3121_v23 }
 0x46c   : > { %v2759_v24 = vpop.permute.xlu1 %2758  ;;  %v3124_v25 = vld [vmem:[#allocation6 + $0xf8] sm:$0xff] }
 0x46d   : > { %2834 = vst.msk [vmem:[#allocation6 + $0x108] sm:$0xff] %vm2800_vm2, %v2759_v24  ;;  %3019 = vrot.lane.b32.xlu0 %v3121_v23, %s5034_s17 }
 0x46e   : > { %2901 = vst.msk [vmem:[#allocation7 + $0xf8] sm:$0xff] %vm2869_vm3, %v3124_v25  ;;  %3021 = vrot.lane.b32.xlu1 %v3122_v20, %s5034_s17 }
 0x470   : > { %v2540_v26 = vpop.permute.xlu1 %2539  ;;  %v3123_v27 = vld [vmem:[#allocation6 + $0xf0] sm:$0xff] }
 0x471   : > { %2616 = vst.msk [vmem:[#allocation6 + $0x100] sm:$0xff] %vm2583_vm1, %v2540_v26  ;;  %3213 = vrot.lane.b32.xlu0 %v3123_v27, %s5039_s2 }
 0x472   : > { %2900 = vst.msk [vmem:[#allocation7 + $0xf0] sm:$0xff] %vm2869_vm3, %v3123_v27  ;;  %3215 = vrot.lane.b32.xlu1 %v3124_v25, %s5039_s2 }
 0x473   : > { %v2968_v28 = vpop.permute.xlu0 %2967 }
 0x474   : > { %3064 = vst.msk [vmem:[#allocation7] sm:$0xff] %vm3063_vm4, %v2968_v28  ;;  %v2757_v29 = vpop.permute.xlu1 %2756  ;;  %v3126_v0 = vld [vmem:[#allocation6 + $0x108] sm:$0xff] }
 0x475   : > { %2833 = vst.msk [vmem:[#allocation6 + $0x100] sm:$0xff] %vm2800_vm2, %v2757_v29  ;;  %3023 = vrot.lane.b32.xlu0 %v3123_v27, %s5034_s17 }
 0x476   : > { %3025 = vrot.lane.b32.xlu1 %v3124_v25, %s5034_s17 }
 0x478   : > { %v2970_v30 = vpop.permute.xlu1 %2969 }
 0x479   : > { %3065 = vst.msk [vmem:[#allocation7 + $0x8] sm:$0xff] %vm3063_vm4, %v2970_v30 }
 0x47a   : > { %3219 = vrot.lane.b32.xlu1 %v3126_v0, %s5039_s2 }
 0x47b   : > { %v3162_v31 = vpop.permute.xlu0 %3161 }
 0x47c   : > { %3258 = vst.msk [vmem:[#allocation7] sm:$0xff] %vm3257_vm5, %v3162_v31  ;;  %v3164_v32 = vpop.permute.xlu1 %3163  ;;  %v3125_v33 = vld [vmem:[#allocation6 + $0x100] sm:$0xff] }
 0x47d   : > { %3259 = vst.msk [vmem:[#allocation7 + $0x8] sm:$0xff] %vm3257_vm5, %v3164_v32  ;;  %3217 = vrot.lane.b32.xlu0 %v3125_v33, %s5039_s2 }
 0x47e   : > { %3029 = vrot.lane.b32.xlu1 %v3126_v0, %s5034_s17 }
 0x47f   : > { %v2972_v34 = vpop.permute.xlu0 %2971 }
 0x480   : > { %3066 = vst.msk [vmem:[#allocation7 + $0x10] sm:$0xff] %vm3063_vm4, %v2972_v34  ;;  %v2974_v35 = vpop.permute.xlu1 %2973 }
 0x481   : > { %3067 = vst.msk [vmem:[#allocation7 + $0x18] sm:$0xff] %vm3063_vm4, %v2974_v35  ;;  %3027 = vrot.lane.b32.xlu0 %v3125_v33, %s5034_s17 }
 0x482   : > { %3223 = vrot.lane.b32.xlu1 %v3128_v36, %s5039_s2 }
 0x483   : > { %v3166_v37 = vpop.permute.xlu0 %3165  ;;  %v3290_v5 = vld [vmem:[#allocation7] sm:$0xff] }
 0x484   : > { %3260 = vst.msk [vmem:[#allocation7 + $0x10] sm:$0xff] %vm3257_vm5, %v3166_v37  ;;  %4403 = vmatprep.mubr.msk.f32.mxu1 %vm3331_vm6, %v3290_v5  ;;  %v3168_v38 = vpop.permute.xlu1 %3167  ;;  %v3291_v39 = vld [vmem:[#allocation7 + $0x8] sm:$0xff] }
 0x485   : > { %3261 = vst.msk [vmem:[#allocation7 + $0x18] sm:$0xff] %vm3257_vm5, %v3168_v38  ;;  %4404 = vmatmul.mubr.msk.f32.vlgmr.msra.gmra.mrb[0].mxu1 %vm3331_vm6, %v3291_v39  ;;  %3221 = vrot.lane.b32.xlu0 %v3127_v7, %s5039_s2 }
 0x487   : > { %v2976_v40 = vpop.permute.xlu0 %2975 }
 0x488   : > { %3068 = vst.msk [vmem:[#allocation7 + $0x20] sm:$0xff] %vm3063_vm4, %v2976_v40  ;;  %v2978_v41 = vpop.permute.xlu1 %2977 }
 0x489   : > { %3069 = vst.msk [vmem:[#allocation7 + $0x28] sm:$0xff] %vm3063_vm4, %v2978_v41 }
 0x48b   : > { %v3170_v42 = vpop.permute.xlu0 %3169  ;;  %v3292_v43 = vld [vmem:[#allocation7 + $0x10] sm:$0xff] }
 0x48c   : > { %3262 = vst.msk [vmem:[#allocation7 + $0x20] sm:$0xff] %vm3257_vm5, %v3170_v42  ;;  %4406 = vmatprep.mubr.msk.f32.mxu1 %vm3331_vm6, %v3292_v43  ;;  %v3172_v44 = vpop.permute.xlu1 %3171  ;;  %v3293_v45 = vld [vmem:[#allocation7 + $0x18] sm:$0xff] }
 0x48d   : > { %3263 = vst.msk [vmem:[#allocation7 + $0x28] sm:$0xff] %vm3257_vm5, %v3172_v44  ;;  %4407 = vmatmul.mubr.msk.f32.gmra.mrb[2].mxu1 %vm3331_vm6, %v3293_v45 }
 0x48f   : > { %v2980_v46 = vpop.permute.xlu0 %2979 }
 0x490   : > { %3070 = vst.msk [vmem:[#allocation7 + $0x30] sm:$0xff] %vm3063_vm4, %v2980_v46  ;;  %v2982_v47 = vpop.permute.xlu1 %2981 }
 0x491   : > { %3071 = vst.msk [vmem:[#allocation7 + $0x38] sm:$0xff] %vm3063_vm4, %v2982_v47 }
 0x493   : > { %v3174_v48 = vpop.permute.xlu0 %3173  ;;  %v3294_v49 = vld [vmem:[#allocation7 + $0x20] sm:$0xff] }
 0x494   : > { %3264 = vst.msk [vmem:[#allocation7 + $0x30] sm:$0xff] %vm3257_vm5, %v3174_v48  ;;  %4409 = vmatprep.mubr.msk.f32.mxu1 %vm3331_vm6, %v3294_v49  ;;  %v3176_v50 = vpop.permute.xlu1 %3175  ;;  %v3295_v51 = vld [vmem:[#allocation7 + $0x28] sm:$0xff] }
 0x495   : > { %3265 = vst.msk [vmem:[#allocation7 + $0x38] sm:$0xff] %vm3257_vm5, %v3176_v50  ;;  %4410 = vmatmul.mubr.msk.f32.gmra.mrb[4].mxu1 %vm3331_vm6, %v3295_v51 }
 0x497   : > { %v2984_v52 = vpop.permute.xlu0 %2983 }
 0x498   : > { %3072 = vst.msk [vmem:[#allocation7 + $0x40] sm:$0xff] %vm3063_vm4, %v2984_v52  ;;  %v2986_v53 = vpop.permute.xlu1 %2985 }
 0x499   : > { %3073 = vst.msk [vmem:[#allocation7 + $0x48] sm:$0xff] %vm3063_vm4, %v2986_v53 }
 0x49b   : > { %v3178_v54 = vpop.permute.xlu0 %3177  ;;  %v3296_v55 = vld [vmem:[#allocation7 + $0x30] sm:$0xff] }
 0x49c   : > { %3266 = vst.msk [vmem:[#allocation7 + $0x40] sm:$0xff] %vm3257_vm5, %v3178_v54  ;;  %4412 = vmatprep.mubr.msk.f32.mxu1 %vm3331_vm6, %v3296_v55  ;;  %v3180_v56 = vpop.permute.xlu1 %3179  ;;  %v3297_v57 = vld [vmem:[#allocation7 + $0x38] sm:$0xff] }
 0x49d   : > { %3267 = vst.msk [vmem:[#allocation7 + $0x48] sm:$0xff] %vm3257_vm5, %v3180_v56  ;;  %4413 = vmatmul.mubr.msk.f32.gmra.mrb[6].mxu1 %vm3331_vm6, %v3297_v57 }
 0x49f   : > { %v2988_v58 = vpop.permute.xlu0 %2987 }
 0x4a0   : > { %3074 = vst.msk [vmem:[#allocation7 + $0x50] sm:$0xff] %vm3063_vm4, %v2988_v58  ;;  %v2990_v59 = vpop.permute.xlu1 %2989 }
 0x4a1   : > { %3075 = vst.msk [vmem:[#allocation7 + $0x58] sm:$0xff] %vm3063_vm4, %v2990_v59 }
 0x4a3   : > { %v3182_v60 = vpop.permute.xlu0 %3181  ;;  %v3298_v61 = vld [vmem:[#allocation7 + $0x40] sm:$0xff] }
 0x4a4   : > { %3268 = vst.msk [vmem:[#allocation7 + $0x50] sm:$0xff] %vm3257_vm5, %v3182_v60  ;;  %4415 = vmatprep.mubr.msk.f32.mxu1 %vm3331_vm6, %v3298_v61  ;;  %v3184_v62 = vpop.permute.xlu1 %3183  ;;  %v3299_v63 = vld [vmem:[#allocation7 + $0x48] sm:$0xff] }
 0x4a5   : > { %3269 = vst.msk [vmem:[#allocation7 + $0x58] sm:$0xff] %vm3257_vm5, %v3184_v62  ;;  %4416 = vmatmul.mubr.msk.f32.gmra.mrb[8].mxu1 %vm3331_vm6, %v3299_v63  ;;  %v6556_v62 = vld [vmem:[#allocation19] ss:$0 sm:$0xff] }
 0x4a7   : > { %v2992_v1 = vpop.permute.xlu0 %2991 }
 0x4a8   : > { %3076 = vst.msk [vmem:[#allocation7 + $0x60] sm:$0xff] %vm3063_vm4, %v2992_v1  ;;  %v2994_v2 = vpop.permute.xlu1 %2993  ;;  %v6558_v1 = vld [vmem:[#allocation20] ss:$0 sm:$0xff] }
 0x4a9   : > { %3077 = vst.msk [vmem:[#allocation7 + $0x68] sm:$0xff] %vm3063_vm4, %v2994_v2 }
 0x4ab   : > { %v3186_v3 = vpop.permute.xlu0 %3185  ;;  %v3300_v4 = vld [vmem:[#allocation7 + $0x50] sm:$0xff] }
 0x4ac   : > { %3270 = vst.msk [vmem:[#allocation7 + $0x60] sm:$0xff] %vm3257_vm5, %v3186_v3  ;;  %4418 = vmatprep.mubr.msk.f32.mxu1 %vm3331_vm6, %v3300_v4  ;;  %v3188_v6 = vpop.permute.xlu1 %3187  ;;  %v3301_v8 = vld [vmem:[#allocation7 + $0x58] sm:$0xff] }
 0x4ad   : > { %3271 = vst.msk [vmem:[#allocation7 + $0x68] sm:$0xff] %vm3257_vm5, %v3188_v6  ;;  %4419 = vmatmul.mubr.msk.f32.gmra.mrb[10].mxu1 %vm3331_vm6, %v3301_v8 }
 0x4af   : > { %v2996_v9 = vpop.permute.xlu0 %2995 }
 0x4b0   : > { %3078 = vst.msk [vmem:[#allocation7 + $0x70] sm:$0xff] %vm3063_vm4, %v2996_v9  ;;  %v2998_v10 = vpop.permute.xlu1 %2997 }
 0x4b1   : > { %3079 = vst.msk [vmem:[#allocation7 + $0x78] sm:$0xff] %vm3063_vm4, %v2998_v10 }
 0x4b3   : > { %v3190_v11 = vpop.permute.xlu0 %3189  ;;  %v3302_v12 = vld [vmem:[#allocation7 + $0x60] sm:$0xff] }
 0x4b4   : > { %3272 = vst.msk [vmem:[#allocation7 + $0x70] sm:$0xff] %vm3257_vm5, %v3190_v11  ;;  %4421 = vmatprep.mubr.msk.f32.mxu1 %vm3331_vm6, %v3302_v12  ;;  %v3192_v13 = vpop.permute.xlu1 %3191  ;;  %v3303_v14 = vld [vmem:[#allocation7 + $0x68] sm:$0xff] }
 0x4b5   : > { %3273 = vst.msk [vmem:[#allocation7 + $0x78] sm:$0xff] %vm3257_vm5, %v3192_v13  ;;  %4422 = vmatmul.mubr.msk.f32.gmra.mrb[12].mxu1 %vm3331_vm6, %v3303_v14 }
 0x4b7   : > { %v3000_v15 = vpop.permute.xlu0 %2999 }
 0x4b8   : > { %3080 = vst.msk [vmem:[#allocation7 + $0x80] sm:$0xff] %vm3063_vm4, %v3000_v15  ;;  %v3002_v16 = vpop.permute.xlu1 %3001 }
 0x4b9   : > { %3081 = vst.msk [vmem:[#allocation7 + $0x88] sm:$0xff] %vm3063_vm4, %v3002_v16 }
 0x4bb   : > { %v3194_v17 = vpop.permute.xlu0 %3193  ;;  %v3304_v18 = vld [vmem:[#allocation7 + $0x70] sm:$0xff] }
 0x4bc   : > { %3274 = vst.msk [vmem:[#allocation7 + $0x80] sm:$0xff] %vm3257_vm5, %v3194_v17  ;;  %4424 = vmatprep.mubr.msk.f32.mxu1 %vm3331_vm6, %v3304_v18  ;;  %v3196_v19 = vpop.permute.xlu1 %3195  ;;  %v3305_v20 = vld [vmem:[#allocation7 + $0x78] sm:$0xff] }
 0x4bd   : > { %3275 = vst.msk [vmem:[#allocation7 + $0x88] sm:$0xff] %vm3257_vm5, %v3196_v19  ;;  %4425 = vmatmul.mubr.msk.f32.gmra.mrb[14].mxu1 %vm3331_vm6, %v3305_v20 }
 0x4bf   : > { %v3004_v21 = vpop.permute.xlu0 %3003 }
 0x4c0   : > { %3082 = vst.msk [vmem:[#allocation7 + $0x90] sm:$0xff] %vm3063_vm4, %v3004_v21  ;;  %v3006_v22 = vpop.permute.xlu1 %3005 }
 0x4c1   : > { %3083 = vst.msk [vmem:[#allocation7 + $0x98] sm:$0xff] %vm3063_vm4, %v3006_v22 }
 0x4c3   : > { %v3198_v23 = vpop.permute.xlu0 %3197  ;;  %v3306_v24 = vld [vmem:[#allocation7 + $0x80] sm:$0xff] }
 0x4c4   : > { %3276 = vst.msk [vmem:[#allocation7 + $0x90] sm:$0xff] %vm3257_vm5, %v3198_v23  ;;  %4427 = vmatprep.mubr.msk.f32.mxu1 %vm3331_vm6, %v3306_v24  ;;  %v3200_v25 = vpop.permute.xlu1 %3199  ;;  %v3307_v26 = vld [vmem:[#allocation7 + $0x88] sm:$0xff] }
 0x4c5   : > { %3277 = vst.msk [vmem:[#allocation7 + $0x98] sm:$0xff] %vm3257_vm5, %v3200_v25  ;;  %4428 = vmatmul.mubr.msk.f32.gmra.mrb[16].mxu1 %vm3331_vm6, %v3307_v26 }
 0x4c7   : > { %v3008_v27 = vpop.permute.xlu0 %3007 }
 0x4c8   : > { %3084 = vst.msk [vmem:[#allocation7 + $0xa0] sm:$0xff] %vm3063_vm4, %v3008_v27  ;;  %v3010_v28 = vpop.permute.xlu1 %3009 }
 0x4c9   : > { %3085 = vst.msk [vmem:[#allocation7 + $0xa8] sm:$0xff] %vm3063_vm4, %v3010_v28 }
 0x4cb   : > { %v3202_v29 = vpop.permute.xlu0 %3201  ;;  %v3308_v30 = vld [vmem:[#allocation7 + $0x90] sm:$0xff] }
 0x4cc   : > { %3278 = vst.msk [vmem:[#allocation7 + $0xa0] sm:$0xff] %vm3257_vm5, %v3202_v29  ;;  %4430 = vmatprep.mubr.msk.f32.mxu1 %vm3331_vm6, %v3308_v30  ;;  %v3204_v0 = vpop.permute.xlu1 %3203  ;;  %v3309_v31 = vld [vmem:[#allocation7 + $0x98] sm:$0xff] }
 0x4cd   : > { %3279 = vst.msk [vmem:[#allocation7 + $0xa8] sm:$0xff] %vm3257_vm5, %v3204_v0  ;;  %4431 = vmatmul.mubr.msk.f32.gmra.mrb[18].mxu1 %vm3331_vm6, %v3309_v31 }
 0x4cf   : > { %v3012_v32 = vpop.permute.xlu0 %3011 }
 0x4d0   : > { %3086 = vst.msk [vmem:[#allocation7 + $0xb0] sm:$0xff] %vm3063_vm4, %v3012_v32  ;;  %v3014_v33 = vpop.permute.xlu1 %3013 }
 0x4d1   : > { %3087 = vst.msk [vmem:[#allocation7 + $0xb8] sm:$0xff] %vm3063_vm4, %v3014_v33 }
 0x4d3   : > { %v3206_v34 = vpop.permute.xlu0 %3205  ;;  %v3310_v35 = vld [vmem:[#allocation7 + $0xa0] sm:$0xff] }
 0x4d4   : > { %3280 = vst.msk [vmem:[#allocation7 + $0xb0] sm:$0xff] %vm3257_vm5, %v3206_v34  ;;  %4433 = vmatprep.mubr.msk.f32.mxu1 %vm3331_vm6, %v3310_v35  ;;  %v3208_v36 = vpop.permute.xlu1 %3207  ;;  %v3311_v37 = vld [vmem:[#allocation7 + $0xa8] sm:$0xff] }
 0x4d5   : > { %3281 = vst.msk [vmem:[#allocation7 + $0xb8] sm:$0xff] %vm3257_vm5, %v3208_v36  ;;  %4434 = vmatmul.mubr.msk.f32.gmra.mrb[20].mxu1 %vm3331_vm6, %v3311_v37 }
 0x4d7   : > { %v3016_v5 = vpop.permute.xlu0 %3015 }
 0x4d8   : > { %3088 = vst.msk [vmem:[#allocation7 + $0xc0] sm:$0xff] %vm3063_vm4, %v3016_v5  ;;  %v3018_v38 = vpop.permute.xlu1 %3017 }
 0x4d9   : > { %3089 = vst.msk [vmem:[#allocation7 + $0xc8] sm:$0xff] %vm3063_vm4, %v3018_v38 }
 0x4db   : > { %v3210_v39 = vpop.permute.xlu0 %3209  ;;  %v3312_v7 = vld [vmem:[#allocation7 + $0xb0] sm:$0xff] }
 0x4dc   : > { %3282 = vst.msk [vmem:[#allocation7 + $0xc0] sm:$0xff] %vm3257_vm5, %v3210_v39  ;;  %4436 = vmatprep.mubr.msk.f32.mxu1 %vm3331_vm6, %v3312_v7  ;;  %v3212_v40 = vpop.permute.xlu1 %3211  ;;  %v3313_v41 = vld [vmem:[#allocation7 + $0xb8] sm:$0xff] }
 0x4dd   : > { %3283 = vst.msk [vmem:[#allocation7 + $0xc8] sm:$0xff] %vm3257_vm5, %v3212_v40  ;;  %4437 = vmatmul.mubr.msk.f32.gmra.mrb[22].mxu1 %vm3331_vm6, %v3313_v41 }
 0x4df   : > { %v3020_v42 = vpop.permute.xlu0 %3019 }
 0x4e0   : > { %3090 = vst.msk [vmem:[#allocation7 + $0xd0] sm:$0xff] %vm3063_vm4, %v3020_v42  ;;  %v3022_v43 = vpop.permute.xlu1 %3021 }
 0x4e1   : > { %3091 = vst.msk [vmem:[#allocation7 + $0xd8] sm:$0xff] %vm3063_vm4, %v3022_v43 }
 0x4e3   : > { %v3214_v44 = vpop.permute.xlu0 %3213  ;;  %v3314_v45 = vld [vmem:[#allocation7 + $0xc0] sm:$0xff] }
 0x4e4   : > { %3284 = vst.msk [vmem:[#allocation7 + $0xd0] sm:$0xff] %vm3257_vm5, %v3214_v44  ;;  %4439 = vmatprep.mubr.msk.f32.mxu1 %vm3331_vm6, %v3314_v45  ;;  %v3216_v46 = vpop.permute.xlu1 %3215  ;;  %v3315_v47 = vld [vmem:[#allocation7 + $0xc8] sm:$0xff] }
 0x4e5   : > { %3285 = vst.msk [vmem:[#allocation7 + $0xd8] sm:$0xff] %vm3257_vm5, %v3216_v46  ;;  %4440 = vmatmul.mubr.msk.f32.gmra.mrb[24].mxu1 %vm3331_vm6, %v3315_v47 }
 0x4e7   : > { %v3024_v48 = vpop.permute.xlu0 %3023 }
 0x4e8   : > { %3092 = vst.msk [vmem:[#allocation7 + $0xe0] sm:$0xff] %vm3063_vm4, %v3024_v48  ;;  %v3026_v49 = vpop.permute.xlu1 %3025 }
 0x4e9   : > { %3093 = vst.msk [vmem:[#allocation7 + $0xe8] sm:$0xff] %vm3063_vm4, %v3026_v49 }
 0x4eb   : > { %v3316_v50 = vld [vmem:[#allocation7 + $0xd0] sm:$0xff] }
 0x4ec   : > { %4442 = vmatprep.mubr.msk.f32.mxu1 %vm3331_vm6, %v3316_v50  ;;  %v3220_v51 = vpop.permute.xlu1 %3219  ;;  %v3317_v52 = vld [vmem:[#allocation7 + $0xd8] sm:$0xff] }
 0x4ed   : > { %3287 = vst.msk [vmem:[#allocation7 + $0xe8] sm:$0xff] %vm3257_vm5, %v3220_v51  ;;  %4443 = vmatmul.mubr.msk.f32.gmra.mrb[26].mxu1 %vm3331_vm6, %v3317_v52 }
 0x4ef   : > { %v3218_v53 = vpop.permute.xlu0 %3217 }
 0x4f0   : > { %3286 = vst.msk [vmem:[#allocation7 + $0xe0] sm:$0xff] %vm3257_vm5, %v3218_v53  ;;  %v3030_v54 = vpop.permute.xlu1 %3029 }
 0x4f1   : > { %3095 = vst.msk [vmem:[#allocation7 + $0xf8] sm:$0xff] %vm3063_vm4, %v3030_v54 }
 0x4f3   : > { %v3028_v55 = vpop.permute.xlu0 %3027 }
 0x4f4   : > { %3094 = vst.msk [vmem:[#allocation7 + $0xf0] sm:$0xff] %vm3063_vm4, %v3028_v55  ;;  %v3224_v56 = vpop.permute.xlu1 %3223  ;;  %v3319_v59 = vld [vmem:[#allocation7 + $0xe8] sm:$0xff] }
 0x4f5   : > { %3289 = vst.msk [vmem:[#allocation7 + $0xf8] sm:$0xff] %vm3257_vm5, %v3224_v56 }
 0x4f7   : > { %v3222_v57 = vpop.permute.xlu0 %3221  ;;  %v3318_v58 = vld [vmem:[#allocation7 + $0xe0] sm:$0xff] }
 0x4f8   : > { %3288 = vst.msk [vmem:[#allocation7 + $0xf0] sm:$0xff] %vm3257_vm5, %v3222_v57  ;;  %4445 = vmatprep.mubr.msk.f32.mxu1 %vm3331_vm6, %v3318_v58 }
 0x4f9   : > { %4446 = vmatmul.mubr.msk.f32.gmra.mrb[28].mxu1 %vm3331_vm6, %v3319_v59 }
 0x4fc   : > { %v3321_v61 = vld [vmem:[#allocation7 + $0xf8] sm:$0xff] }
 0x4ff   : > { %v3320_v60 = vld [vmem:[#allocation7 + $0xf0] sm:$0xff] }
 0x500   : > { %4448 = vmatprep.mubr.msk.f32.mxu1 %vm3331_vm6, %v3320_v60 }
 0x501   : > { %4449 = vmatmul.mubr.msk.f32.gmra.mrb[30].mxu1 %vm3331_vm6, %v3321_v61 }
 0x558   : > { %v4405_v63 = vpop.f32.mrb[0].mxu1 }
 0x559   : > { %v3661_v2 = vmul.f32 %v4405_v63, %v6556_v62  ;;  %v3494_v3 = vpop.f32.mrb[1].mxu1 }
 0x55a   : > { %v3660_v4 = vmul.f32 %v6556_v62, %v3494_v3 }
 0x55b   : > { %v3700_v6 = vadd.f32 %v6558_v1, %v3661_v2 }
 0x55c   : > { %v3699_v8 = vadd.f32 %v6558_v1, %v3660_v4 }
 0x55d   : > { %v3732_v9 = vmax.f32 %v3700_v6, 0.0 }
 0x55e   : > { %v3731_v10 = vmax.f32 %v3699_v8, 0.0 }
 0x55f   : > { %3764 = vst.msk [vmem:[%s6565_s24 + $0x8] sm:$0xff] %vm554_vm0, %v3732_v9 }
 0x560   : > { %3763 = vst.msk [vmem:[%s6565_s24] sm:$0xff] %vm554_vm0, %v3731_v10  ;;  %v4408_v11 = vpop.f32.mrb[2].mxu1 }
 0x561   : > { %v3663_v12 = vmul.f32 %v4408_v11, %v6556_v62  ;;  %v3504_v13 = vpop.f32.mrb[3].mxu1 }
 0x562   : > { %v3662_v14 = vmul.f32 %v6556_v62, %v3504_v13 }
 0x563   : > { %v3702_v15 = vadd.f32 %v6558_v1, %v3663_v12 }
 0x564   : > { %v3701_v16 = vadd.f32 %v6558_v1, %v3662_v14 }
 0x565   : > { %v3734_v17 = vmax.f32 %v3702_v15, 0.0 }
 0x566   : > { %v3733_v18 = vmax.f32 %v3701_v16, 0.0 }
 0x567   : > { %3766 = vst.msk [vmem:[%s6565_s24 + $0x18] sm:$0xff] %vm554_vm0, %v3734_v17 }
 0x568   : > { %3765 = vst.msk [vmem:[%s6565_s24 + $0x10] sm:$0xff] %vm554_vm0, %v3733_v18  ;;  %v4411_v19 = vpop.f32.mrb[4].mxu1 }
 0x569   : > { %v3665_v20 = vmul.f32 %v4411_v19, %v6556_v62  ;;  %v3514_v21 = vpop.f32.mrb[5].mxu1 }
 0x56a   : > { %v3664_v22 = vmul.f32 %v6556_v62, %v3514_v21 }
 0x56b   : > { %v3704_v23 = vadd.f32 %v6558_v1, %v3665_v20 }
 0x56c   : > { %v3703_v24 = vadd.f32 %v6558_v1, %v3664_v22 }
 0x56d   : > { %v3736_v25 = vmax.f32 %v3704_v23, 0.0 }
 0x56e   : > { %v3735_v26 = vmax.f32 %v3703_v24, 0.0 }
 0x56f   : > { %3768 = vst.msk [vmem:[%s6565_s24 + $0x28] sm:$0xff] %vm554_vm0, %v3736_v25 }
 0x570   : > { %3767 = vst.msk [vmem:[%s6565_s24 + $0x20] sm:$0xff] %vm554_vm0, %v3735_v26  ;;  %v4414_v27 = vpop.f32.mrb[6].mxu1 }
 0x571   : > { %v3667_v28 = vmul.f32 %v4414_v27, %v6556_v62  ;;  %v3524_v29 = vpop.f32.mrb[7].mxu1 }
 0x572   : > { %v3666_v30 = vmul.f32 %v6556_v62, %v3524_v29 }
 0x573   : > { %v3706_v0 = vadd.f32 %v6558_v1, %v3667_v28 }
 0x574   : > { %v3705_v31 = vadd.f32 %v6558_v1, %v3666_v30 }
 0x575   : > { %v3738_v32 = vmax.f32 %v3706_v0, 0.0 }
 0x576   : > { %v3737_v33 = vmax.f32 %v3705_v31, 0.0 }
 0x577   : > { %3770 = vst.msk [vmem:[%s6565_s24 + $0x38] sm:$0xff] %vm554_vm0, %v3738_v32 }
 0x578   : > { %3769 = vst.msk [vmem:[%s6565_s24 + $0x30] sm:$0xff] %vm554_vm0, %v3737_v33  ;;  %v4417_v34 = vpop.f32.mrb[8].mxu1 }
 0x579   : > { %v3669_v35 = vmul.f32 %v4417_v34, %v6556_v62  ;;  %v3534_v36 = vpop.f32.mrb[9].mxu1 }
 0x57a   : > { %v3668_v37 = vmul.f32 %v6556_v62, %v3534_v36 }
 0x57b   : > { %v3708_v5 = vadd.f32 %v6558_v1, %v3669_v35 }
 0x57c   : > { %v3707_v38 = vadd.f32 %v6558_v1, %v3668_v37 }
 0x57d   : > { %v3740_v39 = vmax.f32 %v3708_v5, 0.0 }
 0x57e   : > { %v3739_v7 = vmax.f32 %v3707_v38, 0.0 }
 0x57f   : > { %3772 = vst.msk [vmem:[%s6565_s24 + $0x48] sm:$0xff] %vm554_vm0, %v3740_v39 }
 0x580   : > { %3771 = vst.msk [vmem:[%s6565_s24 + $0x40] sm:$0xff] %vm554_vm0, %v3739_v7  ;;  %v4420_v40 = vpop.f32.mrb[10].mxu1 }
 0x581   : > { %v3671_v41 = vmul.f32 %v4420_v40, %v6556_v62  ;;  %v3544_v42 = vpop.f32.mrb[11].mxu1 }
 0x582   : > { %v3670_v43 = vmul.f32 %v6556_v62, %v3544_v42 }
 0x583   : > { %v3710_v44 = vadd.f32 %v6558_v1, %v3671_v41 }
 0x584   : > { %v3709_v45 = vadd.f32 %v6558_v1, %v3670_v43 }
 0x585   : > { %v3742_v46 = vmax.f32 %v3710_v44, 0.0 }
 0x586   : > { %v3741_v47 = vmax.f32 %v3709_v45, 0.0 }
 0x587   : > { %3774 = vst.msk [vmem:[%s6565_s24 + $0x58] sm:$0xff] %vm554_vm0, %v3742_v46 }
 0x588   : > { %3773 = vst.msk [vmem:[%s6565_s24 + $0x50] sm:$0xff] %vm554_vm0, %v3741_v47  ;;  %v4423_v48 = vpop.f32.mrb[12].mxu1 }
 0x589   : > { %v3673_v49 = vmul.f32 %v4423_v48, %v6556_v62  ;;  %v3554_v50 = vpop.f32.mrb[13].mxu1 }
 0x58a   : > { %v3672_v51 = vmul.f32 %v6556_v62, %v3554_v50 }
 0x58b   : > { %v3712_v52 = vadd.f32 %v6558_v1, %v3673_v49 }
 0x58c   : > { %v3711_v53 = vadd.f32 %v6558_v1, %v3672_v51 }
 0x58d   : > { %v3744_v54 = vmax.f32 %v3712_v52, 0.0 }
 0x58e   : > { %v3743_v55 = vmax.f32 %v3711_v53, 0.0 }
 0x58f   : > { %3776 = vst.msk [vmem:[%s6565_s24 + $0x68] sm:$0xff] %vm554_vm0, %v3744_v54 }
 0x590   : > { %3775 = vst.msk [vmem:[%s6565_s24 + $0x60] sm:$0xff] %vm554_vm0, %v3743_v55  ;;  %v4426_v56 = vpop.f32.mrb[14].mxu1 }
 0x591   : > { %v3675_v57 = vmul.f32 %v4426_v56, %v6556_v62  ;;  %v3564_v58 = vpop.f32.mrb[15].mxu1 }
 0x592   : > { %v3674_v59 = vmul.f32 %v6556_v62, %v3564_v58 }
 0x593   : > { %v3714_v60 = vadd.f32 %v6558_v1, %v3675_v57 }
 0x594   : > { %v3713_v61 = vadd.f32 %v6558_v1, %v3674_v59 }
 0x595   : > { %v3746_v63 = vmax.f32 %v3714_v60, 0.0 }
 0x596   : > { %v3745_v2 = vmax.f32 %v3713_v61, 0.0 }
 0x597   : > { %3778 = vst.msk [vmem:[%s6565_s24 + $0x78] sm:$0xff] %vm554_vm0, %v3746_v63 }
 0x598   : > { %3777 = vst.msk [vmem:[%s6565_s24 + $0x70] sm:$0xff] %vm554_vm0, %v3745_v2  ;;  %v4429_v3 = vpop.f32.mrb[16].mxu1 }
 0x599   : > { %v3677_v4 = vmul.f32 %v4429_v3, %v6556_v62  ;;  %v3574_v6 = vpop.f32.mrb[17].mxu1 }
 0x59a   : > { %v3676_v8 = vmul.f32 %v6556_v62, %v3574_v6 }
 0x59b   : > { %v3716_v9 = vadd.f32 %v6558_v1, %v3677_v4 }
 0x59c   : > { %v3715_v10 = vadd.f32 %v6558_v1, %v3676_v8 }
 0x59d   : > { %v3748_v11 = vmax.f32 %v3716_v9, 0.0 }
 0x59e   : > { %v3747_v12 = vmax.f32 %v3715_v10, 0.0 }
 0x59f   : > { %3780 = vst.msk [vmem:[%s6565_s24 + $0x88] sm:$0xff] %vm554_vm0, %v3748_v11 }
 0x5a0   : > { %3779 = vst.msk [vmem:[%s6565_s24 + $0x80] sm:$0xff] %vm554_vm0, %v3747_v12  ;;  %v4432_v13 = vpop.f32.mrb[18].mxu1 }
 0x5a1   : > { %v3679_v14 = vmul.f32 %v4432_v13, %v6556_v62  ;;  %v3584_v15 = vpop.f32.mrb[19].mxu1 }
 0x5a2   : > { %v3678_v16 = vmul.f32 %v6556_v62, %v3584_v15 }
 0x5a3   : > { %v3718_v17 = vadd.f32 %v6558_v1, %v3679_v14 }
 0x5a4   : > { %v3717_v18 = vadd.f32 %v6558_v1, %v3678_v16 }
 0x5a5   : > { %v3750_v19 = vmax.f32 %v3718_v17, 0.0 }
 0x5a6   : > { %v3749_v20 = vmax.f32 %v3717_v18, 0.0 }
 0x5a7   : > { %3782 = vst.msk [vmem:[%s6565_s24 + $0x98] sm:$0xff] %vm554_vm0, %v3750_v19 }
 0x5a8   : > { %3781 = vst.msk [vmem:[%s6565_s24 + $0x90] sm:$0xff] %vm554_vm0, %v3749_v20  ;;  %v4435_v21 = vpop.f32.mrb[20].mxu1 }
 0x5a9   : > { %v3681_v22 = vmul.f32 %v4435_v21, %v6556_v62  ;;  %v3594_v23 = vpop.f32.mrb[21].mxu1 }
 0x5aa   : > { %v3680_v24 = vmul.f32 %v6556_v62, %v3594_v23 }
 0x5ab   : > { %v3720_v25 = vadd.f32 %v6558_v1, %v3681_v22 }
 0x5ac   : > { %v3719_v26 = vadd.f32 %v6558_v1, %v3680_v24 }
 0x5ad   : > { %v3752_v27 = vmax.f32 %v3720_v25, 0.0 }
 0x5ae   : > { %v3751_v28 = vmax.f32 %v3719_v26, 0.0 }
 0x5af   : > { %3784 = vst.msk [vmem:[%s6565_s24 + $0xa8] sm:$0xff] %vm554_vm0, %v3752_v27 }
 0x5b0   : > { %3783 = vst.msk [vmem:[%s6565_s24 + $0xa0] sm:$0xff] %vm554_vm0, %v3751_v28  ;;  %v4438_v29 = vpop.f32.mrb[22].mxu1 }
 0x5b1   : > { %v3683_v30 = vmul.f32 %v4438_v29, %v6556_v62  ;;  %v3604_v0 = vpop.f32.mrb[23].mxu1 }
 0x5b2   : > { %v3682_v31 = vmul.f32 %v6556_v62, %v3604_v0 }
 0x5b3   : > { %v3722_v32 = vadd.f32 %v6558_v1, %v3683_v30 }
 0x5b4   : > { %v3721_v33 = vadd.f32 %v6558_v1, %v3682_v31 }
 0x5b5   : > { %v3754_v34 = vmax.f32 %v3722_v32, 0.0 }
 0x5b6   : > { %v3753_v35 = vmax.f32 %v3721_v33, 0.0 }
 0x5b7   : > { %3786 = vst.msk [vmem:[%s6565_s24 + $0xb8] sm:$0xff] %vm554_vm0, %v3754_v34 }
 0x5b8   : > { %3785 = vst.msk [vmem:[%s6565_s24 + $0xb0] sm:$0xff] %vm554_vm0, %v3753_v35  ;;  %v4441_v36 = vpop.f32.mrb[24].mxu1 }
 0x5b9   : > { %v3685_v37 = vmul.f32 %v4441_v36, %v6556_v62  ;;  %v3614_v5 = vpop.f32.mrb[25].mxu1 }
 0x5ba   : > { %v3684_v38 = vmul.f32 %v6556_v62, %v3614_v5 }
 0x5bb   : > { %v3724_v39 = vadd.f32 %v6558_v1, %v3685_v37 }
 0x5bc   : > { %v3723_v7 = vadd.f32 %v6558_v1, %v3684_v38 }
 0x5bd   : > { %v3756_v40 = vmax.f32 %v3724_v39, 0.0 }
 0x5be   : > { %v3755_v41 = vmax.f32 %v3723_v7, 0.0 }
 0x5bf   : > { %3788 = vst.msk [vmem:[%s6565_s24 + $0xc8] sm:$0xff] %vm554_vm0, %v3756_v40 }
 0x5c0   : > { %3787 = vst.msk [vmem:[%s6565_s24 + $0xc0] sm:$0xff] %vm554_vm0, %v3755_v41  ;;  %v4444_v42 = vpop.f32.mrb[26].mxu1 }
 0x5c1   : > { %v3687_v43 = vmul.f32 %v4444_v42, %v6556_v62  ;;  %v3624_v44 = vpop.f32.mrb[27].mxu1 }
 0x5c2   : > { %v3686_v45 = vmul.f32 %v6556_v62, %v3624_v44 }
 0x5c3   : > { %v3726_v46 = vadd.f32 %v6558_v1, %v3687_v43 }
 0x5c4   : > { %v3725_v47 = vadd.f32 %v6558_v1, %v3686_v45 }
 0x5c5   : > { %v3758_v48 = vmax.f32 %v3726_v46, 0.0 }
 0x5c6   : > { %v3757_v49 = vmax.f32 %v3725_v47, 0.0 }
 0x5c7   : > { %3790 = vst.msk [vmem:[%s6565_s24 + $0xd8] sm:$0xff] %vm554_vm0, %v3758_v48 }
 0x5c8   : > { %3789 = vst.msk [vmem:[%s6565_s24 + $0xd0] sm:$0xff] %vm554_vm0, %v3757_v49 }
 0x5cc   : > { %v4447_v50 = vpop.f32.mrb[28].mxu1 }
 0x5cd   : > { %v3689_v51 = vmul.f32 %v4447_v50, %v6556_v62  ;;  %v3634_v52 = vpop.f32.mrb[29].mxu1 }
 0x5ce   : > { %v3688_v53 = vmul.f32 %v6556_v62, %v3634_v52 }
 0x5cf   : > { %v3728_v54 = vadd.f32 %v6558_v1, %v3689_v51 }
 0x5d0   : > { %v3727_v55 = vadd.f32 %v6558_v1, %v3688_v53 }
 0x5d1   : > { %v3760_v56 = vmax.f32 %v3728_v54, 0.0 }
 0x5d2   : > { %v3759_v57 = vmax.f32 %v3727_v55, 0.0 }
 0x5d3   : > { %3792 = vst.msk [vmem:[%s6565_s24 + $0xe8] sm:$0xff] %vm554_vm0, %v3760_v56 }
 0x5d4   : > { %3791 = vst.msk [vmem:[%s6565_s24 + $0xe0] sm:$0xff] %vm554_vm0, %v3759_v57  ;;  %v4450_v58 = vpop.f32.mrb[30].mxu1 }
 0x5d5   : > { %v3691_v59 = vmul.f32 %v4450_v58, %v6556_v62  ;;  %v3644_v60 = vpop.f32.mrb[31].mxu1 }
 0x5d6   : > { %v3690_v61 = vmul.f32 %v6556_v62, %v3644_v60 }
 0x5d7   : > { %v3730_v63 = vadd.f32 %v6558_v1, %v3691_v59 }
 0x5d8   : > { %v3729_v2 = vadd.f32 %v6558_v1, %v3690_v61 }
 0x5d9   : > { %v3762_v3 = vmax.f32 %v3730_v63, 0.0 }
 0x5da   : > { %v3761_v4 = vmax.f32 %v3729_v2, 0.0 }
 0x5db   : > { %3794 = vst.msk [vmem:[%s6565_s24 + $0xf8] sm:$0xff] %vm554_vm0, %v3762_v3 }
 0x5dc   : > { %3793 = vst.msk [vmem:[%s6565_s24 + $0xf0] sm:$0xff] %vm554_vm0, %v3761_v4 }
 0x5dd   : > { %4944 = shalt.err (!%p4941_p0)
}
 0x5de   : > { %s4945_s17 = scalar_lea.hbm %s6692_s16, 4096  ;;  %s4949_s14 = scalar_lea.hbm %s6751_s8, 8192 }
 0x5df   : > { %p4946_p12 = scmp.ne.s32.totalorder %s6692_s16, %s4945_s17  ;;  %p4950_p3 = scmp.lt.u32.totalorder %s6692_s16, %s6751_s8 }
 0x5e0   : > { %p4951_p6 = scmp.lt.u32.totalorder %s4949_s14, %s4945_s17  ;;  %p4953_p4 = scmp.lt.u32.totalorder %s4945_s17, %s6692_s16 }
 0x5e1   : > { %p4947_p13 = pnand %p4946_p12, %p6785_p10 }
 0x5e2   : > { %p4952_p2 = por %p4951_p6, %p4950_p3 }
 0x5e3   : > { %p4948_p1 = pneg %p4947_p13 }
 0x5e4   : > { %p4954_p5 = por %p4953_p4, %p4952_p2 }
 0x5e6   : > { %p4955_p7 = pnand %p4954_p5, %p4948_p1 }
 0x5e8   : > { %4958 = shalt.err (!%p4955_p7)
}
 0x5e9   : > { %s5041_s24 = smov 128  }
 0x5ea   : > { %4525 = dma.vmem_to_hbm [thread:$0]  (%p6785_p10), %s6694_s25, 4096, %s6692_s16, %s3796_s11, %s5041_s24, %s5041_s24, %s5032_s13  }
 0x5eb PF: > { %s3824_s26 = sand.u32 1, %s5005_s27   ;;  %p6786_p9 = scmp.ne.s32.totalorder %s6772_s21, 0 }
 0x5ec   : > { %p6787_p8 = scmp.ge.s32.totalorder %s5017_s30, 2  ;;  %s3825_s10 = scalar_lea.sflag [#allocation10], %s3824_s26 }
 0x5ee   : > { %p4554_p11 = pnand %p6787_p8, %p6786_p9 }
 0x5f0   : > { %5000 = dma.done.wait (!%p4554_p11), %s3825_s10, 4096  }
 0x5f1   : > { %5002 = vsyncadd (!%p4554_p11), %s3825_s10, 4294963200  ;;  %p27_p0 = scmp.ge.s32.totalorder %s5270_s15, 4   ;;  %s6788_s27 = smov %s5009_s28 }
 0x5f2   : > { %s6789_s28 = smov %s5013_s29  ;;  %s6790_s29 = smov %s5281_s9 }
 0x5f3   : > { %s6791_s30 = smov %s5270_s15  ;;  %29 = sbr.rel (!%p27_p0) target bundleno = 16 (0x10), region = 142 }
 0x5fa   :  { %3830 = vsyncpa [#allocation9], 1 }
 0x5fb   :  { %3832 = vsyncpa [#allocation9 + $0x1], 1 }
 0x5fc   :  { %3833 = vsyncpa [#allocation12], 1 }
 0x5fd   :  { %3835 = vsyncpa [#allocation12 + $0x1], 1 }
 0x5fe   :  { %3836 = vsyncpa [#allocation15], 1 }
 0x5ff   :  { %3837 = vsyncpa [#allocation18], 1 }
 0x600   :  { %3838 = vsyncpa [#allocation21], 1 }
 0x601   :  { %3839 = vsyncpa [#allocation10], 1 }
 0x602   :  { %3841 = vsyncpa [#allocation10 + $0x1], 1 }

</bundles_post_ra>
